<compile_context>
chip_gen: v7x
topology: tpu7x:2x2x1
jax: 0.10.0
libtpu: 0.0.40
codegen_flags: <defaults>
</compile_context>

<pallas_src>
import functools
import math

import jax
import jax.numpy as jnp
import numpy as np
from jax import lax
from jax.experimental import pallas as pl
from jax.experimental.pallas import tpu as pltpu


# ----------------------------------------------------------------------------
# BlockSpec helpers
# ----------------------------------------------------------------------------
def _const_spec(shape):
    """Block == full array, same block for every grid step (stays resident)."""
    nd = len(shape)
    return pl.BlockSpec(tuple(shape), lambda l, _n=nd: (0,) * _n)


def _layer_spec(tail):
    """Per-layer stacked weight: leading (layer) dim squeezed, indexed by grid step."""
    nd = len(tail)
    return pl.BlockSpec((None,) + tuple(tail), lambda l, _n=nd: (l,) + (0,) * _n)


# ----------------------------------------------------------------------------
# In-kernel building blocks (values / refs, no pallas_call here)
# ----------------------------------------------------------------------------
def _layer_norm(y, g, b, eps):
    mu = jnp.mean(y, axis=-1, keepdims=True)
    yc = y - mu
    var = jnp.mean(yc * yc, axis=-1, keepdims=True)
    return yc * lax.rsqrt(var + eps) * g + b


def _ffn(x, w1_ref, b1_ref, w2_ref, b2_ref):
    """relu(x @ w1 + b1) @ w2 + b2 ; bf16 MXU operands, f32 accumulation."""
    h = jnp.dot(x.astype(jnp.bfloat16), w1_ref[...],
                preferred_element_type=jnp.float32) + b1_ref[...]
    h = jnp.maximum(h, 0.0)
    return jnp.dot(h.astype(jnp.bfloat16), w2_ref[...],
                   preferred_element_type=jnp.float32) + b2_ref[...]


def _mha_2d(xq_bf, xkv_bf, wq_ref, bq_ref, q_base, wkv_ref, bkv_ref, k_base,
            v_base, wo_ref, bo_ref, mask, n_heads, scale):
    """Multi-head attention with batch folded into rows (mask carries the
    batch-block / key-pad / causal structure).

    xq_bf : (Nq, D) bf16, xkv_bf : (Nk, D) bf16, mask : (Nq, Nk) bool.
    Per-head weights indexed on the leading ref dim (no lane slicing / concat);
    the output projection is accumulated as sum_h o_h @ Wo[h] (+ bo).
    Rows whose keys are ALL masked get a uniform softmax over -1e9 scores; the
    downstream loss pad-mask zeroes those positions (matches the reference).
    Returns (Nq, D) f32.
    """
    out = None
    for h in range(n_heads):
        q = jnp.dot(xq_bf, wq_ref[q_base + h],
                    preferred_element_type=jnp.float32) + bq_ref[q_base + h]
        k = jnp.dot(xkv_bf, wkv_ref[k_base + h],
                    preferred_element_type=jnp.float32) + bkv_ref[k_base + h]
        v = jnp.dot(xkv_bf, wkv_ref[v_base + h],
                    preferred_element_type=jnp.float32) + bkv_ref[v_base + h]
        # scores = q @ k^T without materializing a transpose
        s = lax.dot_general(q.astype(jnp.bfloat16), k.astype(jnp.bfloat16),
                            (((1,), (1,)), ((), ())),
                            preferred_element_type=jnp.float32) * scale
        s = jnp.where(mask, s, -1e9)
        s = s - jnp.max(s, axis=-1, keepdims=True)
        p = jnp.exp(s)
        p = p / jnp.sum(p, axis=-1, keepdims=True)      # exact softmax (parity)
        o_h = jnp.dot(p.astype(jnp.bfloat16), v.astype(jnp.bfloat16),
                      preferred_element_type=jnp.float32)             # (Nq, Dh)
        c = jnp.dot(o_h.astype(jnp.bfloat16), wo_ref[h],
                    preferred_element_type=jnp.float32)               # (Nq, D)
        out = c if out is None else out + c
    return out + bo_ref[...]


# ----------------------------------------------------------------------------
# Encoder stack: all layers in one pallas_call (grid = (n_layers,))
# ----------------------------------------------------------------------------
def _encoder_stack_kernel(x_ref, mask_ref,
                          wqkv_ref, bqkv_ref, wo_ref, bo_ref, ln1g_ref, ln1b_ref,
                          w1_ref, b1_ref, w2_ref, b2_ref, ln2g_ref, ln2b_ref,
                          o_ref, res_ref, *, n_heads, eps):
    l = pl.program_id(0)

    @pl.when(l == 0)
    def _():
        res_ref[...] = x_ref[...]                       # f32 residual stream

    x = res_ref[...]
    x_bf = x.astype(jnp.bfloat16)
    mask = mask_ref[...] > 0.0
    d_head = wqkv_ref.shape[-1]
    scale = 1.0 / math.sqrt(d_head)

    # ---- self-attention sub-layer (post-LN) ----
    a = _mha_2d(x_bf, x_bf, wqkv_ref, bqkv_ref, 0, wqkv_ref, bqkv_ref,
                n_heads, 2 * n_heads, wo_ref, bo_ref, mask, n_heads, scale)
    x = _layer_norm(x + a, ln1g_ref[...], ln1b_ref[...], eps)

    # ---- position-wise FFN sub-layer (post-LN) ----
    x = _layer_norm(x + _ffn(x, w1_ref, b1_ref, w2_ref, b2_ref),
                    ln2g_ref[...], ln2b_ref[...], eps)

    res_ref[...] = x

    @pl.when(l == pl.num_programs(0) - 1)
    def _():
        o_ref[...] = x.astype(o_ref.dtype)              # bf16 writeback (once)


def pallas_encoder_stack(x0, enc_mask, p, *, eps=1e-5):
    BS, D = x0.shape
    L, three_h, _, Dh = p["wqkv"].shape
    H = three_h // 3
    F = p["w1"].shape[-1]
    Nk = enc_mask.shape[-1]

    return pl.pallas_call(
        functools.partial(_encoder_stack_kernel, n_heads=H, eps=eps),
        out_shape=jax.ShapeDtypeStruct((BS, D), jnp.bfloat16),
        grid=(L,),
        in_specs=[
            _const_spec((BS, D)),                 # x0 (f32 residual-stream init)
            _const_spec((BS, Nk)),                # attention mask
            _layer_spec((3 * H, D, Dh)),          # wqkv (per-head Wq|Wk|Wv)
            _layer_spec((3 * H, 1, Dh)),          # bqkv
            _layer_spec((H, Dh, D)),              # wo (per-head rows)
            _layer_spec((1, D)),                  # bo
            _layer_spec((1, D)), _layer_spec((1, D)),   # ln1 g, b
            _layer_spec((D, F)), _layer_spec((1, F)),   # w1, b1
            _layer_spec((F, D)), _layer_spec((1, D)),   # w2, b2
            _layer_spec((1, D)), _layer_spec((1, D)),   # ln2 g, b
        ],
        out_specs=_const_spec((BS, D)),
        scratch_shapes=[pltpu.VMEM((BS, D), jnp.float32)],
        compiler_params=pltpu.CompilerParams(dimension_semantics=("arbitrary",)),
    )(x0, enc_mask, p["wqkv"], p["bqkv"], p["wo"], p["bo"], p["ln1_g"],
      p["ln1_b"], p["w1"], p["b1"], p["w2"], p["b2"], p["ln2_g"], p["ln2_b"])


# ----------------------------------------------------------------------------
# Decoder stack: scale_decoder_embedding + all layers in one pallas_call
# ----------------------------------------------------------------------------
def _decoder_stack_kernel(y2_ref, xenc_ref, self_mask_ref, cross_mask_ref,
                          wscale_ref,
                          s_wqkv_ref, s_bqkv_ref, s_wo_ref, s_bo_ref,
                          ln1g_ref, ln1b_ref,
                          c_wq_ref, c_bq_ref, c_wkv_ref, c_bkv_ref,
                          c_wo_ref, c_bo_ref, ln2g_ref, ln2b_ref,
                          w1_ref, b1_ref, w2_ref, b2_ref, ln3g_ref, ln3b_ref,
                          o_ref, res_ref, *, n_heads, eps):
    l = pl.program_id(0)

    @pl.when(l == 0)
    def _():
        # scale_decoder_embedding: (B*T, 2D) @ (2D, D), bias=False
        res_ref[...] = jnp.dot(y2_ref[...], wscale_ref[...],
                               preferred_element_type=jnp.float32)

    y = res_ref[...]
    xe_bf = xenc_ref[...]                               # (B*S, D) bf16 encoder out
    self_mask = self_mask_ref[...] > 0.0
    cross_mask = cross_mask_ref[...] > 0.0
    d_head = s_wqkv_ref.shape[-1]
    scale = 1.0 / math.sqrt(d_head)

    # ---- masked (causal + key-pad) self-attention ----
    y_bf = y.astype(jnp.bfloat16)
    a = _mha_2d(y_bf, y_bf, s_wqkv_ref, s_bqkv_ref, 0, s_wqkv_ref, s_bqkv_ref,
                n_heads, 2 * n_heads, s_wo_ref, s_bo_ref, self_mask,
                n_heads, scale)
    y = _layer_norm(y + a, ln1g_ref[...], ln1b_ref[...], eps)

    # ---- cross-attention over the encoder output ----
    y_bf = y.astype(jnp.bfloat16)
    a = _mha_2d(y_bf, xe_bf, c_wq_ref, c_bq_ref, 0, c_wkv_ref, c_bkv_ref,
                0, n_heads, c_wo_ref, c_bo_ref, cross_mask, n_heads, scale)
    y = _layer_norm(y + a, ln2g_ref[...], ln2b_ref[...], eps)

    # ---- position-wise FFN ----
    y = _layer_norm(y + _ffn(y, w1_ref, b1_ref, w2_ref, b2_ref),
                    ln3g_ref[...], ln3b_ref[...], eps)

    res_ref[...] = y

    @pl.when(l == pl.num_programs(0) - 1)
    def _():
        o_ref[...] = y.astype(o_ref.dtype)


def pallas_decoder_stack(y2, x_enc, self_mask, cross_mask, w_scale, p, *, eps=1e-5):
    BT = y2.shape[0]
    BS, D = x_enc.shape
    L, three_h, _, Dh = p["s_wqkv"].shape
    H = three_h // 3
    F = p["w1"].shape[-1]

    in_specs = [
        _const_spec((BT, 2 * D)),          # y2 (bf16 embedding slab)
        _const_spec((BS, D)),              # encoder output (bf16)
        _const_spec((BT, BT)),             # self-attn mask (pad & causal & batch)
        _const_spec((BT, BS)),             # cross-attn mask (src pad & batch)
        _const_spec((2 * D, D)),           # scale_decoder_embedding weight
        _layer_spec((3 * H, D, Dh)),       # self wqkv
        _layer_spec((3 * H, 1, Dh)),       # self bqkv
        _layer_spec((H, Dh, D)),           # self wo
        _layer_spec((1, D)),               # self bo
        _layer_spec((1, D)), _layer_spec((1, D)),   # ln1 g, b
        _layer_spec((H, D, Dh)),           # cross wq
        _layer_spec((H, 1, Dh)),           # cross bq
        _layer_spec((2 * H, D, Dh)),       # cross wkv
        _layer_spec((2 * H, 1, Dh)),       # cross bkv
        _layer_spec((H, Dh, D)),           # cross wo
        _layer_spec((1, D)),               # cross bo
        _layer_spec((1, D)), _layer_spec((1, D)),   # ln2 g, b
        _layer_spec((D, F)), _layer_spec((1, F)),   # w1, b1
        _layer_spec((F, D)), _layer_spec((1, D)),   # w2, b2
        _layer_spec((1, D)), _layer_spec((1, D)),   # ln3 g, b
    ]
    args = (y2, x_enc, self_mask, cross_mask, w_scale,
            p["s_wqkv"], p["s_bqkv"], p["s_wo"], p["s_bo"], p["ln1_g"], p["ln1_b"],
            p["c_wq"], p["c_bq"], p["c_wkv"], p["c_bkv"], p["c_wo"], p["c_bo"],
            p["ln2_g"], p["ln2_b"],
            p["w1"], p["b1"], p["w2"], p["b2"], p["ln3_g"], p["ln3_b"])

    return pl.pallas_call(
        functools.partial(_decoder_stack_kernel, n_heads=H, eps=eps),
        out_shape=jax.ShapeDtypeStruct((BT, D), jnp.bfloat16),
        grid=(L,),
        in_specs=in_specs,
        out_specs=_const_spec((BT, D)),
        scratch_shapes=[pltpu.VMEM((BT, D), jnp.float32)],
        compiler_params=pltpu.CompilerParams(dimension_semantics=("arbitrary",)),
    )(*args)


# ----------------------------------------------------------------------------
# Fused loss: rule/gen projections + log_softmax + gather + pad-mask
# ----------------------------------------------------------------------------
def _loss_kernel(y_ref, wr_ref, wg_ref, ridx_ref, tidx_ref, o_ref, *, padx):
    """Per-position (loss_rules + loss_gen_toks); logits stay in vregs/VMEM."""
    yb = y_ref[...]                                         # (tbt, D) bf16

    def branch(w, idx):
        logits = jnp.dot(yb, w, preferred_element_type=jnp.float32)   # (tbt, V)
        mx = jnp.max(logits, axis=-1, keepdims=True)
        lse = jnp.log(jnp.sum(jnp.exp(logits - mx), axis=-1, keepdims=True)) + mx
        vid = lax.broadcasted_iota(jnp.int32, logits.shape, 1)
        sel = vid == idx                                               # idx (tbt,1)
        gathered = jnp.sum(jnp.where(sel, logits - lse, 0.0),
                           axis=-1, keepdims=True)                     # (tbt,1)
        mask = (idx != padx).astype(jnp.float32)
        return gathered * mask

    o_ref[...] = branch(wr_ref[...], ridx_ref[...]) + branch(wg_ref[...], tidx_ref[...])


def pallas_seq_loss(y_bf, w_rule, w_gen, rule_idx, tok_idx, padx, B, T):
    BT, D = y_bf.shape
    R = w_rule.shape[1]
    V = w_gen.shape[1]
    tbt = 8 if (BT % 8 == 0 and BT > 8) else BT             # parallel BT tiling
    # TODO(synk): for realistic vocab sizes, add a V grid axis with online LSE
    #             (running max/sum in VMEM scratch) instead of a whole-V block.
    out = pl.pallas_call(
        functools.partial(_loss_kernel, padx=padx),
        out_shape=jax.ShapeDtypeStruct((BT, 1), jnp.float32),
        grid=(BT // tbt,),
        in_specs=[
            pl.BlockSpec((tbt, D), lambda i: (i, 0)),
            pl.BlockSpec((D, R), lambda i: (0, 0)),
            pl.BlockSpec((D, V), lambda i: (0, 0)),
            pl.BlockSpec((tbt, 1), lambda i: (i, 0)),
            pl.BlockSpec((tbt, 1), lambda i: (i, 0)),
        ],
        out_specs=pl.BlockSpec((tbt, 1), lambda i: (i, 0)),
        compiler_params=pltpu.CompilerParams(dimension_semantics=("parallel",)),
    )(y_bf, w_rule, w_gen,
      rule_idx.reshape(BT, 1).astype(jnp.int32),
      tok_idx.reshape(BT, 1).astype(jnp.int32))
    return out.reshape(B, T)


# ----------------------------------------------------------------------------
# Host-side glue (tiny XLA ops): PE, masks, embedding gathers
# ----------------------------------------------------------------------------
def positional_encoding(seq_len, d_model):
    pos = np.arange(seq_len)[:, None].astype(np.float32)
    i = np.arange(d_model)[None, :].astype(np.float32)
    angle = pos / np.power(10000.0, (2.0 * np.floor(i / 2.0)) / d_model)
    pe = np.where((np.arange(d_model)[None, :] % 2) == 0, np.sin(angle), np.cos(angle))
    return jnp.asarray(pe, jnp.float32)


def _build_masks(src_in, tgt_nodes_idx, padx):
    """Flattened-batch attention masks (1.0 = attend, 0.0 = masked)."""
    B, S = src_in.shape
    T = tgt_nodes_idx.shape[1]
    src_ok = (src_in != padx).reshape(1, B * S)
    tgt_ok = (tgt_nodes_idx != padx).reshape(1, B * T)

    def batch_block(nq, per_q, nk, per_k):
        rb = jnp.arange(nq)[:, None] // per_q
        cb = jnp.arange(nk)[None, :] // per_k
        return rb == cb

    enc_mask = batch_block(B * S, S, B * S, S) & src_ok
    causal = (jnp.arange(B * T)[:, None] % T) >= (jnp.arange(B * T)[None, :] % T)
    self_mask = batch_block(B * T, T, B * T, T) & tgt_ok & causal
    cross_mask = batch_block(B * T, T, B * S, S) & src_ok
    return (enc_mask.astype(jnp.float32),
            self_mask.astype(jnp.float32),
            cross_mask.astype(jnp.float32))


# ----------------------------------------------------------------------------
# TransVanilla forward
# ----------------------------------------------------------------------------
def trans_vanilla_forward(params, src_in, tgt_nodes_idx, tgt_tokens_idx,
                          tgt_actions_rule_idx, tgt_actions_tok_idx, padx=0):
    """Returns scores: (B,) -- sum of gathered log-probs (rules + gen tokens)."""
    B, S = src_in.shape
    T = tgt_nodes_idx.shape[1]
    D = params["emb_src"].shape[1]

    pe_src = positional_encoding(S, D)
    pe_tgt = positional_encoding(T, D)
    enc_mask, self_mask, cross_mask = _build_masks(src_in, tgt_nodes_idx, padx)

    # -------- encode: embedding + PE gathers in XLA; 6 layers in ONE kernel ----
    x0 = (params["emb_src"][src_in] + pe_src[None]).reshape(B * S, D)
    x0 = x0.astype(jnp.float32)                                  # residual stream f32
    x_enc = pallas_encoder_stack(x0, enc_mask, params["encoder"])   # (B*S, D) bf16

    # -------- decode: scale_decoder_embedding + 6 layers in ONE kernel ---------
    tgt_in_actions = jnp.concatenate(                            # teacher-forcing shift
        [jnp.zeros((B, 1), jnp.int32), tgt_actions_rule_idx[:, :-1]], axis=-1)
    node_e = params["emb_node"][tgt_nodes_idx] + pe_tgt[None]
    act_tok_e = (params["emb_rule"][tgt_in_actions]
                 + params["emb_tok"][tgt_tokens_idx]) + pe_tgt[None]
    y2 = jnp.concatenate([node_e, act_tok_e], axis=-1).reshape(B * T, 2 * D)
    y_dec = pallas_decoder_stack(y2.astype(jnp.bfloat16), x_enc, self_mask,
                                 cross_mask, params["w_scale"],
                                 params["decoder"])              # (B*T, D) bf16

    # -------- fused projection + log_softmax + gather + pad mask ---------------
    loss = pallas_seq_loss(y_dec, params["w_rule"], params["w_gen"],
                           tgt_actions_rule_idx, tgt_actions_tok_idx,
                           padx, B, T)                           # (B, T)
    return jnp.sum(loss, axis=-1)                                # (B,)


# ----------------------------------------------------------------------------
# Deterministic parameter init (per-head stacked layout; matmul weights bf16)
# ----------------------------------------------------------------------------
def init_params(key, d_model, d_ff, n_heads, n_layers, v_src, v_tgt, n_nodes, n_rules):
    D, F, H, L = d_model, d_ff, n_heads, n_layers
    Dh = D // H
    keys = iter(jax.random.split(key, 64))

    def w(shape, scale=0.05, dtype=jnp.bfloat16):
        return (jax.random.normal(next(keys), shape, jnp.float32) * scale).astype(dtype)

    def zeros(shape):
        return jnp.zeros(shape, jnp.float32)

    def ones(shape):
        return jnp.ones(shape, jnp.float32)

    def enc_stack():
        return {
            "wqkv": w((L, 3 * H, D, Dh)),   # heads 0..H-1 = Q, H..2H-1 = K, 2H.. = V
            "bqkv": zeros((L, 3 * H, 1, Dh)),
            "wo": w((L, H, Dh, D)),         # per-head row blocks of the (D, D) out proj
            "bo": zeros((L, 1, D)),
            "ln1_g": ones((L, 1, D)), "ln1_b": zeros((L, 1, D)),
            "w1": w((L, D, F)), "b1": zeros((L, 1, F)),
            "w2": w((L, F, D)), "b2": zeros((L, 1, D)),
            "ln2_g": ones((L, 1, D)), "ln2_b": zeros((L, 1, D)),
        }

    def dec_stack():
        return {
            "s_wqkv": w((L, 3 * H, D, Dh)), "s_bqkv": zeros((L, 3 * H, 1, Dh)),
            "s_wo": w((L, H, Dh, D)), "s_bo": zeros((L, 1, D)),
            "ln1_g": ones((L, 1, D)), "ln1_b": zeros((L, 1, D)),
            "c_wq": w((L, H, D, Dh)), "c_bq": zeros((L, H, 1, Dh)),
            "c_wkv": w((L, 2 * H, D, Dh)), "c_bkv": zeros((L, 2 * H, 1, Dh)),
            "c_wo": w((L, H, Dh, D)), "c_bo": zeros((L, 1, D)),
            "ln2_g": ones((L, 1, D)), "ln2_b": zeros((L, 1, D)),
            "w1": w((L, D, F)), "b1": zeros((L, 1, F)),
            "w2": w((L, F, D)), "b2": zeros((L, 1, D)),
            "ln3_g": ones((L, 1, D)), "ln3_b": zeros((L, 1, D)),
        }

    return {
        "emb_src": w((v_src, D), dtype=jnp.float32),
        "emb_node": w((n_nodes, D), dtype=jnp.float32),
        "emb_rule": w((n_rules, D), dtype=jnp.float32),
        "emb_tok": w((v_tgt, D), dtype=jnp.float32),
        "w_scale": w((2 * D, D)),           # scale_decoder_embedding (bias=False)
        "w_gen": w((D, v_tgt)),             # gen_tok_project (bias=False)
        "w_rule": w((D, n_rules)),          # rule_project (bias=False)
        "encoder": enc_stack(),
        "decoder": dec_stack(),
    }


# ----------------------------------------------------------------------------
# Main
# ----------------------------------------------------------------------------
if __name__ == "__main__":
    D_MODEL, D_FF, N_HEADS, N_LAYERS = 32, 64, 4, 6
    V_SRC, V_TGT, N_NODES, N_RULES = 40, 48, 20, 24
    B, S_SRC, T_TGT = 2, 8, 8

    key = jax.random.PRNGKey(0)
    kp, k1, k2, k3, k4, k5 = jax.random.split(key, 6)
    params = init_params(kp, D_MODEL, D_FF, N_HEADS, N_LAYERS,
                         V_SRC, V_TGT, N_NODES, N_RULES)

    # Integer index tensors standing in for vocab/nodes/rules .sents2Tensor outputs.
    src_in = jax.random.randint(k1, (B, S_SRC), 0, V_SRC, dtype=jnp.int32)
    tgt_nodes_idx = jax.random.randint(k2, (B, T_TGT), 0, N_NODES, dtype=jnp.int32)
    tgt_tokens_idx = jax.random.randint(k3, (B, T_TGT), 0, V_TGT, dtype=jnp.int32)
    tgt_actions_rule_idx = jax.random.randint(k4, (B, T_TGT), 0, N_RULES, dtype=jnp.int32)
    tgt_actions_tok_idx = jax.random.randint(k5, (B, T_TGT), 0, V_TGT, dtype=jnp.int32)

    fwd = jax.jit(trans_vanilla_forward, static_argnames=("padx",))
    scores = fwd(params, src_in, tgt_nodes_idx, tgt_tokens_idx,
                 tgt_actions_rule_idx, tgt_actions_tok_idx, padx=0)
    jax.block_until_ready(scores)
    assert scores.shape == (B,)
    print("KERNEL_OK")
</pallas_src>

<mosaic_0001>
module attributes {stable_mosaic.version = 11 : i64} {
  func.func @_encoder_stack_kernel(%arg0: i32, %arg1: memref<16x32xf32, #tpu.memory_space<vmem>>, %arg2: memref<16x16xf32, #tpu.memory_space<vmem>>, %arg3: memref<1x12x32x8xbf16, #tpu.memory_space<vmem>>, %arg4: memref<1x12x1x8xf32, #tpu.memory_space<vmem>>, %arg5: memref<1x4x8x32xbf16, #tpu.memory_space<vmem>>, %arg6: memref<1x1x32xf32, #tpu.memory_space<vmem>>, %arg7: memref<1x1x32xf32, #tpu.memory_space<vmem>>, %arg8: memref<1x1x32xf32, #tpu.memory_space<vmem>>, %arg9: memref<1x32x64xbf16, #tpu.memory_space<vmem>>, %arg10: memref<1x1x64xf32, #tpu.memory_space<vmem>>, %arg11: memref<1x64x32xbf16, #tpu.memory_space<vmem>>, %arg12: memref<1x1x32xf32, #tpu.memory_space<vmem>>, %arg13: memref<1x1x32xf32, #tpu.memory_space<vmem>>, %arg14: memref<1x1x32xf32, #tpu.memory_space<vmem>>, %arg15: memref<16x32xbf16, #tpu.memory_space<vmem>>, %arg16: memref<16x32xf32, #tpu.memory_space<vmem>>) attributes {dimension_semantics = [#tpu.dimension_semantics<arbitrary>], iteration_bounds = array<i64: 6>, scalar_prefetch = 0 : i64, scratch_operands = 1 : i64, tpu.core_type = #tpu.core_type<tc>, window_params = [{pipeline_mode = #tpu.pipeline_mode<synchronous>, transform_indices = @transform_0, window_bounds = array<i64: 16, 32>}, {pipeline_mode = #tpu.pipeline_mode<synchronous>, transform_indices = @transform_1, window_bounds = array<i64: 16, 16>}, {transform_indices = @transform_2, window_bounds = array<i64: 1, 12, 32, 8>}, {transform_indices = @transform_3, window_bounds = array<i64: 1, 12, 1, 8>}, {transform_indices = @transform_4, window_bounds = array<i64: 1, 4, 8, 32>}, {transform_indices = @transform_5, window_bounds = array<i64: 1, 1, 32>}, {transform_indices = @transform_6, window_bounds = array<i64: 1, 1, 32>}, {transform_indices = @transform_7, window_bounds = array<i64: 1, 1, 32>}, {transform_indices = @transform_8, window_bounds = array<i64: 1, 32, 64>}, {transform_indices = @transform_9, window_bounds = array<i64: 1, 1, 64>}, {transform_indices = @transform_10, window_bounds = array<i64: 1, 64, 32>}, {transform_indices = @transform_11, window_bounds = array<i64: 1, 1, 32>}, {transform_indices = @transform_12, window_bounds = array<i64: 1, 1, 32>}, {transform_indices = @transform_13, window_bounds = array<i64: 1, 1, 32>}, {pipeline_mode = #tpu.pipeline_mode<synchronous>, transform_indices = @transform_14, window_bounds = array<i64: 16, 32>}]} {
    %c0_i32 = arith.constant 0 : i32
    %0 = arith.cmpi eq, %arg0, %c0_i32 : i32
    %1 = arith.extui %0 : i1 to i32
    %c0_i32_0 = arith.constant 0 : i32
    %2 = arith.cmpi ne, %1, %c0_i32_0 : i32
    scf.if %2 {
      %c0_188 = arith.constant 0 : index
      %c0_189 = arith.constant 0 : index
      %263 = vector.load %arg1[%c0_188, %c0_189] : memref<16x32xf32, #tpu.memory_space<vmem>>, vector<16x32xf32>
      %c0_190 = arith.constant 0 : index
      %c0_191 = arith.constant 0 : index
      %264 = vector.load %arg16[%c0_190, %c0_191] : memref<16x32xf32, #tpu.memory_space<vmem>>, vector<16x32xf32>
      tpu.vector_store %arg16[%c0_190, %c0_191], %263 {strides = array<i32>} : memref<16x32xf32, #tpu.memory_space<vmem>>, vector<16x32xf32>,
    } else {
    }
    %c0 = arith.constant 0 : index
    %c0_1 = arith.constant 0 : index
    %3 = vector.load %arg16[%c0, %c0_1] : memref<16x32xf32, #tpu.memory_space<vmem>>, vector<16x32xf32>
    %4 = arith.truncf %3 : vector<16x32xf32> to vector<16x32xbf16>
    %c0_2 = arith.constant 0 : index
    %c0_3 = arith.constant 0 : index
    %5 = vector.load %arg2[%c0_2, %c0_3] : memref<16x16xf32, #tpu.memory_space<vmem>>, vector<16x16xf32>
    %cst = arith.constant 0.000000e+00 : f32
    %6 = vector.broadcast %cst : f32 to vector<16x16xf32>
    %7 = arith.cmpf ogt, %5, %6 : vector<16x16xf32>
    %c0_4 = arith.constant 0 : index
    %c0_5 = arith.constant 0 : index
    %c0_6 = arith.constant 0 : index
    %c0_7 = arith.constant 0 : index
    %8 = vector.load %arg3[%c0_4, %c0_5, %c0_6, %c0_7] : memref<1x12x32x8xbf16, #tpu.memory_space<vmem>>, vector<1x1x32x8xbf16>
    %9 = vector.shape_cast %8 : vector<1x1x32x8xbf16> to vector<32x8xbf16>
    %cst_8 = arith.constant dense<0.000000e+00> : vector<16x8xf32>
    %10 = tpu.matmul %4, %9, %cst_8 {dimension_numbers = #tpu.dot_dimension_numbers<[1], [0], [0], [1], [0, 0, 1, 1], [], []>} : vector<16x32xbf16>, vector<32x8xbf16>, vector<16x8xf32> -> vector<16x8xf32>
    %c0_9 = arith.constant 0 : index
    %c0_10 = arith.constant 0 : index
    %c0_11 = arith.constant 0 : index
    %c0_12 = arith.constant 0 : index
    %11 = vector.load %arg4[%c0_9, %c0_10, %c0_11, %c0_12] : memref<1x12x1x8xf32, #tpu.memory_space<vmem>>, vector<1x1x1x8xf32>
    %12 = vector.shape_cast %11 : vector<1x1x1x8xf32> to vector<1x8xf32>
    %13 = vector.broadcast %12 : vector<1x8xf32> to vector<16x8xf32>
    %14 = arith.addf %10, %13 : vector<16x8xf32>
    %c0_13 = arith.constant 0 : index
    %c4 = arith.constant 4 : index
    %c0_14 = arith.constant 0 : index
    %c0_15 = arith.constant 0 : index
    %15 = vector.load %arg3[%c0_13, %c4, %c0_14, %c0_15] : memref<1x12x32x8xbf16, #tpu.memory_space<vmem>>, vector<1x1x32x8xbf16>
    %16 = vector.shape_cast %15 : vector<1x1x32x8xbf16> to vector<32x8xbf16>
    %cst_16 = arith.constant dense<0.000000e+00> : vector<16x8xf32>
    %17 = tpu.matmul %4, %16, %cst_16 {dimension_numbers = #tpu.dot_dimension_numbers<[1], [0], [0], [1], [0, 0, 1, 1], [], []>} : vector<16x32xbf16>, vector<32x8xbf16>, vector<16x8xf32> -> vector<16x8xf32>
    %c0_17 = arith.constant 0 : index
    %c4_18 = arith.constant 4 : index
    %c0_19 = arith.constant 0 : index
    %c0_20 = arith.constant 0 : index
    %18 = vector.load %arg4[%c0_17, %c4_18, %c0_19, %c0_20] : memref<1x12x1x8xf32, #tpu.memory_space<vmem>>, vector<1x1x1x8xf32>
    %19 = vector.shape_cast %18 : vector<1x1x1x8xf32> to vector<1x8xf32>
    %20 = vector.broadcast %19 : vector<1x8xf32> to vector<16x8xf32>
    %21 = arith.addf %17, %20 : vector<16x8xf32>
    %c0_21 = arith.constant 0 : index
    %c8 = arith.constant 8 : index
    %c0_22 = arith.constant 0 : index
    %c0_23 = arith.constant 0 : index
    %22 = vector.load %arg3[%c0_21, %c8, %c0_22, %c0_23] : memref<1x12x32x8xbf16, #tpu.memory_space<vmem>>, vector<1x1x32x8xbf16>
    %23 = vector.shape_cast %22 : vector<1x1x32x8xbf16> to vector<32x8xbf16>
    %cst_24 = arith.constant dense<0.000000e+00> : vector<16x8xf32>
    %24 = tpu.matmul %4, %23, %cst_24 {dimension_numbers = #tpu.dot_dimension_numbers<[1], [0], [0], [1], [0, 0, 1, 1], [], []>} : vector<16x32xbf16>, vector<32x8xbf16>, vector<16x8xf32> -> vector<16x8xf32>
    %c0_25 = arith.constant 0 : index
    %c8_26 = arith.constant 8 : index
    %c0_27 = arith.constant 0 : index
    %c0_28 = arith.constant 0 : index
    %25 = vector.load %arg4[%c0_25, %c8_26, %c0_27, %c0_28] : memref<1x12x1x8xf32, #tpu.memory_space<vmem>>, vector<1x1x1x8xf32>
    %26 = vector.shape_cast %25 : vector<1x1x1x8xf32> to vector<1x8xf32>
    %27 = vector.broadcast %26 : vector<1x8xf32> to vector<16x8xf32>
    %28 = arith.addf %24, %27 : vector<16x8xf32>
    %29 = arith.truncf %14 : vector<16x8xf32> to vector<16x8xbf16>
    %30 = arith.truncf %21 : vector<16x8xf32> to vector<16x8xbf16>
    %cst_29 = arith.constant dense<0.000000e+00> : vector<16x16xf32>
    %31 = tpu.matmul %29, %30, %cst_29 {dimension_numbers = #tpu.dot_dimension_numbers<[1], [1], [0], [0], [0, 0, 1, 0], [], []>} : vector<16x8xbf16>, vector<16x8xbf16>, vector<16x16xf32> -> vector<16x16xf32>
    %cst_30 = arith.constant 0.353553385 : f32
    %32 = vector.broadcast %cst_30 : f32 to vector<16x16xf32>
    %33 = arith.mulf %31, %32 : vector<16x16xf32>
    %cst_31 = arith.constant -1.000000e+09 : f32
    %34 = vector.broadcast %cst_31 : f32 to vector<16x16xf32>
    %35 = arith.select %7, %33, %34 : vector<16x16xi1>, vector<16x16xf32>
    %cst_32 = arith.constant dense<0xFF800000> : vector<16xf32>
    %36 = vector.multi_reduction <maximumf>, %35, %cst_32 [1] : vector<16x16xf32> to vector<16xf32>
    %37 = vector.shape_cast %36 : vector<16xf32> to vector<16x1xf32>
    %38 = vector.broadcast %37 : vector<16x1xf32> to vector<16x16xf32>
    %39 = arith.subf %35, %38 : vector<16x16xf32>
    %40 = math.exp %39 : vector<16x16xf32>
    %cst_33 = arith.constant dense<0.000000e+00> : vector<16xf32>
    %41 = vector.multi_reduction <add>, %40, %cst_33 [1] : vector<16x16xf32> to vector<16xf32>
    %42 = vector.shape_cast %41 : vector<16xf32> to vector<16x1xf32>
    %43 = vector.broadcast %42 : vector<16x1xf32> to vector<16x16xf32>
    %44 = arith.divf %40, %43 : vector<16x16xf32>
    %45 = arith.truncf %44 : vector<16x16xf32> to vector<16x16xbf16>
    %46 = arith.truncf %28 : vector<16x8xf32> to vector<16x8xbf16>
    %cst_34 = arith.constant dense<0.000000e+00> : vector<16x8xf32>
    %47 = tpu.matmul %45, %46, %cst_34 {dimension_numbers = #tpu.dot_dimension_numbers<[1], [0], [0], [1], [0, 0, 1, 1], [], []>} : vector<16x16xbf16>, vector<16x8xbf16>, vector<16x8xf32> -> vector<16x8xf32>
    %48 = arith.truncf %47 : vector<16x8xf32> to vector<16x8xbf16>
    %c0_35 = arith.constant 0 : index
    %c0_36 = arith.constant 0 : index
    %c0_37 = arith.constant 0 : index
    %c0_38 = arith.constant 0 : index
    %49 = vector.load %arg5[%c0_35, %c0_36, %c0_37, %c0_38] : memref<1x4x8x32xbf16, #tpu.memory_space<vmem>>, vector<1x1x8x32xbf16>
    %50 = vector.shape_cast %49 : vector<1x1x8x32xbf16> to vector<8x32xbf16>
    %cst_39 = arith.constant dense<0.000000e+00> : vector<16x32xf32>
    %51 = tpu.matmul %48, %50, %cst_39 {dimension_numbers = #tpu.dot_dimension_numbers<[1], [0], [0], [1], [0, 0, 1, 1], [], []>} : vector<16x8xbf16>, vector<8x32xbf16>, vector<16x32xf32> -> vector<16x32xf32>
    %c0_40 = arith.constant 0 : index
    %c1 = arith.constant 1 : index
    %c0_41 = arith.constant 0 : index
    %c0_42 = arith.constant 0 : index
    %52 = vector.load %arg3[%c0_40, %c1, %c0_41, %c0_42] : memref<1x12x32x8xbf16, #tpu.memory_space<vmem>>, vector<1x1x32x8xbf16>
    %53 = vector.shape_cast %52 : vector<1x1x32x8xbf16> to vector<32x8xbf16>
    %cst_43 = arith.constant dense<0.000000e+00> : vector<16x8xf32>
    %54 = tpu.matmul %4, %53, %cst_43 {dimension_numbers = #tpu.dot_dimension_numbers<[1], [0], [0], [1], [0, 0, 1, 1], [], []>} : vector<16x32xbf16>, vector<32x8xbf16>, vector<16x8xf32> -> vector<16x8xf32>
    %c0_44 = arith.constant 0 : index
    %c1_45 = arith.constant 1 : index
    %c0_46 = arith.constant 0 : index
    %c0_47 = arith.constant 0 : index
    %55 = vector.load %arg4[%c0_44, %c1_45, %c0_46, %c0_47] : memref<1x12x1x8xf32, #tpu.memory_space<vmem>>, vector<1x1x1x8xf32>
    %56 = vector.shape_cast %55 : vector<1x1x1x8xf32> to vector<1x8xf32>
    %57 = vector.broadcast %56 : vector<1x8xf32> to vector<16x8xf32>
    %58 = arith.addf %54, %57 : vector<16x8xf32>
    %c0_48 = arith.constant 0 : index
    %c5 = arith.constant 5 : index
    %c0_49 = arith.constant 0 : index
    %c0_50 = arith.constant 0 : index
    %59 = vector.load %arg3[%c0_48, %c5, %c0_49, %c0_50] : memref<1x12x32x8xbf16, #tpu.memory_space<vmem>>, vector<1x1x32x8xbf16>
    %60 = vector.shape_cast %59 : vector<1x1x32x8xbf16> to vector<32x8xbf16>
    %cst_51 = arith.constant dense<0.000000e+00> : vector<16x8xf32>
    %61 = tpu.matmul %4, %60, %cst_51 {dimension_numbers = #tpu.dot_dimension_numbers<[1], [0], [0], [1], [0, 0, 1, 1], [], []>} : vector<16x32xbf16>, vector<32x8xbf16>, vector<16x8xf32> -> vector<16x8xf32>
    %c0_52 = arith.constant 0 : index
    %c5_53 = arith.constant 5 : index
    %c0_54 = arith.constant 0 : index
    %c0_55 = arith.constant 0 : index
    %62 = vector.load %arg4[%c0_52, %c5_53, %c0_54, %c0_55] : memref<1x12x1x8xf32, #tpu.memory_space<vmem>>, vector<1x1x1x8xf32>
    %63 = vector.shape_cast %62 : vector<1x1x1x8xf32> to vector<1x8xf32>
    %64 = vector.broadcast %63 : vector<1x8xf32> to vector<16x8xf32>
    %65 = arith.addf %61, %64 : vector<16x8xf32>
    %c0_56 = arith.constant 0 : index
    %c9 = arith.constant 9 : index
    %c0_57 = arith.constant 0 : index
    %c0_58 = arith.constant 0 : index
    %66 = vector.load %arg3[%c0_56, %c9, %c0_57, %c0_58] : memref<1x12x32x8xbf16, #tpu.memory_space<vmem>>, vector<1x1x32x8xbf16>
    %67 = vector.shape_cast %66 : vector<1x1x32x8xbf16> to vector<32x8xbf16>
    %cst_59 = arith.constant dense<0.000000e+00> : vector<16x8xf32>
    %68 = tpu.matmul %4, %67, %cst_59 {dimension_numbers = #tpu.dot_dimension_numbers<[1], [0], [0], [1], [0, 0, 1, 1], [], []>} : vector<16x32xbf16>, vector<32x8xbf16>, vector<16x8xf32> -> vector<16x8xf32>
    %c0_60 = arith.constant 0 : index
    %c9_61 = arith.constant 9 : index
    %c0_62 = arith.constant 0 : index
    %c0_63 = arith.constant 0 : index
    %69 = vector.load %arg4[%c0_60, %c9_61, %c0_62, %c0_63] : memref<1x12x1x8xf32, #tpu.memory_space<vmem>>, vector<1x1x1x8xf32>
    %70 = vector.shape_cast %69 : vector<1x1x1x8xf32> to vector<1x8xf32>
    %71 = vector.broadcast %70 : vector<1x8xf32> to vector<16x8xf32>
    %72 = arith.addf %68, %71 : vector<16x8xf32>
    %73 = arith.truncf %58 : vector<16x8xf32> to vector<16x8xbf16>
    %74 = arith.truncf %65 : vector<16x8xf32> to vector<16x8xbf16>
    %cst_64 = arith.constant dense<0.000000e+00> : vector<16x16xf32>
    %75 = tpu.matmul %73, %74, %cst_64 {dimension_numbers = #tpu.dot_dimension_numbers<[1], [1], [0], [0], [0, 0, 1, 0], [], []>} : vector<16x8xbf16>, vector<16x8xbf16>, vector<16x16xf32> -> vector<16x16xf32>
    %cst_65 = arith.constant 0.353553385 : f32
    %76 = vector.broadcast %cst_65 : f32 to vector<16x16xf32>
    %77 = arith.mulf %75, %76 : vector<16x16xf32>
    %cst_66 = arith.constant -1.000000e+09 : f32
    %78 = vector.broadcast %cst_66 : f32 to vector<16x16xf32>
    %79 = arith.select %7, %77, %78 : vector<16x16xi1>, vector<16x16xf32>
    %cst_67 = arith.constant dense<0xFF800000> : vector<16xf32>
    %80 = vector.multi_reduction <maximumf>, %79, %cst_67 [1] : vector<16x16xf32> to vector<16xf32>
    %81 = vector.shape_cast %80 : vector<16xf32> to vector<16x1xf32>
    %82 = vector.broadcast %81 : vector<16x1xf32> to vector<16x16xf32>
    %83 = arith.subf %79, %82 : vector<16x16xf32>
    %84 = math.exp %83 : vector<16x16xf32>
    %cst_68 = arith.constant dense<0.000000e+00> : vector<16xf32>
    %85 = vector.multi_reduction <add>, %84, %cst_68 [1] : vector<16x16xf32> to vector<16xf32>
    %86 = vector.shape_cast %85 : vector<16xf32> to vector<16x1xf32>
    %87 = vector.broadcast %86 : vector<16x1xf32> to vector<16x16xf32>
    %88 = arith.divf %84, %87 : vector<16x16xf32>
    %89 = arith.truncf %88 : vector<16x16xf32> to vector<16x16xbf16>
    %90 = arith.truncf %72 : vector<16x8xf32> to vector<16x8xbf16>
    %cst_69 = arith.constant dense<0.000000e+00> : vector<16x8xf32>
    %91 = tpu.matmul %89, %90, %cst_69 {dimension_numbers = #tpu.dot_dimension_numbers<[1], [0], [0], [1], [0, 0, 1, 1], [], []>} : vector<16x16xbf16>, vector<16x8xbf16>, vector<16x8xf32> -> vector<16x8xf32>
    %92 = arith.truncf %91 : vector<16x8xf32> to vector<16x8xbf16>
    %c0_70 = arith.constant 0 : index
    %c1_71 = arith.constant 1 : index
    %c0_72 = arith.constant 0 : index
    %c0_73 = arith.constant 0 : index
    %93 = vector.load %arg5[%c0_70, %c1_71, %c0_72, %c0_73] : memref<1x4x8x32xbf16, #tpu.memory_space<vmem>>, vector<1x1x8x32xbf16>
    %94 = vector.shape_cast %93 : vector<1x1x8x32xbf16> to vector<8x32xbf16>
    %cst_74 = arith.constant dense<0.000000e+00> : vector<16x32xf32>
    %95 = tpu.matmul %92, %94, %cst_74 {dimension_numbers = #tpu.dot_dimension_numbers<[1], [0], [0], [1], [0, 0, 1, 1], [], []>} : vector<16x8xbf16>, vector<8x32xbf16>, vector<16x32xf32> -> vector<16x32xf32>
    %96 = arith.addf %51, %95 : vector<16x32xf32>
    %c0_75 = arith.constant 0 : index
    %c2 = arith.constant 2 : index
    %c0_76 = arith.constant 0 : index
    %c0_77 = arith.constant 0 : index
    %97 = vector.load %arg3[%c0_75, %c2, %c0_76, %c0_77] : memref<1x12x32x8xbf16, #tpu.memory_space<vmem>>, vector<1x1x32x8xbf16>
    %98 = vector.shape_cast %97 : vector<1x1x32x8xbf16> to vector<32x8xbf16>
    %cst_78 = arith.constant dense<0.000000e+00> : vector<16x8xf32>
    %99 = tpu.matmul %4, %98, %cst_78 {dimension_numbers = #tpu.dot_dimension_numbers<[1], [0], [0], [1], [0, 0, 1, 1], [], []>} : vector<16x32xbf16>, vector<32x8xbf16>, vector<16x8xf32> -> vector<16x8xf32>
    %c0_79 = arith.constant 0 : index
    %c2_80 = arith.constant 2 : index
    %c0_81 = arith.constant 0 : index
    %c0_82 = arith.constant 0 : index
    %100 = vector.load %arg4[%c0_79, %c2_80, %c0_81, %c0_82] : memref<1x12x1x8xf32, #tpu.memory_space<vmem>>, vector<1x1x1x8xf32>
    %101 = vector.shape_cast %100 : vector<1x1x1x8xf32> to vector<1x8xf32>
    %102 = vector.broadcast %101 : vector<1x8xf32> to vector<16x8xf32>
    %103 = arith.addf %99, %102 : vector<16x8xf32>
    %c0_83 = arith.constant 0 : index
    %c6 = arith.constant 6 : index
    %c0_84 = arith.constant 0 : index
    %c0_85 = arith.constant 0 : index
    %104 = vector.load %arg3[%c0_83, %c6, %c0_84, %c0_85] : memref<1x12x32x8xbf16, #tpu.memory_space<vmem>>, vector<1x1x32x8xbf16>
    %105 = vector.shape_cast %104 : vector<1x1x32x8xbf16> to vector<32x8xbf16>
    %cst_86 = arith.constant dense<0.000000e+00> : vector<16x8xf32>
    %106 = tpu.matmul %4, %105, %cst_86 {dimension_numbers = #tpu.dot_dimension_numbers<[1], [0], [0], [1], [0, 0, 1, 1], [], []>} : vector<16x32xbf16>, vector<32x8xbf16>, vector<16x8xf32> -> vector<16x8xf32>
    %c0_87 = arith.constant 0 : index
    %c6_88 = arith.constant 6 : index
    %c0_89 = arith.constant 0 : index
    %c0_90 = arith.constant 0 : index
    %107 = vector.load %arg4[%c0_87, %c6_88, %c0_89, %c0_90] : memref<1x12x1x8xf32, #tpu.memory_space<vmem>>, vector<1x1x1x8xf32>
    %108 = vector.shape_cast %107 : vector<1x1x1x8xf32> to vector<1x8xf32>
    %109 = vector.broadcast %108 : vector<1x8xf32> to vector<16x8xf32>
    %110 = arith.addf %106, %109 : vector<16x8xf32>
    %c0_91 = arith.constant 0 : index
    %c10 = arith.constant 10 : index
    %c0_92 = arith.constant 0 : index
    %c0_93 = arith.constant 0 : index
    %111 = vector.load %arg3[%c0_91, %c10, %c0_92, %c0_93] : memref<1x12x32x8xbf16, #tpu.memory_space<vmem>>, vector<1x1x32x8xbf16>
    %112 = vector.shape_cast %111 : vector<1x1x32x8xbf16> to vector<32x8xbf16>
    %cst_94 = arith.constant dense<0.000000e+00> : vector<16x8xf32>
    %113 = tpu.matmul %4, %112, %cst_94 {dimension_numbers = #tpu.dot_dimension_numbers<[1], [0], [0], [1], [0, 0, 1, 1], [], []>} : vector<16x32xbf16>, vector<32x8xbf16>, vector<16x8xf32> -> vector<16x8xf32>
    %c0_95 = arith.constant 0 : index
    %c10_96 = arith.constant 10 : index
    %c0_97 = arith.constant 0 : index
    %c0_98 = arith.constant 0 : index
    %114 = vector.load %arg4[%c0_95, %c10_96, %c0_97, %c0_98] : memref<1x12x1x8xf32, #tpu.memory_space<vmem>>, vector<1x1x1x8xf32>
    %115 = vector.shape_cast %114 : vector<1x1x1x8xf32> to vector<1x8xf32>
    %116 = vector.broadcast %115 : vector<1x8xf32> to vector<16x8xf32>
    %117 = arith.addf %113, %116 : vector<16x8xf32>
    %118 = arith.truncf %103 : vector<16x8xf32> to vector<16x8xbf16>
    %119 = arith.truncf %110 : vector<16x8xf32> to vector<16x8xbf16>
    %cst_99 = arith.constant dense<0.000000e+00> : vector<16x16xf32>
    %120 = tpu.matmul %118, %119, %cst_99 {dimension_numbers = #tpu.dot_dimension_numbers<[1], [1], [0], [0], [0, 0, 1, 0], [], []>} : vector<16x8xbf16>, vector<16x8xbf16>, vector<16x16xf32> -> vector<16x16xf32>
    %cst_100 = arith.constant 0.353553385 : f32
    %121 = vector.broadcast %cst_100 : f32 to vector<16x16xf32>
    %122 = arith.mulf %120, %121 : vector<16x16xf32>
    %cst_101 = arith.constant -1.000000e+09 : f32
    %123 = vector.broadcast %cst_101 : f32 to vector<16x16xf32>
    %124 = arith.select %7, %122, %123 : vector<16x16xi1>, vector<16x16xf32>
    %cst_102 = arith.constant dense<0xFF800000> : vector<16xf32>
    %125 = vector.multi_reduction <maximumf>, %124, %cst_102 [1] : vector<16x16xf32> to vector<16xf32>
    %126 = vector.shape_cast %125 : vector<16xf32> to vector<16x1xf32>
    %127 = vector.broadcast %126 : vector<16x1xf32> to vector<16x16xf32>
    %128 = arith.subf %124, %127 : vector<16x16xf32>
    %129 = math.exp %128 : vector<16x16xf32>
    %cst_103 = arith.constant dense<0.000000e+00> : vector<16xf32>
    %130 = vector.multi_reduction <add>, %129, %cst_103 [1] : vector<16x16xf32> to vector<16xf32>
    %131 = vector.shape_cast %130 : vector<16xf32> to vector<16x1xf32>
    %132 = vector.broadcast %131 : vector<16x1xf32> to vector<16x16xf32>
    %133 = arith.divf %129, %132 : vector<16x16xf32>
    %134 = arith.truncf %133 : vector<16x16xf32> to vector<16x16xbf16>
    %135 = arith.truncf %117 : vector<16x8xf32> to vector<16x8xbf16>
    %cst_104 = arith.constant dense<0.000000e+00> : vector<16x8xf32>
    %136 = tpu.matmul %134, %135, %cst_104 {dimension_numbers = #tpu.dot_dimension_numbers<[1], [0], [0], [1], [0, 0, 1, 1], [], []>} : vector<16x16xbf16>, vector<16x8xbf16>, vector<16x8xf32> -> vector<16x8xf32>
    %137 = arith.truncf %136 : vector<16x8xf32> to vector<16x8xbf16>
    %c0_105 = arith.constant 0 : index
    %c2_106 = arith.constant 2 : index
    %c0_107 = arith.constant 0 : index
    %c0_108 = arith.constant 0 : index
    %138 = vector.load %arg5[%c0_105, %c2_106, %c0_107, %c0_108] : memref<1x4x8x32xbf16, #tpu.memory_space<vmem>>, vector<1x1x8x32xbf16>
    %139 = vector.shape_cast %138 : vector<1x1x8x32xbf16> to vector<8x32xbf16>
    %cst_109 = arith.constant dense<0.000000e+00> : vector<16x32xf32>
    %140 = tpu.matmul %137, %139, %cst_109 {dimension_numbers = #tpu.dot_dimension_numbers<[1], [0], [0], [1], [0, 0, 1, 1], [], []>} : vector<16x8xbf16>, vector<8x32xbf16>, vector<16x32xf32> -> vector<16x32xf32>
    %141 = arith.addf %96, %140 : vector<16x32xf32>
    %c0_110 = arith.constant 0 : index
    %c3 = arith.constant 3 : index
    %c0_111 = arith.constant 0 : index
    %c0_112 = arith.constant 0 : index
    %142 = vector.load %arg3[%c0_110, %c3, %c0_111, %c0_112] : memref<1x12x32x8xbf16, #tpu.memory_space<vmem>>, vector<1x1x32x8xbf16>
    %143 = vector.shape_cast %142 : vector<1x1x32x8xbf16> to vector<32x8xbf16>
    %cst_113 = arith.constant dense<0.000000e+00> : vector<16x8xf32>
    %144 = tpu.matmul %4, %143, %cst_113 {dimension_numbers = #tpu.dot_dimension_numbers<[1], [0], [0], [1], [0, 0, 1, 1], [], []>} : vector<16x32xbf16>, vector<32x8xbf16>, vector<16x8xf32> -> vector<16x8xf32>
    %c0_114 = arith.constant 0 : index
    %c3_115 = arith.constant 3 : index
    %c0_116 = arith.constant 0 : index
    %c0_117 = arith.constant 0 : index
    %145 = vector.load %arg4[%c0_114, %c3_115, %c0_116, %c0_117] : memref<1x12x1x8xf32, #tpu.memory_space<vmem>>, vector<1x1x1x8xf32>
    %146 = vector.shape_cast %145 : vector<1x1x1x8xf32> to vector<1x8xf32>
    %147 = vector.broadcast %146 : vector<1x8xf32> to vector<16x8xf32>
    %148 = arith.addf %144, %147 : vector<16x8xf32>
    %c0_118 = arith.constant 0 : index
    %c7 = arith.constant 7 : index
    %c0_119 = arith.constant 0 : index
    %c0_120 = arith.constant 0 : index
    %149 = vector.load %arg3[%c0_118, %c7, %c0_119, %c0_120] : memref<1x12x32x8xbf16, #tpu.memory_space<vmem>>, vector<1x1x32x8xbf16>
    %150 = vector.shape_cast %149 : vector<1x1x32x8xbf16> to vector<32x8xbf16>
    %cst_121 = arith.constant dense<0.000000e+00> : vector<16x8xf32>
    %151 = tpu.matmul %4, %150, %cst_121 {dimension_numbers = #tpu.dot_dimension_numbers<[1], [0], [0], [1], [0, 0, 1, 1], [], []>} : vector<16x32xbf16>, vector<32x8xbf16>, vector<16x8xf32> -> vector<16x8xf32>
    %c0_122 = arith.constant 0 : index
    %c7_123 = arith.constant 7 : index
    %c0_124 = arith.constant 0 : index
    %c0_125 = arith.constant 0 : index
    %152 = vector.load %arg4[%c0_122, %c7_123, %c0_124, %c0_125] : memref<1x12x1x8xf32, #tpu.memory_space<vmem>>, vector<1x1x1x8xf32>
    %153 = vector.shape_cast %152 : vector<1x1x1x8xf32> to vector<1x8xf32>
    %154 = vector.broadcast %153 : vector<1x8xf32> to vector<16x8xf32>
    %155 = arith.addf %151, %154 : vector<16x8xf32>
    %c0_126 = arith.constant 0 : index
    %c11 = arith.constant 11 : index
    %c0_127 = arith.constant 0 : index
    %c0_128 = arith.constant 0 : index
    %156 = vector.load %arg3[%c0_126, %c11, %c0_127, %c0_128] : memref<1x12x32x8xbf16, #tpu.memory_space<vmem>>, vector<1x1x32x8xbf16>
    %157 = vector.shape_cast %156 : vector<1x1x32x8xbf16> to vector<32x8xbf16>
    %cst_129 = arith.constant dense<0.000000e+00> : vector<16x8xf32>
    %158 = tpu.matmul %4, %157, %cst_129 {dimension_numbers = #tpu.dot_dimension_numbers<[1], [0], [0], [1], [0, 0, 1, 1], [], []>} : vector<16x32xbf16>, vector<32x8xbf16>, vector<16x8xf32> -> vector<16x8xf32>
    %c0_130 = arith.constant 0 : index
    %c11_131 = arith.constant 11 : index
    %c0_132 = arith.constant 0 : index
    %c0_133 = arith.constant 0 : index
    %159 = vector.load %arg4[%c0_130, %c11_131, %c0_132, %c0_133] : memref<1x12x1x8xf32, #tpu.memory_space<vmem>>, vector<1x1x1x8xf32>
    %160 = vector.shape_cast %159 : vector<1x1x1x8xf32> to vector<1x8xf32>
    %161 = vector.broadcast %160 : vector<1x8xf32> to vector<16x8xf32>
    %162 = arith.addf %158, %161 : vector<16x8xf32>
    %163 = arith.truncf %148 : vector<16x8xf32> to vector<16x8xbf16>
    %164 = arith.truncf %155 : vector<16x8xf32> to vector<16x8xbf16>
    %cst_134 = arith.constant dense<0.000000e+00> : vector<16x16xf32>
    %165 = tpu.matmul %163, %164, %cst_134 {dimension_numbers = #tpu.dot_dimension_numbers<[1], [1], [0], [0], [0, 0, 1, 0], [], []>} : vector<16x8xbf16>, vector<16x8xbf16>, vector<16x16xf32> -> vector<16x16xf32>
    %cst_135 = arith.constant 0.353553385 : f32
    %166 = vector.broadcast %cst_135 : f32 to vector<16x16xf32>
    %167 = arith.mulf %165, %166 : vector<16x16xf32>
    %cst_136 = arith.constant -1.000000e+09 : f32
    %168 = vector.broadcast %cst_136 : f32 to vector<16x16xf32>
    %169 = arith.select %7, %167, %168 : vector<16x16xi1>, vector<16x16xf32>
    %cst_137 = arith.constant dense<0xFF800000> : vector<16xf32>
    %170 = vector.multi_reduction <maximumf>, %169, %cst_137 [1] : vector<16x16xf32> to vector<16xf32>
    %171 = vector.shape_cast %170 : vector<16xf32> to vector<16x1xf32>
    %172 = vector.broadcast %171 : vector<16x1xf32> to vector<16x16xf32>
    %173 = arith.subf %169, %172 : vector<16x16xf32>
    %174 = math.exp %173 : vector<16x16xf32>
    %cst_138 = arith.constant dense<0.000000e+00> : vector<16xf32>
    %175 = vector.multi_reduction <add>, %174, %cst_138 [1] : vector<16x16xf32> to vector<16xf32>
    %176 = vector.shape_cast %175 : vector<16xf32> to vector<16x1xf32>
    %177 = vector.broadcast %176 : vector<16x1xf32> to vector<16x16xf32>
    %178 = arith.divf %174, %177 : vector<16x16xf32>
    %179 = arith.truncf %178 : vector<16x16xf32> to vector<16x16xbf16>
    %180 = arith.truncf %162 : vector<16x8xf32> to vector<16x8xbf16>
    %cst_139 = arith.constant dense<0.000000e+00> : vector<16x8xf32>
    %181 = tpu.matmul %179, %180, %cst_139 {dimension_numbers = #tpu.dot_dimension_numbers<[1], [0], [0], [1], [0, 0, 1, 1], [], []>} : vector<16x16xbf16>, vector<16x8xbf16>, vector<16x8xf32> -> vector<16x8xf32>
    %182 = arith.truncf %181 : vector<16x8xf32> to vector<16x8xbf16>
    %c0_140 = arith.constant 0 : index
    %c3_141 = arith.constant 3 : index
    %c0_142 = arith.constant 0 : index
    %c0_143 = arith.constant 0 : index
    %183 = vector.load %arg5[%c0_140, %c3_141, %c0_142, %c0_143] : memref<1x4x8x32xbf16, #tpu.memory_space<vmem>>, vector<1x1x8x32xbf16>
    %184 = vector.shape_cast %183 : vector<1x1x8x32xbf16> to vector<8x32xbf16>
    %cst_144 = arith.constant dense<0.000000e+00> : vector<16x32xf32>
    %185 = tpu.matmul %182, %184, %cst_144 {dimension_numbers = #tpu.dot_dimension_numbers<[1], [0], [0], [1], [0, 0, 1, 1], [], []>} : vector<16x8xbf16>, vector<8x32xbf16>, vector<16x32xf32> -> vector<16x32xf32>
    %186 = arith.addf %141, %185 : vector<16x32xf32>
    %c0_145 = arith.constant 0 : index
    %c0_146 = arith.constant 0 : index
    %c0_147 = arith.constant 0 : index
    %187 = vector.load %arg6[%c0_145, %c0_146, %c0_147] : memref<1x1x32xf32, #tpu.memory_space<vmem>>, vector<1x1x32xf32>
    %188 = vector.shape_cast %187 : vector<1x1x32xf32> to vector<1x32xf32>
    %189 = vector.broadcast %188 : vector<1x32xf32> to vector<16x32xf32>
    %190 = arith.addf %186, %189 : vector<16x32xf32>
    %191 = arith.addf %3, %190 : vector<16x32xf32>
    %c0_148 = arith.constant 0 : index
    %c0_149 = arith.constant 0 : index
    %c0_150 = arith.constant 0 : index
    %192 = vector.load %arg7[%c0_148, %c0_149, %c0_150] : memref<1x1x32xf32, #tpu.memory_space<vmem>>, vector<1x1x32xf32>
    %193 = vector.shape_cast %192 : vector<1x1x32xf32> to vector<1x32xf32>
    %c0_151 = arith.constant 0 : index
    %c0_152 = arith.constant 0 : index
    %c0_153 = arith.constant 0 : index
    %194 = vector.load %arg8[%c0_151, %c0_152, %c0_153] : memref<1x1x32xf32, #tpu.memory_space<vmem>>, vector<1x1x32xf32>
    %195 = vector.shape_cast %194 : vector<1x1x32xf32> to vector<1x32xf32>
    %cst_154 = arith.constant dense<0.000000e+00> : vector<16xf32>
    %196 = vector.multi_reduction <add>, %191, %cst_154 [1] : vector<16x32xf32> to vector<16xf32>
    %197 = vector.shape_cast %196 : vector<16xf32> to vector<16x1xf32>
    %cst_155 = arith.constant 3.200000e+01 : f32
    %198 = vector.broadcast %cst_155 : f32 to vector<16x1xf32>
    %199 = arith.divf %197, %198 : vector<16x1xf32>
    %200 = vector.broadcast %199 : vector<16x1xf32> to vector<16x32xf32>
    %201 = arith.subf %191, %200 : vector<16x32xf32>
    %202 = arith.mulf %201, %201 : vector<16x32xf32>
    %cst_156 = arith.constant dense<0.000000e+00> : vector<16xf32>
    %203 = vector.multi_reduction <add>, %202, %cst_156 [1] : vector<16x32xf32> to vector<16xf32>
    %204 = vector.shape_cast %203 : vector<16xf32> to vector<16x1xf32>
    %cst_157 = arith.constant 3.200000e+01 : f32
    %205 = vector.broadcast %cst_157 : f32 to vector<16x1xf32>
    %206 = arith.divf %204, %205 : vector<16x1xf32>
    %cst_158 = arith.constant 9.99999974E-6 : f32
    %207 = vector.broadcast %cst_158 : f32 to vector<16x1xf32>
    %208 = arith.addf %206, %207 : vector<16x1xf32>
    %209 = math.rsqrt %208 : vector<16x1xf32>
    %210 = vector.broadcast %209 : vector<16x1xf32> to vector<16x32xf32>
    %211 = arith.mulf %201, %210 : vector<16x32xf32>
    %212 = vector.broadcast %193 : vector<1x32xf32> to vector<16x32xf32>
    %213 = arith.mulf %211, %212 : vector<16x32xf32>
    %214 = vector.broadcast %195 : vector<1x32xf32> to vector<16x32xf32>
    %215 = arith.addf %213, %214 : vector<16x32xf32>
    %216 = arith.truncf %215 : vector<16x32xf32> to vector<16x32xbf16>
    %c0_159 = arith.constant 0 : index
    %c0_160 = arith.constant 0 : index
    %c0_161 = arith.constant 0 : index
    %217 = vector.load %arg9[%c0_159, %c0_160, %c0_161] : memref<1x32x64xbf16, #tpu.memory_space<vmem>>, vector<1x32x64xbf16>
    %218 = vector.shape_cast %217 : vector<1x32x64xbf16> to vector<32x64xbf16>
    %cst_162 = arith.constant dense<0.000000e+00> : vector<16x64xf32>
    %219 = tpu.matmul %216, %218, %cst_162 {dimension_numbers = #tpu.dot_dimension_numbers<[1], [0], [0], [1], [0, 0, 1, 1], [], []>} : vector<16x32xbf16>, vector<32x64xbf16>, vector<16x64xf32> -> vector<16x64xf32>
    %c0_163 = arith.constant 0 : index
    %c0_164 = arith.constant 0 : index
    %c0_165 = arith.constant 0 : index
    %220 = vector.load %arg10[%c0_163, %c0_164, %c0_165] : memref<1x1x64xf32, #tpu.memory_space<vmem>>, vector<1x1x64xf32>
    %221 = vector.shape_cast %220 : vector<1x1x64xf32> to vector<1x64xf32>
    %222 = vector.broadcast %221 : vector<1x64xf32> to vector<16x64xf32>
    %223 = arith.addf %219, %222 : vector<16x64xf32>
    %cst_166 = arith.constant 0.000000e+00 : f32
    %224 = vector.broadcast %cst_166 : f32 to vector<16x64xf32>
    %225 = arith.maximumf %223, %224 : vector<16x64xf32>
    %226 = arith.truncf %225 : vector<16x64xf32> to vector<16x64xbf16>
    %c0_167 = arith.constant 0 : index
    %c0_168 = arith.constant 0 : index
    %c0_169 = arith.constant 0 : index
    %227 = vector.load %arg11[%c0_167, %c0_168, %c0_169] : memref<1x64x32xbf16, #tpu.memory_space<vmem>>, vector<1x64x32xbf16>
    %228 = vector.shape_cast %227 : vector<1x64x32xbf16> to vector<64x32xbf16>
    %cst_170 = arith.constant dense<0.000000e+00> : vector<16x32xf32>
    %229 = tpu.matmul %226, %228, %cst_170 {dimension_numbers = #tpu.dot_dimension_numbers<[1], [0], [0], [1], [0, 0, 1, 1], [], []>} : vector<16x64xbf16>, vector<64x32xbf16>, vector<16x32xf32> -> vector<16x32xf32>
    %c0_171 = arith.constant 0 : index
    %c0_172 = arith.constant 0 : index
    %c0_173 = arith.constant 0 : index
    %230 = vector.load %arg12[%c0_171, %c0_172, %c0_173] : memref<1x1x32xf32, #tpu.memory_space<vmem>>, vector<1x1x32xf32>
    %231 = vector.shape_cast %230 : vector<1x1x32xf32> to vector<1x32xf32>
    %232 = vector.broadcast %231 : vector<1x32xf32> to vector<16x32xf32>
    %233 = arith.addf %229, %232 : vector<16x32xf32>
    %234 = arith.addf %215, %233 : vector<16x32xf32>
    %c0_174 = arith.constant 0 : index
    %c0_175 = arith.constant 0 : index
    %c0_176 = arith.constant 0 : index
    %235 = vector.load %arg13[%c0_174, %c0_175, %c0_176] : memref<1x1x32xf32, #tpu.memory_space<vmem>>, vector<1x1x32xf32>
    %236 = vector.shape_cast %235 : vector<1x1x32xf32> to vector<1x32xf32>
    %c0_177 = arith.constant 0 : index
    %c0_178 = arith.constant 0 : index
    %c0_179 = arith.constant 0 : index
    %237 = vector.load %arg14[%c0_177, %c0_178, %c0_179] : memref<1x1x32xf32, #tpu.memory_space<vmem>>, vector<1x1x32xf32>
    %238 = vector.shape_cast %237 : vector<1x1x32xf32> to vector<1x32xf32>
    %cst_180 = arith.constant dense<0.000000e+00> : vector<16xf32>
    %239 = vector.multi_reduction <add>, %234, %cst_180 [1] : vector<16x32xf32> to vector<16xf32>
    %240 = vector.shape_cast %239 : vector<16xf32> to vector<16x1xf32>
    %cst_181 = arith.constant 3.200000e+01 : f32
    %241 = vector.broadcast %cst_181 : f32 to vector<16x1xf32>
    %242 = arith.divf %240, %241 : vector<16x1xf32>
    %243 = vector.broadcast %242 : vector<16x1xf32> to vector<16x32xf32>
    %244 = arith.subf %234, %243 : vector<16x32xf32>
    %245 = arith.mulf %244, %244 : vector<16x32xf32>
    %cst_182 = arith.constant dense<0.000000e+00> : vector<16xf32>
    %246 = vector.multi_reduction <add>, %245, %cst_182 [1] : vector<16x32xf32> to vector<16xf32>
    %247 = vector.shape_cast %246 : vector<16xf32> to vector<16x1xf32>
    %cst_183 = arith.constant 3.200000e+01 : f32
    %248 = vector.broadcast %cst_183 : f32 to vector<16x1xf32>
    %249 = arith.divf %247, %248 : vector<16x1xf32>
    %cst_184 = arith.constant 9.99999974E-6 : f32
    %250 = vector.broadcast %cst_184 : f32 to vector<16x1xf32>
    %251 = arith.addf %249, %250 : vector<16x1xf32>
    %252 = math.rsqrt %251 : vector<16x1xf32>
    %253 = vector.broadcast %252 : vector<16x1xf32> to vector<16x32xf32>
    %254 = arith.mulf %244, %253 : vector<16x32xf32>
    %255 = vector.broadcast %236 : vector<1x32xf32> to vector<16x32xf32>
    %256 = arith.mulf %254, %255 : vector<16x32xf32>
    %257 = vector.broadcast %238 : vector<1x32xf32> to vector<16x32xf32>
    %258 = arith.addf %256, %257 : vector<16x32xf32>
    %c0_185 = arith.constant 0 : index
    %c0_186 = arith.constant 0 : index
    %259 = vector.load %arg16[%c0_185, %c0_186] : memref<16x32xf32, #tpu.memory_space<vmem>>, vector<16x32xf32>
    tpu.vector_store %arg16[%c0_185, %c0_186], %258 {strides = array<i32>} : memref<16x32xf32, #tpu.memory_space<vmem>>, vector<16x32xf32>,
    %c5_i32 = arith.constant 5 : i32
    %260 = arith.cmpi eq, %arg0, %c5_i32 : i32
    %261 = arith.extui %260 : i1 to i32
    %c0_i32_187 = arith.constant 0 : i32
    %262 = arith.cmpi ne, %261, %c0_i32_187 : i32
    scf.if %262 {
      %263 = arith.truncf %258 : vector<16x32xf32> to vector<16x32xbf16>
      %c0_188 = arith.constant 0 : index
      %c0_189 = arith.constant 0 : index
      %264 = vector.load %arg15[%c0_188, %c0_189] : memref<16x32xbf16, #tpu.memory_space<vmem>>, vector<16x32xbf16>
      tpu.vector_store %arg15[%c0_188, %c0_189], %263 {strides = array<i32>} : memref<16x32xbf16, #tpu.memory_space<vmem>>, vector<16x32xbf16>,
    } else {
    }
    return
  }
  func.func @transform_0(%arg0: i32) -> (i32, i32) {
    %c0_i32 = arith.constant 0 : i32
    %c0_i32_0 = arith.constant 0 : i32
    %c0_i32_1 = arith.constant 0 : i32
    return %c0_i32, %c0_i32_0 : i32, i32
  }
  func.func @transform_1(%arg0: i32) -> (i32, i32) {
    %c0_i32 = arith.constant 0 : i32
    %c0_i32_0 = arith.constant 0 : i32
    %c0_i32_1 = arith.constant 0 : i32
    return %c0_i32, %c0_i32_0 : i32, i32
  }
  func.func @transform_2(%arg0: i32) -> (i32, i32, i32, i32) {
    %c0_i32 = arith.constant 0 : i32
    %c0_i32_0 = arith.constant 0 : i32
    %c0_i32_1 = arith.constant 0 : i32
    %c0_i32_2 = arith.constant 0 : i32
    return %arg0, %c0_i32, %c0_i32_0, %c0_i32_1 : i32, i32, i32, i32
  }
  func.func @transform_3(%arg0: i32) -> (i32, i32, i32, i32) {
    %c0_i32 = arith.constant 0 : i32
    %c0_i32_0 = arith.constant 0 : i32
    %c0_i32_1 = arith.constant 0 : i32
    %c0_i32_2 = arith.constant 0 : i32
    return %arg0, %c0_i32, %c0_i32_0, %c0_i32_1 : i32, i32, i32, i32
  }
  func.func @transform_4(%arg0: i32) -> (i32, i32, i32, i32) {
    %c0_i32 = arith.constant 0 : i32
    %c0_i32_0 = arith.constant 0 : i32
    %c0_i32_1 = arith.constant 0 : i32
    %c0_i32_2 = arith.constant 0 : i32
    return %arg0, %c0_i32, %c0_i32_0, %c0_i32_1 : i32, i32, i32, i32
  }
  func.func @transform_5(%arg0: i32) -> (i32, i32, i32) {
    %c0_i32 = arith.constant 0 : i32
    %c0_i32_0 = arith.constant 0 : i32
    %c0_i32_1 = arith.constant 0 : i32
    return %arg0, %c0_i32, %c0_i32_0 : i32, i32, i32
  }
  func.func @transform_6(%arg0: i32) -> (i32, i32, i32) {
    %c0_i32 = arith.constant 0 : i32
    %c0_i32_0 = arith.constant 0 : i32
    %c0_i32_1 = arith.constant 0 : i32
    return %arg0, %c0_i32, %c0_i32_0 : i32, i32, i32
  }
  func.func @transform_7(%arg0: i32) -> (i32, i32, i32) {
    %c0_i32 = arith.constant 0 : i32
    %c0_i32_0 = arith.constant 0 : i32
    %c0_i32_1 = arith.constant 0 : i32
    return %arg0, %c0_i32, %c0_i32_0 : i32, i32, i32
  }
  func.func @transform_8(%arg0: i32) -> (i32, i32, i32) {
    %c0_i32 = arith.constant 0 : i32
    %c0_i32_0 = arith.constant 0 : i32
    %c0_i32_1 = arith.constant 0 : i32
    return %arg0, %c0_i32, %c0_i32_0 : i32, i32, i32
  }
  func.func @transform_9(%arg0: i32) -> (i32, i32, i32) {
    %c0_i32 = arith.constant 0 : i32
    %c0_i32_0 = arith.constant 0 : i32
    %c0_i32_1 = arith.constant 0 : i32
    return %arg0, %c0_i32, %c0_i32_0 : i32, i32, i32
  }
  func.func @transform_10(%arg0: i32) -> (i32, i32, i32) {
    %c0_i32 = arith.constant 0 : i32
    %c0_i32_0 = arith.constant 0 : i32
    %c0_i32_1 = arith.constant 0 : i32
    return %arg0, %c0_i32, %c0_i32_0 : i32, i32, i32
  }
  func.func @transform_11(%arg0: i32) -> (i32, i32, i32) {
    %c0_i32 = arith.constant 0 : i32
    %c0_i32_0 = arith.constant 0 : i32
    %c0_i32_1 = arith.constant 0 : i32
    return %arg0, %c0_i32, %c0_i32_0 : i32, i32, i32
  }
  func.func @transform_12(%arg0: i32) -> (i32, i32, i32) {
    %c0_i32 = arith.constant 0 : i32
    %c0_i32_0 = arith.constant 0 : i32
    %c0_i32_1 = arith.constant 0 : i32
    return %arg0, %c0_i32, %c0_i32_0 : i32, i32, i32
  }
  func.func @transform_13(%arg0: i32) -> (i32, i32, i32) {
    %c0_i32 = arith.constant 0 : i32
    %c0_i32_0 = arith.constant 0 : i32
    %c0_i32_1 = arith.constant 0 : i32
    return %arg0, %c0_i32, %c0_i32_0 : i32, i32, i32
  }
  func.func @transform_14(%arg0: i32) -> (i32, i32) {
    %c0_i32 = arith.constant 0 : i32
    %c0_i32_0 = arith.constant 0 : i32
    %c0_i32_1 = arith.constant 0 : i32
    return %c0_i32, %c0_i32_0 : i32, i32
  }
}

module attributes {stable_mosaic.version = 11 : i64} {
  func.func @_decoder_stack_kernel(%arg0: i32, %arg1: memref<16x64xbf16, #tpu.memory_space<vmem>>, %arg2: memref<16x32xbf16, #tpu.memory_space<vmem>>, %arg3: memref<16x16xf32, #tpu.memory_space<vmem>>, %arg4: memref<16x16xf32, #tpu.memory_space<vmem>>, %arg5: memref<64x32xbf16, #tpu.memory_space<vmem>>, %arg6: memref<1x12x32x8xbf16, #tpu.memory_space<vmem>>, %arg7: memref<1x12x1x8xf32, #tpu.memory_space<vmem>>, %arg8: memref<1x4x8x32xbf16, #tpu.memory_space<vmem>>, %arg9: memref<1x1x32xf32, #tpu.memory_space<vmem>>, %arg10: memref<1x1x32xf32, #tpu.memory_space<vmem>>, %arg11: memref<1x1x32xf32, #tpu.memory_space<vmem>>, %arg12: memref<1x4x32x8xbf16, #tpu.memory_space<vmem>>, %arg13: memref<1x4x1x8xf32, #tpu.memory_space<vmem>>, %arg14: memref<1x8x32x8xbf16, #tpu.memory_space<vmem>>, %arg15: memref<1x8x1x8xf32, #tpu.memory_space<vmem>>, %arg16: memref<1x4x8x32xbf16, #tpu.memory_space<vmem>>, %arg17: memref<1x1x32xf32, #tpu.memory_space<vmem>>, %arg18: memref<1x1x32xf32, #tpu.memory_space<vmem>>, %arg19: memref<1x1x32xf32, #tpu.memory_space<vmem>>, %arg20: memref<1x32x64xbf16, #tpu.memory_space<vmem>>, %arg21: memref<1x1x64xf32, #tpu.memory_space<vmem>>, %arg22: memref<1x64x32xbf16, #tpu.memory_space<vmem>>, %arg23: memref<1x1x32xf32, #tpu.memory_space<vmem>>, %arg24: memref<1x1x32xf32, #tpu.memory_space<vmem>>, %arg25: memref<1x1x32xf32, #tpu.memory_space<vmem>>, %arg26: memref<16x32xbf16, #tpu.memory_space<vmem>>, %arg27: memref<16x32xf32, #tpu.memory_space<vmem>>) attributes {dimension_semantics = [#tpu.dimension_semantics<arbitrary>], iteration_bounds = array<i64: 6>, scalar_prefetch = 0 : i64, scratch_operands = 1 : i64, tpu.core_type = #tpu.core_type<tc>, window_params = [{pipeline_mode = #tpu.pipeline_mode<synchronous>, transform_indices = @transform_0, window_bounds = array<i64: 16, 64>}, {pipeline_mode = #tpu.pipeline_mode<synchronous>, transform_indices = @transform_1, window_bounds = array<i64: 16, 32>}, {pipeline_mode = #tpu.pipeline_mode<synchronous>, transform_indices = @transform_2, window_bounds = array<i64: 16, 16>}, {pipeline_mode = #tpu.pipeline_mode<synchronous>, transform_indices = @transform_3, window_bounds = array<i64: 16, 16>}, {pipeline_mode = #tpu.pipeline_mode<synchronous>, transform_indices = @transform_4, window_bounds = array<i64: 64, 32>}, {transform_indices = @transform_5, window_bounds = array<i64: 1, 12, 32, 8>}, {transform_indices = @transform_6, window_bounds = array<i64: 1, 12, 1, 8>}, {transform_indices = @transform_7, window_bounds = array<i64: 1, 4, 8, 32>}, {transform_indices = @transform_8, window_bounds = array<i64: 1, 1, 32>}, {transform_indices = @transform_9, window_bounds = array<i64: 1, 1, 32>}, {transform_indices = @transform_10, window_bounds = array<i64: 1, 1, 32>}, {transform_indices = @transform_11, window_bounds = array<i64: 1, 4, 32, 8>}, {transform_indices = @transform_12, window_bounds = array<i64: 1, 4, 1, 8>}, {transform_indices = @transform_13, window_bounds = array<i64: 1, 8, 32, 8>}, {transform_indices = @transform_14, window_bounds = array<i64: 1, 8, 1, 8>}, {transform_indices = @transform_15, window_bounds = array<i64: 1, 4, 8, 32>}, {transform_indices = @transform_16, window_bounds = array<i64: 1, 1, 32>}, {transform_indices = @transform_17, window_bounds = array<i64: 1, 1, 32>}, {transform_indices = @transform_18, window_bounds = array<i64: 1, 1, 32>}, {transform_indices = @transform_19, window_bounds = array<i64: 1, 32, 64>}, {transform_indices = @transform_20, window_bounds = array<i64: 1, 1, 64>}, {transform_indices = @transform_21, window_bounds = array<i64: 1, 64, 32>}, {transform_indices = @transform_22, window_bounds = array<i64: 1, 1, 32>}, {transform_indices = @transform_23, window_bounds = array<i64: 1, 1, 32>}, {transform_indices = @transform_24, window_bounds = array<i64: 1, 1, 32>}, {pipeline_mode = #tpu.pipeline_mode<synchronous>, transform_indices = @transform_25, window_bounds = array<i64: 16, 32>}]} {
    %c0_i32 = arith.constant 0 : i32
    %0 = arith.cmpi eq, %arg0, %c0_i32 : i32
    %1 = arith.extui %0 : i1 to i32
    %c0_i32_0 = arith.constant 0 : i32
    %2 = arith.cmpi ne, %1, %c0_i32_0 : i32
    scf.if %2 {
      %c0_359 = arith.constant 0 : index
      %c0_360 = arith.constant 0 : index
      %476 = vector.load %arg1[%c0_359, %c0_360] : memref<16x64xbf16, #tpu.memory_space<vmem>>, vector<16x64xbf16>
      %c0_361 = arith.constant 0 : index
      %c0_362 = arith.constant 0 : index
      %477 = vector.load %arg5[%c0_361, %c0_362] : memref<64x32xbf16, #tpu.memory_space<vmem>>, vector<64x32xbf16>
      %cst_363 = arith.constant dense<0.000000e+00> : vector<16x32xf32>
      %478 = tpu.matmul %476, %477, %cst_363 {dimension_numbers = #tpu.dot_dimension_numbers<[1], [0], [0], [1], [0, 0, 1, 1], [], []>} : vector<16x64xbf16>, vector<64x32xbf16>, vector<16x32xf32> -> vector<16x32xf32>
      %c0_364 = arith.constant 0 : index
      %c0_365 = arith.constant 0 : index
      %479 = vector.load %arg27[%c0_364, %c0_365] : memref<16x32xf32, #tpu.memory_space<vmem>>, vector<16x32xf32>
      tpu.vector_store %arg27[%c0_364, %c0_365], %478 {strides = array<i32>} : memref<16x32xf32, #tpu.memory_space<vmem>>, vector<16x32xf32>,
    } else {
    }
    %c0 = arith.constant 0 : index
    %c0_1 = arith.constant 0 : index
    %3 = vector.load %arg27[%c0, %c0_1] : memref<16x32xf32, #tpu.memory_space<vmem>>, vector<16x32xf32>
    %c0_2 = arith.constant 0 : index
    %c0_3 = arith.constant 0 : index
    %4 = vector.load %arg2[%c0_2, %c0_3] : memref<16x32xbf16, #tpu.memory_space<vmem>>, vector<16x32xbf16>
    %c0_4 = arith.constant 0 : index
    %c0_5 = arith.constant 0 : index
    %5 = vector.load %arg3[%c0_4, %c0_5] : memref<16x16xf32, #tpu.memory_space<vmem>>, vector<16x16xf32>
    %cst = arith.constant 0.000000e+00 : f32
    %6 = vector.broadcast %cst : f32 to vector<16x16xf32>
    %7 = arith.cmpf ogt, %5, %6 : vector<16x16xf32>
    %c0_6 = arith.constant 0 : index
    %c0_7 = arith.constant 0 : index
    %8 = vector.load %arg4[%c0_6, %c0_7] : memref<16x16xf32, #tpu.memory_space<vmem>>, vector<16x16xf32>
    %cst_8 = arith.constant 0.000000e+00 : f32
    %9 = vector.broadcast %cst_8 : f32 to vector<16x16xf32>
    %10 = arith.cmpf ogt, %8, %9 : vector<16x16xf32>
    %11 = arith.truncf %3 : vector<16x32xf32> to vector<16x32xbf16>
    %c0_9 = arith.constant 0 : index
    %c0_10 = arith.constant 0 : index
    %c0_11 = arith.constant 0 : index
    %c0_12 = arith.constant 0 : index
    %12 = vector.load %arg6[%c0_9, %c0_10, %c0_11, %c0_12] : memref<1x12x32x8xbf16, #tpu.memory_space<vmem>>, vector<1x1x32x8xbf16>
    %13 = vector.shape_cast %12 : vector<1x1x32x8xbf16> to vector<32x8xbf16>
    %cst_13 = arith.constant dense<0.000000e+00> : vector<16x8xf32>
    %14 = tpu.matmul %11, %13, %cst_13 {dimension_numbers = #tpu.dot_dimension_numbers<[1], [0], [0], [1], [0, 0, 1, 1], [], []>} : vector<16x32xbf16>, vector<32x8xbf16>, vector<16x8xf32> -> vector<16x8xf32>
    %c0_14 = arith.constant 0 : index
    %c0_15 = arith.constant 0 : index
    %c0_16 = arith.constant 0 : index
    %c0_17 = arith.constant 0 : index
    %15 = vector.load %arg7[%c0_14, %c0_15, %c0_16, %c0_17] : memref<1x12x1x8xf32, #tpu.memory_space<vmem>>, vector<1x1x1x8xf32>
    %16 = vector.shape_cast %15 : vector<1x1x1x8xf32> to vector<1x8xf32>
    %17 = vector.broadcast %16 : vector<1x8xf32> to vector<16x8xf32>
    %18 = arith.addf %14, %17 : vector<16x8xf32>
    %c0_18 = arith.constant 0 : index
    %c4 = arith.constant 4 : index
    %c0_19 = arith.constant 0 : index
    %c0_20 = arith.constant 0 : index
    %19 = vector.load %arg6[%c0_18, %c4, %c0_19, %c0_20] : memref<1x12x32x8xbf16, #tpu.memory_space<vmem>>, vector<1x1x32x8xbf16>
    %20 = vector.shape_cast %19 : vector<1x1x32x8xbf16> to vector<32x8xbf16>
    %cst_21 = arith.constant dense<0.000000e+00> : vector<16x8xf32>
    %21 = tpu.matmul %11, %20, %cst_21 {dimension_numbers = #tpu.dot_dimension_numbers<[1], [0], [0], [1], [0, 0, 1, 1], [], []>} : vector<16x32xbf16>, vector<32x8xbf16>, vector<16x8xf32> -> vector<16x8xf32>
    %c0_22 = arith.constant 0 : index
    %c4_23 = arith.constant 4 : index
    %c0_24 = arith.constant 0 : index
    %c0_25 = arith.constant 0 : index
    %22 = vector.load %arg7[%c0_22, %c4_23, %c0_24, %c0_25] : memref<1x12x1x8xf32, #tpu.memory_space<vmem>>, vector<1x1x1x8xf32>
    %23 = vector.shape_cast %22 : vector<1x1x1x8xf32> to vector<1x8xf32>
    %24 = vector.broadcast %23 : vector<1x8xf32> to vector<16x8xf32>
    %25 = arith.addf %21, %24 : vector<16x8xf32>
    %c0_26 = arith.constant 0 : index
    %c8 = arith.constant 8 : index
    %c0_27 = arith.constant 0 : index
    %c0_28 = arith.constant 0 : index
    %26 = vector.load %arg6[%c0_26, %c8, %c0_27, %c0_28] : memref<1x12x32x8xbf16, #tpu.memory_space<vmem>>, vector<1x1x32x8xbf16>
    %27 = vector.shape_cast %26 : vector<1x1x32x8xbf16> to vector<32x8xbf16>
    %cst_29 = arith.constant dense<0.000000e+00> : vector<16x8xf32>
    %28 = tpu.matmul %11, %27, %cst_29 {dimension_numbers = #tpu.dot_dimension_numbers<[1], [0], [0], [1], [0, 0, 1, 1], [], []>} : vector<16x32xbf16>, vector<32x8xbf16>, vector<16x8xf32> -> vector<16x8xf32>
    %c0_30 = arith.constant 0 : index
    %c8_31 = arith.constant 8 : index
    %c0_32 = arith.constant 0 : index
    %c0_33 = arith.constant 0 : index
    %29 = vector.load %arg7[%c0_30, %c8_31, %c0_32, %c0_33] : memref<1x12x1x8xf32, #tpu.memory_space<vmem>>, vector<1x1x1x8xf32>
    %30 = vector.shape_cast %29 : vector<1x1x1x8xf32> to vector<1x8xf32>
    %31 = vector.broadcast %30 : vector<1x8xf32> to vector<16x8xf32>
    %32 = arith.addf %28, %31 : vector<16x8xf32>
    %33 = arith.truncf %18 : vector<16x8xf32> to vector<16x8xbf16>
    %34 = arith.truncf %25 : vector<16x8xf32> to vector<16x8xbf16>
    %cst_34 = arith.constant dense<0.000000e+00> : vector<16x16xf32>
    %35 = tpu.matmul %33, %34, %cst_34 {dimension_numbers = #tpu.dot_dimension_numbers<[1], [1], [0], [0], [0, 0, 1, 0], [], []>} : vector<16x8xbf16>, vector<16x8xbf16>, vector<16x16xf32> -> vector<16x16xf32>
    %cst_35 = arith.constant 0.353553385 : f32
    %36 = vector.broadcast %cst_35 : f32 to vector<16x16xf32>
    %37 = arith.mulf %35, %36 : vector<16x16xf32>
    %cst_36 = arith.constant -1.000000e+09 : f32
    %38 = vector.broadcast %cst_36 : f32 to vector<16x16xf32>
    %39 = arith.select %7, %37, %38 : vector<16x16xi1>, vector<16x16xf32>
    %cst_37 = arith.constant dense<0xFF800000> : vector<16xf32>
    %40 = vector.multi_reduction <maximumf>, %39, %cst_37 [1] : vector<16x16xf32> to vector<16xf32>
    %41 = vector.shape_cast %40 : vector<16xf32> to vector<16x1xf32>
    %42 = vector.broadcast %41 : vector<16x1xf32> to vector<16x16xf32>
    %43 = arith.subf %39, %42 : vector<16x16xf32>
    %44 = math.exp %43 : vector<16x16xf32>
    %cst_38 = arith.constant dense<0.000000e+00> : vector<16xf32>
    %45 = vector.multi_reduction <add>, %44, %cst_38 [1] : vector<16x16xf32> to vector<16xf32>
    %46 = vector.shape_cast %45 : vector<16xf32> to vector<16x1xf32>
    %47 = vector.broadcast %46 : vector<16x1xf32> to vector<16x16xf32>
    %48 = arith.divf %44, %47 : vector<16x16xf32>
    %49 = arith.truncf %48 : vector<16x16xf32> to vector<16x16xbf16>
    %50 = arith.truncf %32 : vector<16x8xf32> to vector<16x8xbf16>
    %cst_39 = arith.constant dense<0.000000e+00> : vector<16x8xf32>
    %51 = tpu.matmul %49, %50, %cst_39 {dimension_numbers = #tpu.dot_dimension_numbers<[1], [0], [0], [1], [0, 0, 1, 1], [], []>} : vector<16x16xbf16>, vector<16x8xbf16>, vector<16x8xf32> -> vector<16x8xf32>
    %52 = arith.truncf %51 : vector<16x8xf32> to vector<16x8xbf16>
    %c0_40 = arith.constant 0 : index
    %c0_41 = arith.constant 0 : index
    %c0_42 = arith.constant 0 : index
    %c0_43 = arith.constant 0 : index
    %53 = vector.load %arg8[%c0_40, %c0_41, %c0_42, %c0_43] : memref<1x4x8x32xbf16, #tpu.memory_space<vmem>>, vector<1x1x8x32xbf16>
    %54 = vector.shape_cast %53 : vector<1x1x8x32xbf16> to vector<8x32xbf16>
    %cst_44 = arith.constant dense<0.000000e+00> : vector<16x32xf32>
    %55 = tpu.matmul %52, %54, %cst_44 {dimension_numbers = #tpu.dot_dimension_numbers<[1], [0], [0], [1], [0, 0, 1, 1], [], []>} : vector<16x8xbf16>, vector<8x32xbf16>, vector<16x32xf32> -> vector<16x32xf32>
    %c0_45 = arith.constant 0 : index
    %c1 = arith.constant 1 : index
    %c0_46 = arith.constant 0 : index
    %c0_47 = arith.constant 0 : index
    %56 = vector.load %arg6[%c0_45, %c1, %c0_46, %c0_47] : memref<1x12x32x8xbf16, #tpu.memory_space<vmem>>, vector<1x1x32x8xbf16>
    %57 = vector.shape_cast %56 : vector<1x1x32x8xbf16> to vector<32x8xbf16>
    %cst_48 = arith.constant dense<0.000000e+00> : vector<16x8xf32>
    %58 = tpu.matmul %11, %57, %cst_48 {dimension_numbers = #tpu.dot_dimension_numbers<[1], [0], [0], [1], [0, 0, 1, 1], [], []>} : vector<16x32xbf16>, vector<32x8xbf16>, vector<16x8xf32> -> vector<16x8xf32>
    %c0_49 = arith.constant 0 : index
    %c1_50 = arith.constant 1 : index
    %c0_51 = arith.constant 0 : index
    %c0_52 = arith.constant 0 : index
    %59 = vector.load %arg7[%c0_49, %c1_50, %c0_51, %c0_52] : memref<1x12x1x8xf32, #tpu.memory_space<vmem>>, vector<1x1x1x8xf32>
    %60 = vector.shape_cast %59 : vector<1x1x1x8xf32> to vector<1x8xf32>
    %61 = vector.broadcast %60 : vector<1x8xf32> to vector<16x8xf32>
    %62 = arith.addf %58, %61 : vector<16x8xf32>
    %c0_53 = arith.constant 0 : index
    %c5 = arith.constant 5 : index
    %c0_54 = arith.constant 0 : index
    %c0_55 = arith.constant 0 : index
    %63 = vector.load %arg6[%c0_53, %c5, %c0_54, %c0_55] : memref<1x12x32x8xbf16, #tpu.memory_space<vmem>>, vector<1x1x32x8xbf16>
    %64 = vector.shape_cast %63 : vector<1x1x32x8xbf16> to vector<32x8xbf16>
    %cst_56 = arith.constant dense<0.000000e+00> : vector<16x8xf32>
    %65 = tpu.matmul %11, %64, %cst_56 {dimension_numbers = #tpu.dot_dimension_numbers<[1], [0], [0], [1], [0, 0, 1, 1], [], []>} : vector<16x32xbf16>, vector<32x8xbf16>, vector<16x8xf32> -> vector<16x8xf32>
    %c0_57 = arith.constant 0 : index
    %c5_58 = arith.constant 5 : index
    %c0_59 = arith.constant 0 : index
    %c0_60 = arith.constant 0 : index
    %66 = vector.load %arg7[%c0_57, %c5_58, %c0_59, %c0_60] : memref<1x12x1x8xf32, #tpu.memory_space<vmem>>, vector<1x1x1x8xf32>
    %67 = vector.shape_cast %66 : vector<1x1x1x8xf32> to vector<1x8xf32>
    %68 = vector.broadcast %67 : vector<1x8xf32> to vector<16x8xf32>
    %69 = arith.addf %65, %68 : vector<16x8xf32>
    %c0_61 = arith.constant 0 : index
    %c9 = arith.constant 9 : index
    %c0_62 = arith.constant 0 : index
    %c0_63 = arith.constant 0 : index
    %70 = vector.load %arg6[%c0_61, %c9, %c0_62, %c0_63] : memref<1x12x32x8xbf16, #tpu.memory_space<vmem>>, vector<1x1x32x8xbf16>
    %71 = vector.shape_cast %70 : vector<1x1x32x8xbf16> to vector<32x8xbf16>
    %cst_64 = arith.constant dense<0.000000e+00> : vector<16x8xf32>
    %72 = tpu.matmul %11, %71, %cst_64 {dimension_numbers = #tpu.dot_dimension_numbers<[1], [0], [0], [1], [0, 0, 1, 1], [], []>} : vector<16x32xbf16>, vector<32x8xbf16>, vector<16x8xf32> -> vector<16x8xf32>
    %c0_65 = arith.constant 0 : index
    %c9_66 = arith.constant 9 : index
    %c0_67 = arith.constant 0 : index
    %c0_68 = arith.constant 0 : index
    %73 = vector.load %arg7[%c0_65, %c9_66, %c0_67, %c0_68] : memref<1x12x1x8xf32, #tpu.memory_space<vmem>>, vector<1x1x1x8xf32>
    %74 = vector.shape_cast %73 : vector<1x1x1x8xf32> to vector<1x8xf32>
    %75 = vector.broadcast %74 : vector<1x8xf32> to vector<16x8xf32>
    %76 = arith.addf %72, %75 : vector<16x8xf32>
    %77 = arith.truncf %62 : vector<16x8xf32> to vector<16x8xbf16>
    %78 = arith.truncf %69 : vector<16x8xf32> to vector<16x8xbf16>
    %cst_69 = arith.constant dense<0.000000e+00> : vector<16x16xf32>
    %79 = tpu.matmul %77, %78, %cst_69 {dimension_numbers = #tpu.dot_dimension_numbers<[1], [1], [0], [0], [0, 0, 1, 0], [], []>} : vector<16x8xbf16>, vector<16x8xbf16>, vector<16x16xf32> -> vector<16x16xf32>
    %cst_70 = arith.constant 0.353553385 : f32
    %80 = vector.broadcast %cst_70 : f32 to vector<16x16xf32>
    %81 = arith.mulf %79, %80 : vector<16x16xf32>
    %cst_71 = arith.constant -1.000000e+09 : f32
    %82 = vector.broadcast %cst_71 : f32 to vector<16x16xf32>
    %83 = arith.select %7, %81, %82 : vector<16x16xi1>, vector<16x16xf32>
    %cst_72 = arith.constant dense<0xFF800000> : vector<16xf32>
    %84 = vector.multi_reduction <maximumf>, %83, %cst_72 [1] : vector<16x16xf32> to vector<16xf32>
    %85 = vector.shape_cast %84 : vector<16xf32> to vector<16x1xf32>
    %86 = vector.broadcast %85 : vector<16x1xf32> to vector<16x16xf32>
    %87 = arith.subf %83, %86 : vector<16x16xf32>
    %88 = math.exp %87 : vector<16x16xf32>
    %cst_73 = arith.constant dense<0.000000e+00> : vector<16xf32>
    %89 = vector.multi_reduction <add>, %88, %cst_73 [1] : vector<16x16xf32> to vector<16xf32>
    %90 = vector.shape_cast %89 : vector<16xf32> to vector<16x1xf32>
    %91 = vector.broadcast %90 : vector<16x1xf32> to vector<16x16xf32>
    %92 = arith.divf %88, %91 : vector<16x16xf32>
    %93 = arith.truncf %92 : vector<16x16xf32> to vector<16x16xbf16>
    %94 = arith.truncf %76 : vector<16x8xf32> to vector<16x8xbf16>
    %cst_74 = arith.constant dense<0.000000e+00> : vector<16x8xf32>
    %95 = tpu.matmul %93, %94, %cst_74 {dimension_numbers = #tpu.dot_dimension_numbers<[1], [0], [0], [1], [0, 0, 1, 1], [], []>} : vector<16x16xbf16>, vector<16x8xbf16>, vector<16x8xf32> -> vector<16x8xf32>
    %96 = arith.truncf %95 : vector<16x8xf32> to vector<16x8xbf16>
    %c0_75 = arith.constant 0 : index
    %c1_76 = arith.constant 1 : index
    %c0_77 = arith.constant 0 : index
    %c0_78 = arith.constant 0 : index
    %97 = vector.load %arg8[%c0_75, %c1_76, %c0_77, %c0_78] : memref<1x4x8x32xbf16, #tpu.memory_space<vmem>>, vector<1x1x8x32xbf16>
    %98 = vector.shape_cast %97 : vector<1x1x8x32xbf16> to vector<8x32xbf16>
    %cst_79 = arith.constant dense<0.000000e+00> : vector<16x32xf32>
    %99 = tpu.matmul %96, %98, %cst_79 {dimension_numbers = #tpu.dot_dimension_numbers<[1], [0], [0], [1], [0, 0, 1, 1], [], []>} : vector<16x8xbf16>, vector<8x32xbf16>, vector<16x32xf32> -> vector<16x32xf32>
    %100 = arith.addf %55, %99 : vector<16x32xf32>
    %c0_80 = arith.constant 0 : index
    %c2 = arith.constant 2 : index
    %c0_81 = arith.constant 0 : index
    %c0_82 = arith.constant 0 : index
    %101 = vector.load %arg6[%c0_80, %c2, %c0_81, %c0_82] : memref<1x12x32x8xbf16, #tpu.memory_space<vmem>>, vector<1x1x32x8xbf16>
    %102 = vector.shape_cast %101 : vector<1x1x32x8xbf16> to vector<32x8xbf16>
    %cst_83 = arith.constant dense<0.000000e+00> : vector<16x8xf32>
    %103 = tpu.matmul %11, %102, %cst_83 {dimension_numbers = #tpu.dot_dimension_numbers<[1], [0], [0], [1], [0, 0, 1, 1], [], []>} : vector<16x32xbf16>, vector<32x8xbf16>, vector<16x8xf32> -> vector<16x8xf32>
    %c0_84 = arith.constant 0 : index
    %c2_85 = arith.constant 2 : index
    %c0_86 = arith.constant 0 : index
    %c0_87 = arith.constant 0 : index
    %104 = vector.load %arg7[%c0_84, %c2_85, %c0_86, %c0_87] : memref<1x12x1x8xf32, #tpu.memory_space<vmem>>, vector<1x1x1x8xf32>
    %105 = vector.shape_cast %104 : vector<1x1x1x8xf32> to vector<1x8xf32>
    %106 = vector.broadcast %105 : vector<1x8xf32> to vector<16x8xf32>
    %107 = arith.addf %103, %106 : vector<16x8xf32>
    %c0_88 = arith.constant 0 : index
    %c6 = arith.constant 6 : index
    %c0_89 = arith.constant 0 : index
    %c0_90 = arith.constant 0 : index
    %108 = vector.load %arg6[%c0_88, %c6, %c0_89, %c0_90] : memref<1x12x32x8xbf16, #tpu.memory_space<vmem>>, vector<1x1x32x8xbf16>
    %109 = vector.shape_cast %108 : vector<1x1x32x8xbf16> to vector<32x8xbf16>
    %cst_91 = arith.constant dense<0.000000e+00> : vector<16x8xf32>
    %110 = tpu.matmul %11, %109, %cst_91 {dimension_numbers = #tpu.dot_dimension_numbers<[1], [0], [0], [1], [0, 0, 1, 1], [], []>} : vector<16x32xbf16>, vector<32x8xbf16>, vector<16x8xf32> -> vector<16x8xf32>
    %c0_92 = arith.constant 0 : index
    %c6_93 = arith.constant 6 : index
    %c0_94 = arith.constant 0 : index
    %c0_95 = arith.constant 0 : index
    %111 = vector.load %arg7[%c0_92, %c6_93, %c0_94, %c0_95] : memref<1x12x1x8xf32, #tpu.memory_space<vmem>>, vector<1x1x1x8xf32>
    %112 = vector.shape_cast %111 : vector<1x1x1x8xf32> to vector<1x8xf32>
    %113 = vector.broadcast %112 : vector<1x8xf32> to vector<16x8xf32>
    %114 = arith.addf %110, %113 : vector<16x8xf32>
    %c0_96 = arith.constant 0 : index
    %c10 = arith.constant 10 : index
    %c0_97 = arith.constant 0 : index
    %c0_98 = arith.constant 0 : index
    %115 = vector.load %arg6[%c0_96, %c10, %c0_97, %c0_98] : memref<1x12x32x8xbf16, #tpu.memory_space<vmem>>, vector<1x1x32x8xbf16>
    %116 = vector.shape_cast %115 : vector<1x1x32x8xbf16> to vector<32x8xbf16>
    %cst_99 = arith.constant dense<0.000000e+00> : vector<16x8xf32>
    %117 = tpu.matmul %11, %116, %cst_99 {dimension_numbers = #tpu.dot_dimension_numbers<[1], [0], [0], [1], [0, 0, 1, 1], [], []>} : vector<16x32xbf16>, vector<32x8xbf16>, vector<16x8xf32> -> vector<16x8xf32>
    %c0_100 = arith.constant 0 : index
    %c10_101 = arith.constant 10 : index
    %c0_102 = arith.constant 0 : index
    %c0_103 = arith.constant 0 : index
    %118 = vector.load %arg7[%c0_100, %c10_101, %c0_102, %c0_103] : memref<1x12x1x8xf32, #tpu.memory_space<vmem>>, vector<1x1x1x8xf32>
    %119 = vector.shape_cast %118 : vector<1x1x1x8xf32> to vector<1x8xf32>
    %120 = vector.broadcast %119 : vector<1x8xf32> to vector<16x8xf32>
    %121 = arith.addf %117, %120 : vector<16x8xf32>
    %122 = arith.truncf %107 : vector<16x8xf32> to vector<16x8xbf16>
    %123 = arith.truncf %114 : vector<16x8xf32> to vector<16x8xbf16>
    %cst_104 = arith.constant dense<0.000000e+00> : vector<16x16xf32>
    %124 = tpu.matmul %122, %123, %cst_104 {dimension_numbers = #tpu.dot_dimension_numbers<[1], [1], [0], [0], [0, 0, 1, 0], [], []>} : vector<16x8xbf16>, vector<16x8xbf16>, vector<16x16xf32> -> vector<16x16xf32>
    %cst_105 = arith.constant 0.353553385 : f32
    %125 = vector.broadcast %cst_105 : f32 to vector<16x16xf32>
    %126 = arith.mulf %124, %125 : vector<16x16xf32>
    %cst_106 = arith.constant -1.000000e+09 : f32
    %127 = vector.broadcast %cst_106 : f32 to vector<16x16xf32>
    %128 = arith.select %7, %126, %127 : vector<16x16xi1>, vector<16x16xf32>
    %cst_107 = arith.constant dense<0xFF800000> : vector<16xf32>
    %129 = vector.multi_reduction <maximumf>, %128, %cst_107 [1] : vector<16x16xf32> to vector<16xf32>
    %130 = vector.shape_cast %129 : vector<16xf32> to vector<16x1xf32>
    %131 = vector.broadcast %130 : vector<16x1xf32> to vector<16x16xf32>
    %132 = arith.subf %128, %131 : vector<16x16xf32>
    %133 = math.exp %132 : vector<16x16xf32>
    %cst_108 = arith.constant dense<0.000000e+00> : vector<16xf32>
    %134 = vector.multi_reduction <add>, %133, %cst_108 [1] : vector<16x16xf32> to vector<16xf32>
    %135 = vector.shape_cast %134 : vector<16xf32> to vector<16x1xf32>
    %136 = vector.broadcast %135 : vector<16x1xf32> to vector<16x16xf32>
    %137 = arith.divf %133, %136 : vector<16x16xf32>
    %138 = arith.truncf %137 : vector<16x16xf32> to vector<16x16xbf16>
    %139 = arith.truncf %121 : vector<16x8xf32> to vector<16x8xbf16>
    %cst_109 = arith.constant dense<0.000000e+00> : vector<16x8xf32>
    %140 = tpu.matmul %138, %139, %cst_109 {dimension_numbers = #tpu.dot_dimension_numbers<[1], [0], [0], [1], [0, 0, 1, 1], [], []>} : vector<16x16xbf16>, vector<16x8xbf16>, vector<16x8xf32> -> vector<16x8xf32>
    %141 = arith.truncf %140 : vector<16x8xf32> to vector<16x8xbf16>
    %c0_110 = arith.constant 0 : index
    %c2_111 = arith.constant 2 : index
    %c0_112 = arith.constant 0 : index
    %c0_113 = arith.constant 0 : index
    %142 = vector.load %arg8[%c0_110, %c2_111, %c0_112, %c0_113] : memref<1x4x8x32xbf16, #tpu.memory_space<vmem>>, vector<1x1x8x32xbf16>
    %143 = vector.shape_cast %142 : vector<1x1x8x32xbf16> to vector<8x32xbf16>
    %cst_114 = arith.constant dense<0.000000e+00> : vector<16x32xf32>
    %144 = tpu.matmul %141, %143, %cst_114 {dimension_numbers = #tpu.dot_dimension_numbers<[1], [0], [0], [1], [0, 0, 1, 1], [], []>} : vector<16x8xbf16>, vector<8x32xbf16>, vector<16x32xf32> -> vector<16x32xf32>
    %145 = arith.addf %100, %144 : vector<16x32xf32>
    %c0_115 = arith.constant 0 : index
    %c3 = arith.constant 3 : index
    %c0_116 = arith.constant 0 : index
    %c0_117 = arith.constant 0 : index
    %146 = vector.load %arg6[%c0_115, %c3, %c0_116, %c0_117] : memref<1x12x32x8xbf16, #tpu.memory_space<vmem>>, vector<1x1x32x8xbf16>
    %147 = vector.shape_cast %146 : vector<1x1x32x8xbf16> to vector<32x8xbf16>
    %cst_118 = arith.constant dense<0.000000e+00> : vector<16x8xf32>
    %148 = tpu.matmul %11, %147, %cst_118 {dimension_numbers = #tpu.dot_dimension_numbers<[1], [0], [0], [1], [0, 0, 1, 1], [], []>} : vector<16x32xbf16>, vector<32x8xbf16>, vector<16x8xf32> -> vector<16x8xf32>
    %c0_119 = arith.constant 0 : index
    %c3_120 = arith.constant 3 : index
    %c0_121 = arith.constant 0 : index
    %c0_122 = arith.constant 0 : index
    %149 = vector.load %arg7[%c0_119, %c3_120, %c0_121, %c0_122] : memref<1x12x1x8xf32, #tpu.memory_space<vmem>>, vector<1x1x1x8xf32>
    %150 = vector.shape_cast %149 : vector<1x1x1x8xf32> to vector<1x8xf32>
    %151 = vector.broadcast %150 : vector<1x8xf32> to vector<16x8xf32>
    %152 = arith.addf %148, %151 : vector<16x8xf32>
    %c0_123 = arith.constant 0 : index
    %c7 = arith.constant 7 : index
    %c0_124 = arith.constant 0 : index
    %c0_125 = arith.constant 0 : index
    %153 = vector.load %arg6[%c0_123, %c7, %c0_124, %c0_125] : memref<1x12x32x8xbf16, #tpu.memory_space<vmem>>, vector<1x1x32x8xbf16>
    %154 = vector.shape_cast %153 : vector<1x1x32x8xbf16> to vector<32x8xbf16>
    %cst_126 = arith.constant dense<0.000000e+00> : vector<16x8xf32>
    %155 = tpu.matmul %11, %154, %cst_126 {dimension_numbers = #tpu.dot_dimension_numbers<[1], [0], [0], [1], [0, 0, 1, 1], [], []>} : vector<16x32xbf16>, vector<32x8xbf16>, vector<16x8xf32> -> vector<16x8xf32>
    %c0_127 = arith.constant 0 : index
    %c7_128 = arith.constant 7 : index
    %c0_129 = arith.constant 0 : index
    %c0_130 = arith.constant 0 : index
    %156 = vector.load %arg7[%c0_127, %c7_128, %c0_129, %c0_130] : memref<1x12x1x8xf32, #tpu.memory_space<vmem>>, vector<1x1x1x8xf32>
    %157 = vector.shape_cast %156 : vector<1x1x1x8xf32> to vector<1x8xf32>
    %158 = vector.broadcast %157 : vector<1x8xf32> to vector<16x8xf32>
    %159 = arith.addf %155, %158 : vector<16x8xf32>
    %c0_131 = arith.constant 0 : index
    %c11 = arith.constant 11 : index
    %c0_132 = arith.constant 0 : index
    %c0_133 = arith.constant 0 : index
    %160 = vector.load %arg6[%c0_131, %c11, %c0_132, %c0_133] : memref<1x12x32x8xbf16, #tpu.memory_space<vmem>>, vector<1x1x32x8xbf16>
    %161 = vector.shape_cast %160 : vector<1x1x32x8xbf16> to vector<32x8xbf16>
    %cst_134 = arith.constant dense<0.000000e+00> : vector<16x8xf32>
    %162 = tpu.matmul %11, %161, %cst_134 {dimension_numbers = #tpu.dot_dimension_numbers<[1], [0], [0], [1], [0, 0, 1, 1], [], []>} : vector<16x32xbf16>, vector<32x8xbf16>, vector<16x8xf32> -> vector<16x8xf32>
    %c0_135 = arith.constant 0 : index
    %c11_136 = arith.constant 11 : index
    %c0_137 = arith.constant 0 : index
    %c0_138 = arith.constant 0 : index
    %163 = vector.load %arg7[%c0_135, %c11_136, %c0_137, %c0_138] : memref<1x12x1x8xf32, #tpu.memory_space<vmem>>, vector<1x1x1x8xf32>
    %164 = vector.shape_cast %163 : vector<1x1x1x8xf32> to vector<1x8xf32>
    %165 = vector.broadcast %164 : vector<1x8xf32> to vector<16x8xf32>
    %166 = arith.addf %162, %165 : vector<16x8xf32>
    %167 = arith.truncf %152 : vector<16x8xf32> to vector<16x8xbf16>
    %168 = arith.truncf %159 : vector<16x8xf32> to vector<16x8xbf16>
    %cst_139 = arith.constant dense<0.000000e+00> : vector<16x16xf32>
    %169 = tpu.matmul %167, %168, %cst_139 {dimension_numbers = #tpu.dot_dimension_numbers<[1], [1], [0], [0], [0, 0, 1, 0], [], []>} : vector<16x8xbf16>, vector<16x8xbf16>, vector<16x16xf32> -> vector<16x16xf32>
    %cst_140 = arith.constant 0.353553385 : f32
    %170 = vector.broadcast %cst_140 : f32 to vector<16x16xf32>
    %171 = arith.mulf %169, %170 : vector<16x16xf32>
    %cst_141 = arith.constant -1.000000e+09 : f32
    %172 = vector.broadcast %cst_141 : f32 to vector<16x16xf32>
    %173 = arith.select %7, %171, %172 : vector<16x16xi1>, vector<16x16xf32>
    %cst_142 = arith.constant dense<0xFF800000> : vector<16xf32>
    %174 = vector.multi_reduction <maximumf>, %173, %cst_142 [1] : vector<16x16xf32> to vector<16xf32>
    %175 = vector.shape_cast %174 : vector<16xf32> to vector<16x1xf32>
    %176 = vector.broadcast %175 : vector<16x1xf32> to vector<16x16xf32>
    %177 = arith.subf %173, %176 : vector<16x16xf32>
    %178 = math.exp %177 : vector<16x16xf32>
    %cst_143 = arith.constant dense<0.000000e+00> : vector<16xf32>
    %179 = vector.multi_reduction <add>, %178, %cst_143 [1] : vector<16x16xf32> to vector<16xf32>
    %180 = vector.shape_cast %179 : vector<16xf32> to vector<16x1xf32>
    %181 = vector.broadcast %180 : vector<16x1xf32> to vector<16x16xf32>
    %182 = arith.divf %178, %181 : vector<16x16xf32>
    %183 = arith.truncf %182 : vector<16x16xf32> to vector<16x16xbf16>
    %184 = arith.truncf %166 : vector<16x8xf32> to vector<16x8xbf16>
    %cst_144 = arith.constant dense<0.000000e+00> : vector<16x8xf32>
    %185 = tpu.matmul %183, %184, %cst_144 {dimension_numbers = #tpu.dot_dimension_numbers<[1], [0], [0], [1], [0, 0, 1, 1], [], []>} : vector<16x16xbf16>, vector<16x8xbf16>, vector<16x8xf32> -> vector<16x8xf32>
    %186 = arith.truncf %185 : vector<16x8xf32> to vector<16x8xbf16>
    %c0_145 = arith.constant 0 : index
    %c3_146 = arith.constant 3 : index
    %c0_147 = arith.constant 0 : index
    %c0_148 = arith.constant 0 : index
    %187 = vector.load %arg8[%c0_145, %c3_146, %c0_147, %c0_148] : memref<1x4x8x32xbf16, #tpu.memory_space<vmem>>, vector<1x1x8x32xbf16>
    %188 = vector.shape_cast %187 : vector<1x1x8x32xbf16> to vector<8x32xbf16>
    %cst_149 = arith.constant dense<0.000000e+00> : vector<16x32xf32>
    %189 = tpu.matmul %186, %188, %cst_149 {dimension_numbers = #tpu.dot_dimension_numbers<[1], [0], [0], [1], [0, 0, 1, 1], [], []>} : vector<16x8xbf16>, vector<8x32xbf16>, vector<16x32xf32> -> vector<16x32xf32>
    %190 = arith.addf %145, %189 : vector<16x32xf32>
    %c0_150 = arith.constant 0 : index
    %c0_151 = arith.constant 0 : index
    %c0_152 = arith.constant 0 : index
    %191 = vector.load %arg9[%c0_150, %c0_151, %c0_152] : memref<1x1x32xf32, #tpu.memory_space<vmem>>, vector<1x1x32xf32>
    %192 = vector.shape_cast %191 : vector<1x1x32xf32> to vector<1x32xf32>
    %193 = vector.broadcast %192 : vector<1x32xf32> to vector<16x32xf32>
    %194 = arith.addf %190, %193 : vector<16x32xf32>
    %195 = arith.addf %3, %194 : vector<16x32xf32>
    %c0_153 = arith.constant 0 : index
    %c0_154 = arith.constant 0 : index
    %c0_155 = arith.constant 0 : index
    %196 = vector.load %arg10[%c0_153, %c0_154, %c0_155] : memref<1x1x32xf32, #tpu.memory_space<vmem>>, vector<1x1x32xf32>
    %197 = vector.shape_cast %196 : vector<1x1x32xf32> to vector<1x32xf32>
    %c0_156 = arith.constant 0 : index
    %c0_157 = arith.constant 0 : index
    %c0_158 = arith.constant 0 : index
    %198 = vector.load %arg11[%c0_156, %c0_157, %c0_158] : memref<1x1x32xf32, #tpu.memory_space<vmem>>, vector<1x1x32xf32>
    %199 = vector.shape_cast %198 : vector<1x1x32xf32> to vector<1x32xf32>
    %cst_159 = arith.constant dense<0.000000e+00> : vector<16xf32>
    %200 = vector.multi_reduction <add>, %195, %cst_159 [1] : vector<16x32xf32> to vector<16xf32>
    %201 = vector.shape_cast %200 : vector<16xf32> to vector<16x1xf32>
    %cst_160 = arith.constant 3.200000e+01 : f32
    %202 = vector.broadcast %cst_160 : f32 to vector<16x1xf32>
    %203 = arith.divf %201, %202 : vector<16x1xf32>
    %204 = vector.broadcast %203 : vector<16x1xf32> to vector<16x32xf32>
    %205 = arith.subf %195, %204 : vector<16x32xf32>
    %206 = arith.mulf %205, %205 : vector<16x32xf32>
    %cst_161 = arith.constant dense<0.000000e+00> : vector<16xf32>
    %207 = vector.multi_reduction <add>, %206, %cst_161 [1] : vector<16x32xf32> to vector<16xf32>
    %208 = vector.shape_cast %207 : vector<16xf32> to vector<16x1xf32>
    %cst_162 = arith.constant 3.200000e+01 : f32
    %209 = vector.broadcast %cst_162 : f32 to vector<16x1xf32>
    %210 = arith.divf %208, %209 : vector<16x1xf32>
    %cst_163 = arith.constant 9.99999974E-6 : f32
    %211 = vector.broadcast %cst_163 : f32 to vector<16x1xf32>
    %212 = arith.addf %210, %211 : vector<16x1xf32>
    %213 = math.rsqrt %212 : vector<16x1xf32>
    %214 = vector.broadcast %213 : vector<16x1xf32> to vector<16x32xf32>
    %215 = arith.mulf %205, %214 : vector<16x32xf32>
    %216 = vector.broadcast %197 : vector<1x32xf32> to vector<16x32xf32>
    %217 = arith.mulf %215, %216 : vector<16x32xf32>
    %218 = vector.broadcast %199 : vector<1x32xf32> to vector<16x32xf32>
    %219 = arith.addf %217, %218 : vector<16x32xf32>
    %220 = arith.truncf %219 : vector<16x32xf32> to vector<16x32xbf16>
    %c0_164 = arith.constant 0 : index
    %c0_165 = arith.constant 0 : index
    %c0_166 = arith.constant 0 : index
    %c0_167 = arith.constant 0 : index
    %221 = vector.load %arg12[%c0_164, %c0_165, %c0_166, %c0_167] : memref<1x4x32x8xbf16, #tpu.memory_space<vmem>>, vector<1x1x32x8xbf16>
    %222 = vector.shape_cast %221 : vector<1x1x32x8xbf16> to vector<32x8xbf16>
    %cst_168 = arith.constant dense<0.000000e+00> : vector<16x8xf32>
    %223 = tpu.matmul %220, %222, %cst_168 {dimension_numbers = #tpu.dot_dimension_numbers<[1], [0], [0], [1], [0, 0, 1, 1], [], []>} : vector<16x32xbf16>, vector<32x8xbf16>, vector<16x8xf32> -> vector<16x8xf32>
    %c0_169 = arith.constant 0 : index
    %c0_170 = arith.constant 0 : index
    %c0_171 = arith.constant 0 : index
    %c0_172 = arith.constant 0 : index
    %224 = vector.load %arg13[%c0_169, %c0_170, %c0_171, %c0_172] : memref<1x4x1x8xf32, #tpu.memory_space<vmem>>, vector<1x1x1x8xf32>
    %225 = vector.shape_cast %224 : vector<1x1x1x8xf32> to vector<1x8xf32>
    %226 = vector.broadcast %225 : vector<1x8xf32> to vector<16x8xf32>
    %227 = arith.addf %223, %226 : vector<16x8xf32>
    %c0_173 = arith.constant 0 : index
    %c0_174 = arith.constant 0 : index
    %c0_175 = arith.constant 0 : index
    %c0_176 = arith.constant 0 : index
    %228 = vector.load %arg14[%c0_173, %c0_174, %c0_175, %c0_176] : memref<1x8x32x8xbf16, #tpu.memory_space<vmem>>, vector<1x1x32x8xbf16>
    %229 = vector.shape_cast %228 : vector<1x1x32x8xbf16> to vector<32x8xbf16>
    %cst_177 = arith.constant dense<0.000000e+00> : vector<16x8xf32>
    %230 = tpu.matmul %4, %229, %cst_177 {dimension_numbers = #tpu.dot_dimension_numbers<[1], [0], [0], [1], [0, 0, 1, 1], [], []>} : vector<16x32xbf16>, vector<32x8xbf16>, vector<16x8xf32> -> vector<16x8xf32>
    %c0_178 = arith.constant 0 : index
    %c0_179 = arith.constant 0 : index
    %c0_180 = arith.constant 0 : index
    %c0_181 = arith.constant 0 : index
    %231 = vector.load %arg15[%c0_178, %c0_179, %c0_180, %c0_181] : memref<1x8x1x8xf32, #tpu.memory_space<vmem>>, vector<1x1x1x8xf32>
    %232 = vector.shape_cast %231 : vector<1x1x1x8xf32> to vector<1x8xf32>
    %233 = vector.broadcast %232 : vector<1x8xf32> to vector<16x8xf32>
    %234 = arith.addf %230, %233 : vector<16x8xf32>
    %c0_182 = arith.constant 0 : index
    %c4_183 = arith.constant 4 : index
    %c0_184 = arith.constant 0 : index
    %c0_185 = arith.constant 0 : index
    %235 = vector.load %arg14[%c0_182, %c4_183, %c0_184, %c0_185] : memref<1x8x32x8xbf16, #tpu.memory_space<vmem>>, vector<1x1x32x8xbf16>
    %236 = vector.shape_cast %235 : vector<1x1x32x8xbf16> to vector<32x8xbf16>
    %cst_186 = arith.constant dense<0.000000e+00> : vector<16x8xf32>
    %237 = tpu.matmul %4, %236, %cst_186 {dimension_numbers = #tpu.dot_dimension_numbers<[1], [0], [0], [1], [0, 0, 1, 1], [], []>} : vector<16x32xbf16>, vector<32x8xbf16>, vector<16x8xf32> -> vector<16x8xf32>
    %c0_187 = arith.constant 0 : index
    %c4_188 = arith.constant 4 : index
    %c0_189 = arith.constant 0 : index
    %c0_190 = arith.constant 0 : index
    %238 = vector.load %arg15[%c0_187, %c4_188, %c0_189, %c0_190] : memref<1x8x1x8xf32, #tpu.memory_space<vmem>>, vector<1x1x1x8xf32>
    %239 = vector.shape_cast %238 : vector<1x1x1x8xf32> to vector<1x8xf32>
    %240 = vector.broadcast %239 : vector<1x8xf32> to vector<16x8xf32>
    %241 = arith.addf %237, %240 : vector<16x8xf32>
    %242 = arith.truncf %227 : vector<16x8xf32> to vector<16x8xbf16>
    %243 = arith.truncf %234 : vector<16x8xf32> to vector<16x8xbf16>
    %cst_191 = arith.constant dense<0.000000e+00> : vector<16x16xf32>
    %244 = tpu.matmul %242, %243, %cst_191 {dimension_numbers = #tpu.dot_dimension_numbers<[1], [1], [0], [0], [0, 0, 1, 0], [], []>} : vector<16x8xbf16>, vector<16x8xbf16>, vector<16x16xf32> -> vector<16x16xf32>
    %cst_192 = arith.constant 0.353553385 : f32
    %245 = vector.broadcast %cst_192 : f32 to vector<16x16xf32>
    %246 = arith.mulf %244, %245 : vector<16x16xf32>
    %cst_193 = arith.constant -1.000000e+09 : f32
    %247 = vector.broadcast %cst_193 : f32 to vector<16x16xf32>
    %248 = arith.select %10, %246, %247 : vector<16x16xi1>, vector<16x16xf32>
    %cst_194 = arith.constant dense<0xFF800000> : vector<16xf32>
    %249 = vector.multi_reduction <maximumf>, %248, %cst_194 [1] : vector<16x16xf32> to vector<16xf32>
    %250 = vector.shape_cast %249 : vector<16xf32> to vector<16x1xf32>
    %251 = vector.broadcast %250 : vector<16x1xf32> to vector<16x16xf32>
    %252 = arith.subf %248, %251 : vector<16x16xf32>
    %253 = math.exp %252 : vector<16x16xf32>
    %cst_195 = arith.constant dense<0.000000e+00> : vector<16xf32>
    %254 = vector.multi_reduction <add>, %253, %cst_195 [1] : vector<16x16xf32> to vector<16xf32>
    %255 = vector.shape_cast %254 : vector<16xf32> to vector<16x1xf32>
    %256 = vector.broadcast %255 : vector<16x1xf32> to vector<16x16xf32>
    %257 = arith.divf %253, %256 : vector<16x16xf32>
    %258 = arith.truncf %257 : vector<16x16xf32> to vector<16x16xbf16>
    %259 = arith.truncf %241 : vector<16x8xf32> to vector<16x8xbf16>
    %cst_196 = arith.constant dense<0.000000e+00> : vector<16x8xf32>
    %260 = tpu.matmul %258, %259, %cst_196 {dimension_numbers = #tpu.dot_dimension_numbers<[1], [0], [0], [1], [0, 0, 1, 1], [], []>} : vector<16x16xbf16>, vector<16x8xbf16>, vector<16x8xf32> -> vector<16x8xf32>
    %261 = arith.truncf %260 : vector<16x8xf32> to vector<16x8xbf16>
    %c0_197 = arith.constant 0 : index
    %c0_198 = arith.constant 0 : index
    %c0_199 = arith.constant 0 : index
    %c0_200 = arith.constant 0 : index
    %262 = vector.load %arg16[%c0_197, %c0_198, %c0_199, %c0_200] : memref<1x4x8x32xbf16, #tpu.memory_space<vmem>>, vector<1x1x8x32xbf16>
    %263 = vector.shape_cast %262 : vector<1x1x8x32xbf16> to vector<8x32xbf16>
    %cst_201 = arith.constant dense<0.000000e+00> : vector<16x32xf32>
    %264 = tpu.matmul %261, %263, %cst_201 {dimension_numbers = #tpu.dot_dimension_numbers<[1], [0], [0], [1], [0, 0, 1, 1], [], []>} : vector<16x8xbf16>, vector<8x32xbf16>, vector<16x32xf32> -> vector<16x32xf32>
    %c0_202 = arith.constant 0 : index
    %c1_203 = arith.constant 1 : index
    %c0_204 = arith.constant 0 : index
    %c0_205 = arith.constant 0 : index
    %265 = vector.load %arg12[%c0_202, %c1_203, %c0_204, %c0_205] : memref<1x4x32x8xbf16, #tpu.memory_space<vmem>>, vector<1x1x32x8xbf16>
    %266 = vector.shape_cast %265 : vector<1x1x32x8xbf16> to vector<32x8xbf16>
    %cst_206 = arith.constant dense<0.000000e+00> : vector<16x8xf32>
    %267 = tpu.matmul %220, %266, %cst_206 {dimension_numbers = #tpu.dot_dimension_numbers<[1], [0], [0], [1], [0, 0, 1, 1], [], []>} : vector<16x32xbf16>, vector<32x8xbf16>, vector<16x8xf32> -> vector<16x8xf32>
    %c0_207 = arith.constant 0 : index
    %c1_208 = arith.constant 1 : index
    %c0_209 = arith.constant 0 : index
    %c0_210 = arith.constant 0 : index
    %268 = vector.load %arg13[%c0_207, %c1_208, %c0_209, %c0_210] : memref<1x4x1x8xf32, #tpu.memory_space<vmem>>, vector<1x1x1x8xf32>
    %269 = vector.shape_cast %268 : vector<1x1x1x8xf32> to vector<1x8xf32>
    %270 = vector.broadcast %269 : vector<1x8xf32> to vector<16x8xf32>
    %271 = arith.addf %267, %270 : vector<16x8xf32>
    %c0_211 = arith.constant 0 : index
    %c1_212 = arith.constant 1 : index
    %c0_213 = arith.constant 0 : index
    %c0_214 = arith.constant 0 : index
    %272 = vector.load %arg14[%c0_211, %c1_212, %c0_213, %c0_214] : memref<1x8x32x8xbf16, #tpu.memory_space<vmem>>, vector<1x1x32x8xbf16>
    %273 = vector.shape_cast %272 : vector<1x1x32x8xbf16> to vector<32x8xbf16>
    %cst_215 = arith.constant dense<0.000000e+00> : vector<16x8xf32>
    %274 = tpu.matmul %4, %273, %cst_215 {dimension_numbers = #tpu.dot_dimension_numbers<[1], [0], [0], [1], [0, 0, 1, 1], [], []>} : vector<16x32xbf16>, vector<32x8xbf16>, vector<16x8xf32> -> vector<16x8xf32>
    %c0_216 = arith.constant 0 : index
    %c1_217 = arith.constant 1 : index
    %c0_218 = arith.constant 0 : index
    %c0_219 = arith.constant 0 : index
    %275 = vector.load %arg15[%c0_216, %c1_217, %c0_218, %c0_219] : memref<1x8x1x8xf32, #tpu.memory_space<vmem>>, vector<1x1x1x8xf32>
    %276 = vector.shape_cast %275 : vector<1x1x1x8xf32> to vector<1x8xf32>
    %277 = vector.broadcast %276 : vector<1x8xf32> to vector<16x8xf32>
    %278 = arith.addf %274, %277 : vector<16x8xf32>
    %c0_220 = arith.constant 0 : index
    %c5_221 = arith.constant 5 : index
    %c0_222 = arith.constant 0 : index
    %c0_223 = arith.constant 0 : index
    %279 = vector.load %arg14[%c0_220, %c5_221, %c0_222, %c0_223] : memref<1x8x32x8xbf16, #tpu.memory_space<vmem>>, vector<1x1x32x8xbf16>
    %280 = vector.shape_cast %279 : vector<1x1x32x8xbf16> to vector<32x8xbf16>
    %cst_224 = arith.constant dense<0.000000e+00> : vector<16x8xf32>
    %281 = tpu.matmul %4, %280, %cst_224 {dimension_numbers = #tpu.dot_dimension_numbers<[1], [0], [0], [1], [0, 0, 1, 1], [], []>} : vector<16x32xbf16>, vector<32x8xbf16>, vector<16x8xf32> -> vector<16x8xf32>
    %c0_225 = arith.constant 0 : index
    %c5_226 = arith.constant 5 : index
    %c0_227 = arith.constant 0 : index
    %c0_228 = arith.constant 0 : index
    %282 = vector.load %arg15[%c0_225, %c5_226, %c0_227, %c0_228] : memref<1x8x1x8xf32, #tpu.memory_space<vmem>>, vector<1x1x1x8xf32>
    %283 = vector.shape_cast %282 : vector<1x1x1x8xf32> to vector<1x8xf32>
    %284 = vector.broadcast %283 : vector<1x8xf32> to vector<16x8xf32>
    %285 = arith.addf %281, %284 : vector<16x8xf32>
    %286 = arith.truncf %271 : vector<16x8xf32> to vector<16x8xbf16>
    %287 = arith.truncf %278 : vector<16x8xf32> to vector<16x8xbf16>
    %cst_229 = arith.constant dense<0.000000e+00> : vector<16x16xf32>
    %288 = tpu.matmul %286, %287, %cst_229 {dimension_numbers = #tpu.dot_dimension_numbers<[1], [1], [0], [0], [0, 0, 1, 0], [], []>} : vector<16x8xbf16>, vector<16x8xbf16>, vector<16x16xf32> -> vector<16x16xf32>
    %cst_230 = arith.constant 0.353553385 : f32
    %289 = vector.broadcast %cst_230 : f32 to vector<16x16xf32>
    %290 = arith.mulf %288, %289 : vector<16x16xf32>
    %cst_231 = arith.constant -1.000000e+09 : f32
    %291 = vector.broadcast %cst_231 : f32 to vector<16x16xf32>
    %292 = arith.select %10, %290, %291 : vector<16x16xi1>, vector<16x16xf32>
    %cst_232 = arith.constant dense<0xFF800000> : vector<16xf32>
    %293 = vector.multi_reduction <maximumf>, %292, %cst_232 [1] : vector<16x16xf32> to vector<16xf32>
    %294 = vector.shape_cast %293 : vector<16xf32> to vector<16x1xf32>
    %295 = vector.broadcast %294 : vector<16x1xf32> to vector<16x16xf32>
    %296 = arith.subf %292, %295 : vector<16x16xf32>
    %297 = math.exp %296 : vector<16x16xf32>
    %cst_233 = arith.constant dense<0.000000e+00> : vector<16xf32>
    %298 = vector.multi_reduction <add>, %297, %cst_233 [1] : vector<16x16xf32> to vector<16xf32>
    %299 = vector.shape_cast %298 : vector<16xf32> to vector<16x1xf32>
    %300 = vector.broadcast %299 : vector<16x1xf32> to vector<16x16xf32>
    %301 = arith.divf %297, %300 : vector<16x16xf32>
    %302 = arith.truncf %301 : vector<16x16xf32> to vector<16x16xbf16>
    %303 = arith.truncf %285 : vector<16x8xf32> to vector<16x8xbf16>
    %cst_234 = arith.constant dense<0.000000e+00> : vector<16x8xf32>
    %304 = tpu.matmul %302, %303, %cst_234 {dimension_numbers = #tpu.dot_dimension_numbers<[1], [0], [0], [1], [0, 0, 1, 1], [], []>} : vector<16x16xbf16>, vector<16x8xbf16>, vector<16x8xf32> -> vector<16x8xf32>
    %305 = arith.truncf %304 : vector<16x8xf32> to vector<16x8xbf16>
    %c0_235 = arith.constant 0 : index
    %c1_236 = arith.constant 1 : index
    %c0_237 = arith.constant 0 : index
    %c0_238 = arith.constant 0 : index
    %306 = vector.load %arg16[%c0_235, %c1_236, %c0_237, %c0_238] : memref<1x4x8x32xbf16, #tpu.memory_space<vmem>>, vector<1x1x8x32xbf16>
    %307 = vector.shape_cast %306 : vector<1x1x8x32xbf16> to vector<8x32xbf16>
    %cst_239 = arith.constant dense<0.000000e+00> : vector<16x32xf32>
    %308 = tpu.matmul %305, %307, %cst_239 {dimension_numbers = #tpu.dot_dimension_numbers<[1], [0], [0], [1], [0, 0, 1, 1], [], []>} : vector<16x8xbf16>, vector<8x32xbf16>, vector<16x32xf32> -> vector<16x32xf32>
    %309 = arith.addf %264, %308 : vector<16x32xf32>
    %c0_240 = arith.constant 0 : index
    %c2_241 = arith.constant 2 : index
    %c0_242 = arith.constant 0 : index
    %c0_243 = arith.constant 0 : index
    %310 = vector.load %arg12[%c0_240, %c2_241, %c0_242, %c0_243] : memref<1x4x32x8xbf16, #tpu.memory_space<vmem>>, vector<1x1x32x8xbf16>
    %311 = vector.shape_cast %310 : vector<1x1x32x8xbf16> to vector<32x8xbf16>
    %cst_244 = arith.constant dense<0.000000e+00> : vector<16x8xf32>
    %312 = tpu.matmul %220, %311, %cst_244 {dimension_numbers = #tpu.dot_dimension_numbers<[1], [0], [0], [1], [0, 0, 1, 1], [], []>} : vector<16x32xbf16>, vector<32x8xbf16>, vector<16x8xf32> -> vector<16x8xf32>
    %c0_245 = arith.constant 0 : index
    %c2_246 = arith.constant 2 : index
    %c0_247 = arith.constant 0 : index
    %c0_248 = arith.constant 0 : index
    %313 = vector.load %arg13[%c0_245, %c2_246, %c0_247, %c0_248] : memref<1x4x1x8xf32, #tpu.memory_space<vmem>>, vector<1x1x1x8xf32>
    %314 = vector.shape_cast %313 : vector<1x1x1x8xf32> to vector<1x8xf32>
    %315 = vector.broadcast %314 : vector<1x8xf32> to vector<16x8xf32>
    %316 = arith.addf %312, %315 : vector<16x8xf32>
    %c0_249 = arith.constant 0 : index
    %c2_250 = arith.constant 2 : index
    %c0_251 = arith.constant 0 : index
    %c0_252 = arith.constant 0 : index
    %317 = vector.load %arg14[%c0_249, %c2_250, %c0_251, %c0_252] : memref<1x8x32x8xbf16, #tpu.memory_space<vmem>>, vector<1x1x32x8xbf16>
    %318 = vector.shape_cast %317 : vector<1x1x32x8xbf16> to vector<32x8xbf16>
    %cst_253 = arith.constant dense<0.000000e+00> : vector<16x8xf32>
    %319 = tpu.matmul %4, %318, %cst_253 {dimension_numbers = #tpu.dot_dimension_numbers<[1], [0], [0], [1], [0, 0, 1, 1], [], []>} : vector<16x32xbf16>, vector<32x8xbf16>, vector<16x8xf32> -> vector<16x8xf32>
    %c0_254 = arith.constant 0 : index
    %c2_255 = arith.constant 2 : index
    %c0_256 = arith.constant 0 : index
    %c0_257 = arith.constant 0 : index
    %320 = vector.load %arg15[%c0_254, %c2_255, %c0_256, %c0_257] : memref<1x8x1x8xf32, #tpu.memory_space<vmem>>, vector<1x1x1x8xf32>
    %321 = vector.shape_cast %320 : vector<1x1x1x8xf32> to vector<1x8xf32>
    %322 = vector.broadcast %321 : vector<1x8xf32> to vector<16x8xf32>
    %323 = arith.addf %319, %322 : vector<16x8xf32>
    %c0_258 = arith.constant 0 : index
    %c6_259 = arith.constant 6 : index
    %c0_260 = arith.constant 0 : index
    %c0_261 = arith.constant 0 : index
    %324 = vector.load %arg14[%c0_258, %c6_259, %c0_260, %c0_261] : memref<1x8x32x8xbf16, #tpu.memory_space<vmem>>, vector<1x1x32x8xbf16>
    %325 = vector.shape_cast %324 : vector<1x1x32x8xbf16> to vector<32x8xbf16>
    %cst_262 = arith.constant dense<0.000000e+00> : vector<16x8xf32>
    %326 = tpu.matmul %4, %325, %cst_262 {dimension_numbers = #tpu.dot_dimension_numbers<[1], [0], [0], [1], [0, 0, 1, 1], [], []>} : vector<16x32xbf16>, vector<32x8xbf16>, vector<16x8xf32> -> vector<16x8xf32>
    %c0_263 = arith.constant 0 : index
    %c6_264 = arith.constant 6 : index
    %c0_265 = arith.constant 0 : index
    %c0_266 = arith.constant 0 : index
    %327 = vector.load %arg15[%c0_263, %c6_264, %c0_265, %c0_266] : memref<1x8x1x8xf32, #tpu.memory_space<vmem>>, vector<1x1x1x8xf32>
    %328 = vector.shape_cast %327 : vector<1x1x1x8xf32> to vector<1x8xf32>
    %329 = vector.broadcast %328 : vector<1x8xf32> to vector<16x8xf32>
    %330 = arith.addf %326, %329 : vector<16x8xf32>
    %331 = arith.truncf %316 : vector<16x8xf32> to vector<16x8xbf16>
    %332 = arith.truncf %323 : vector<16x8xf32> to vector<16x8xbf16>
    %cst_267 = arith.constant dense<0.000000e+00> : vector<16x16xf32>
    %333 = tpu.matmul %331, %332, %cst_267 {dimension_numbers = #tpu.dot_dimension_numbers<[1], [1], [0], [0], [0, 0, 1, 0], [], []>} : vector<16x8xbf16>, vector<16x8xbf16>, vector<16x16xf32> -> vector<16x16xf32>
    %cst_268 = arith.constant 0.353553385 : f32
    %334 = vector.broadcast %cst_268 : f32 to vector<16x16xf32>
    %335 = arith.mulf %333, %334 : vector<16x16xf32>
    %cst_269 = arith.constant -1.000000e+09 : f32
    %336 = vector.broadcast %cst_269 : f32 to vector<16x16xf32>
    %337 = arith.select %10, %335, %336 : vector<16x16xi1>, vector<16x16xf32>
    %cst_270 = arith.constant dense<0xFF800000> : vector<16xf32>
    %338 = vector.multi_reduction <maximumf>, %337, %cst_270 [1] : vector<16x16xf32> to vector<16xf32>
    %339 = vector.shape_cast %338 : vector<16xf32> to vector<16x1xf32>
    %340 = vector.broadcast %339 : vector<16x1xf32> to vector<16x16xf32>
    %341 = arith.subf %337, %340 : vector<16x16xf32>
    %342 = math.exp %341 : vector<16x16xf32>
    %cst_271 = arith.constant dense<0.000000e+00> : vector<16xf32>
    %343 = vector.multi_reduction <add>, %342, %cst_271 [1] : vector<16x16xf32> to vector<16xf32>
    %344 = vector.shape_cast %343 : vector<16xf32> to vector<16x1xf32>
    %345 = vector.broadcast %344 : vector<16x1xf32> to vector<16x16xf32>
    %346 = arith.divf %342, %345 : vector<16x16xf32>
    %347 = arith.truncf %346 : vector<16x16xf32> to vector<16x16xbf16>
    %348 = arith.truncf %330 : vector<16x8xf32> to vector<16x8xbf16>
    %cst_272 = arith.constant dense<0.000000e+00> : vector<16x8xf32>
    %349 = tpu.matmul %347, %348, %cst_272 {dimension_numbers = #tpu.dot_dimension_numbers<[1], [0], [0], [1], [0, 0, 1, 1], [], []>} : vector<16x16xbf16>, vector<16x8xbf16>, vector<16x8xf32> -> vector<16x8xf32>
    %350 = arith.truncf %349 : vector<16x8xf32> to vector<16x8xbf16>
    %c0_273 = arith.constant 0 : index
    %c2_274 = arith.constant 2 : index
    %c0_275 = arith.constant 0 : index
    %c0_276 = arith.constant 0 : index
    %351 = vector.load %arg16[%c0_273, %c2_274, %c0_275, %c0_276] : memref<1x4x8x32xbf16, #tpu.memory_space<vmem>>, vector<1x1x8x32xbf16>
    %352 = vector.shape_cast %351 : vector<1x1x8x32xbf16> to vector<8x32xbf16>
    %cst_277 = arith.constant dense<0.000000e+00> : vector<16x32xf32>
    %353 = tpu.matmul %350, %352, %cst_277 {dimension_numbers = #tpu.dot_dimension_numbers<[1], [0], [0], [1], [0, 0, 1, 1], [], []>} : vector<16x8xbf16>, vector<8x32xbf16>, vector<16x32xf32> -> vector<16x32xf32>
    %354 = arith.addf %309, %353 : vector<16x32xf32>
    %c0_278 = arith.constant 0 : index
    %c3_279 = arith.constant 3 : index
    %c0_280 = arith.constant 0 : index
    %c0_281 = arith.constant 0 : index
    %355 = vector.load %arg12[%c0_278, %c3_279, %c0_280, %c0_281] : memref<1x4x32x8xbf16, #tpu.memory_space<vmem>>, vector<1x1x32x8xbf16>
    %356 = vector.shape_cast %355 : vector<1x1x32x8xbf16> to vector<32x8xbf16>
    %cst_282 = arith.constant dense<0.000000e+00> : vector<16x8xf32>
    %357 = tpu.matmul %220, %356, %cst_282 {dimension_numbers = #tpu.dot_dimension_numbers<[1], [0], [0], [1], [0, 0, 1, 1], [], []>} : vector<16x32xbf16>, vector<32x8xbf16>, vector<16x8xf32> -> vector<16x8xf32>
    %c0_283 = arith.constant 0 : index
    %c3_284 = arith.constant 3 : index
    %c0_285 = arith.constant 0 : index
    %c0_286 = arith.constant 0 : index
    %358 = vector.load %arg13[%c0_283, %c3_284, %c0_285, %c0_286] : memref<1x4x1x8xf32, #tpu.memory_space<vmem>>, vector<1x1x1x8xf32>
    %359 = vector.shape_cast %358 : vector<1x1x1x8xf32> to vector<1x8xf32>
    %360 = vector.broadcast %359 : vector<1x8xf32> to vector<16x8xf32>
    %361 = arith.addf %357, %360 : vector<16x8xf32>
    %c0_287 = arith.constant 0 : index
    %c3_288 = arith.constant 3 : index
    %c0_289 = arith.constant 0 : index
    %c0_290 = arith.constant 0 : index
    %362 = vector.load %arg14[%c0_287, %c3_288, %c0_289, %c0_290] : memref<1x8x32x8xbf16, #tpu.memory_space<vmem>>, vector<1x1x32x8xbf16>
    %363 = vector.shape_cast %362 : vector<1x1x32x8xbf16> to vector<32x8xbf16>
    %cst_291 = arith.constant dense<0.000000e+00> : vector<16x8xf32>
    %364 = tpu.matmul %4, %363, %cst_291 {dimension_numbers = #tpu.dot_dimension_numbers<[1], [0], [0], [1], [0, 0, 1, 1], [], []>} : vector<16x32xbf16>, vector<32x8xbf16>, vector<16x8xf32> -> vector<16x8xf32>
    %c0_292 = arith.constant 0 : index
    %c3_293 = arith.constant 3 : index
    %c0_294 = arith.constant 0 : index
    %c0_295 = arith.constant 0 : index
    %365 = vector.load %arg15[%c0_292, %c3_293, %c0_294, %c0_295] : memref<1x8x1x8xf32, #tpu.memory_space<vmem>>, vector<1x1x1x8xf32>
    %366 = vector.shape_cast %365 : vector<1x1x1x8xf32> to vector<1x8xf32>
    %367 = vector.broadcast %366 : vector<1x8xf32> to vector<16x8xf32>
    %368 = arith.addf %364, %367 : vector<16x8xf32>
    %c0_296 = arith.constant 0 : index
    %c7_297 = arith.constant 7 : index
    %c0_298 = arith.constant 0 : index
    %c0_299 = arith.constant 0 : index
    %369 = vector.load %arg14[%c0_296, %c7_297, %c0_298, %c0_299] : memref<1x8x32x8xbf16, #tpu.memory_space<vmem>>, vector<1x1x32x8xbf16>
    %370 = vector.shape_cast %369 : vector<1x1x32x8xbf16> to vector<32x8xbf16>
    %cst_300 = arith.constant dense<0.000000e+00> : vector<16x8xf32>
    %371 = tpu.matmul %4, %370, %cst_300 {dimension_numbers = #tpu.dot_dimension_numbers<[1], [0], [0], [1], [0, 0, 1, 1], [], []>} : vector<16x32xbf16>, vector<32x8xbf16>, vector<16x8xf32> -> vector<16x8xf32>
    %c0_301 = arith.constant 0 : index
    %c7_302 = arith.constant 7 : index
    %c0_303 = arith.constant 0 : index
    %c0_304 = arith.constant 0 : index
    %372 = vector.load %arg15[%c0_301, %c7_302, %c0_303, %c0_304] : memref<1x8x1x8xf32, #tpu.memory_space<vmem>>, vector<1x1x1x8xf32>
    %373 = vector.shape_cast %372 : vector<1x1x1x8xf32> to vector<1x8xf32>
    %374 = vector.broadcast %373 : vector<1x8xf32> to vector<16x8xf32>
    %375 = arith.addf %371, %374 : vector<16x8xf32>
    %376 = arith.truncf %361 : vector<16x8xf32> to vector<16x8xbf16>
    %377 = arith.truncf %368 : vector<16x8xf32> to vector<16x8xbf16>
    %cst_305 = arith.constant dense<0.000000e+00> : vector<16x16xf32>
    %378 = tpu.matmul %376, %377, %cst_305 {dimension_numbers = #tpu.dot_dimension_numbers<[1], [1], [0], [0], [0, 0, 1, 0], [], []>} : vector<16x8xbf16>, vector<16x8xbf16>, vector<16x16xf32> -> vector<16x16xf32>
    %cst_306 = arith.constant 0.353553385 : f32
    %379 = vector.broadcast %cst_306 : f32 to vector<16x16xf32>
    %380 = arith.mulf %378, %379 : vector<16x16xf32>
    %cst_307 = arith.constant -1.000000e+09 : f32
    %381 = vector.broadcast %cst_307 : f32 to vector<16x16xf32>
    %382 = arith.select %10, %380, %381 : vector<16x16xi1>, vector<16x16xf32>
    %cst_308 = arith.constant dense<0xFF800000> : vector<16xf32>
    %383 = vector.multi_reduction <maximumf>, %382, %cst_308 [1] : vector<16x16xf32> to vector<16xf32>
    %384 = vector.shape_cast %383 : vector<16xf32> to vector<16x1xf32>
    %385 = vector.broadcast %384 : vector<16x1xf32> to vector<16x16xf32>
    %386 = arith.subf %382, %385 : vector<16x16xf32>
    %387 = math.exp %386 : vector<16x16xf32>
    %cst_309 = arith.constant dense<0.000000e+00> : vector<16xf32>
    %388 = vector.multi_reduction <add>, %387, %cst_309 [1] : vector<16x16xf32> to vector<16xf32>
    %389 = vector.shape_cast %388 : vector<16xf32> to vector<16x1xf32>
    %390 = vector.broadcast %389 : vector<16x1xf32> to vector<16x16xf32>
    %391 = arith.divf %387, %390 : vector<16x16xf32>
    %392 = arith.truncf %391 : vector<16x16xf32> to vector<16x16xbf16>
    %393 = arith.truncf %375 : vector<16x8xf32> to vector<16x8xbf16>
    %cst_310 = arith.constant dense<0.000000e+00> : vector<16x8xf32>
    %394 = tpu.matmul %392, %393, %cst_310 {dimension_numbers = #tpu.dot_dimension_numbers<[1], [0], [0], [1], [0, 0, 1, 1], [], []>} : vector<16x16xbf16>, vector<16x8xbf16>, vector<16x8xf32> -> vector<16x8xf32>
    %395 = arith.truncf %394 : vector<16x8xf32> to vector<16x8xbf16>
    %c0_311 = arith.constant 0 : index
    %c3_312 = arith.constant 3 : index
    %c0_313 = arith.constant 0 : index
    %c0_314 = arith.constant 0 : index
    %396 = vector.load %arg16[%c0_311, %c3_312, %c0_313, %c0_314] : memref<1x4x8x32xbf16, #tpu.memory_space<vmem>>, vector<1x1x8x32xbf16>
    %397 = vector.shape_cast %396 : vector<1x1x8x32xbf16> to vector<8x32xbf16>
    %cst_315 = arith.constant dense<0.000000e+00> : vector<16x32xf32>
    %398 = tpu.matmul %395, %397, %cst_315 {dimension_numbers = #tpu.dot_dimension_numbers<[1], [0], [0], [1], [0, 0, 1, 1], [], []>} : vector<16x8xbf16>, vector<8x32xbf16>, vector<16x32xf32> -> vector<16x32xf32>
    %399 = arith.addf %354, %398 : vector<16x32xf32>
    %c0_316 = arith.constant 0 : index
    %c0_317 = arith.constant 0 : index
    %c0_318 = arith.constant 0 : index
    %400 = vector.load %arg17[%c0_316, %c0_317, %c0_318] : memref<1x1x32xf32, #tpu.memory_space<vmem>>, vector<1x1x32xf32>
    %401 = vector.shape_cast %400 : vector<1x1x32xf32> to vector<1x32xf32>
    %402 = vector.broadcast %401 : vector<1x32xf32> to vector<16x32xf32>
    %403 = arith.addf %399, %402 : vector<16x32xf32>
    %404 = arith.addf %219, %403 : vector<16x32xf32>
    %c0_319 = arith.constant 0 : index
    %c0_320 = arith.constant 0 : index
    %c0_321 = arith.constant 0 : index
    %405 = vector.load %arg18[%c0_319, %c0_320, %c0_321] : memref<1x1x32xf32, #tpu.memory_space<vmem>>, vector<1x1x32xf32>
    %406 = vector.shape_cast %405 : vector<1x1x32xf32> to vector<1x32xf32>
    %c0_322 = arith.constant 0 : index
    %c0_323 = arith.constant 0 : index
    %c0_324 = arith.constant 0 : index
    %407 = vector.load %arg19[%c0_322, %c0_323, %c0_324] : memref<1x1x32xf32, #tpu.memory_space<vmem>>, vector<1x1x32xf32>
    %408 = vector.shape_cast %407 : vector<1x1x32xf32> to vector<1x32xf32>
    %cst_325 = arith.constant dense<0.000000e+00> : vector<16xf32>
    %409 = vector.multi_reduction <add>, %404, %cst_325 [1] : vector<16x32xf32> to vector<16xf32>
    %410 = vector.shape_cast %409 : vector<16xf32> to vector<16x1xf32>
    %cst_326 = arith.constant 3.200000e+01 : f32
    %411 = vector.broadcast %cst_326 : f32 to vector<16x1xf32>
    %412 = arith.divf %410, %411 : vector<16x1xf32>
    %413 = vector.broadcast %412 : vector<16x1xf32> to vector<16x32xf32>
    %414 = arith.subf %404, %413 : vector<16x32xf32>
    %415 = arith.mulf %414, %414 : vector<16x32xf32>
    %cst_327 = arith.constant dense<0.000000e+00> : vector<16xf32>
    %416 = vector.multi_reduction <add>, %415, %cst_327 [1] : vector<16x32xf32> to vector<16xf32>
    %417 = vector.shape_cast %416 : vector<16xf32> to vector<16x1xf32>
    %cst_328 = arith.constant 3.200000e+01 : f32
    %418 = vector.broadcast %cst_328 : f32 to vector<16x1xf32>
    %419 = arith.divf %417, %418 : vector<16x1xf32>
    %cst_329 = arith.constant 9.99999974E-6 : f32
    %420 = vector.broadcast %cst_329 : f32 to vector<16x1xf32>
    %421 = arith.addf %419, %420 : vector<16x1xf32>
    %422 = math.rsqrt %421 : vector<16x1xf32>
    %423 = vector.broadcast %422 : vector<16x1xf32> to vector<16x32xf32>
    %424 = arith.mulf %414, %423 : vector<16x32xf32>
    %425 = vector.broadcast %406 : vector<1x32xf32> to vector<16x32xf32>
    %426 = arith.mulf %424, %425 : vector<16x32xf32>
    %427 = vector.broadcast %408 : vector<1x32xf32> to vector<16x32xf32>
    %428 = arith.addf %426, %427 : vector<16x32xf32>
    %429 = arith.truncf %428 : vector<16x32xf32> to vector<16x32xbf16>
    %c0_330 = arith.constant 0 : index
    %c0_331 = arith.constant 0 : index
    %c0_332 = arith.constant 0 : index
    %430 = vector.load %arg20[%c0_330, %c0_331, %c0_332] : memref<1x32x64xbf16, #tpu.memory_space<vmem>>, vector<1x32x64xbf16>
    %431 = vector.shape_cast %430 : vector<1x32x64xbf16> to vector<32x64xbf16>
    %cst_333 = arith.constant dense<0.000000e+00> : vector<16x64xf32>
    %432 = tpu.matmul %429, %431, %cst_333 {dimension_numbers = #tpu.dot_dimension_numbers<[1], [0], [0], [1], [0, 0, 1, 1], [], []>} : vector<16x32xbf16>, vector<32x64xbf16>, vector<16x64xf32> -> vector<16x64xf32>
    %c0_334 = arith.constant 0 : index
    %c0_335 = arith.constant 0 : index
    %c0_336 = arith.constant 0 : index
    %433 = vector.load %arg21[%c0_334, %c0_335, %c0_336] : memref<1x1x64xf32, #tpu.memory_space<vmem>>, vector<1x1x64xf32>
    %434 = vector.shape_cast %433 : vector<1x1x64xf32> to vector<1x64xf32>
    %435 = vector.broadcast %434 : vector<1x64xf32> to vector<16x64xf32>
    %436 = arith.addf %432, %435 : vector<16x64xf32>
    %cst_337 = arith.constant 0.000000e+00 : f32
    %437 = vector.broadcast %cst_337 : f32 to vector<16x64xf32>
    %438 = arith.maximumf %436, %437 : vector<16x64xf32>
    %439 = arith.truncf %438 : vector<16x64xf32> to vector<16x64xbf16>
    %c0_338 = arith.constant 0 : index
    %c0_339 = arith.constant 0 : index
    %c0_340 = arith.constant 0 : index
    %440 = vector.load %arg22[%c0_338, %c0_339, %c0_340] : memref<1x64x32xbf16, #tpu.memory_space<vmem>>, vector<1x64x32xbf16>
    %441 = vector.shape_cast %440 : vector<1x64x32xbf16> to vector<64x32xbf16>
    %cst_341 = arith.constant dense<0.000000e+00> : vector<16x32xf32>
    %442 = tpu.matmul %439, %441, %cst_341 {dimension_numbers = #tpu.dot_dimension_numbers<[1], [0], [0], [1], [0, 0, 1, 1], [], []>} : vector<16x64xbf16>, vector<64x32xbf16>, vector<16x32xf32> -> vector<16x32xf32>
    %c0_342 = arith.constant 0 : index
    %c0_343 = arith.constant 0 : index
    %c0_344 = arith.constant 0 : index
    %443 = vector.load %arg23[%c0_342, %c0_343, %c0_344] : memref<1x1x32xf32, #tpu.memory_space<vmem>>, vector<1x1x32xf32>
    %444 = vector.shape_cast %443 : vector<1x1x32xf32> to vector<1x32xf32>
    %445 = vector.broadcast %444 : vector<1x32xf32> to vector<16x32xf32>
    %446 = arith.addf %442, %445 : vector<16x32xf32>
    %447 = arith.addf %428, %446 : vector<16x32xf32>
    %c0_345 = arith.constant 0 : index
    %c0_346 = arith.constant 0 : index
    %c0_347 = arith.constant 0 : index
    %448 = vector.load %arg24[%c0_345, %c0_346, %c0_347] : memref<1x1x32xf32, #tpu.memory_space<vmem>>, vector<1x1x32xf32>
    %449 = vector.shape_cast %448 : vector<1x1x32xf32> to vector<1x32xf32>
    %c0_348 = arith.constant 0 : index
    %c0_349 = arith.constant 0 : index
    %c0_350 = arith.constant 0 : index
    %450 = vector.load %arg25[%c0_348, %c0_349, %c0_350] : memref<1x1x32xf32, #tpu.memory_space<vmem>>, vector<1x1x32xf32>
    %451 = vector.shape_cast %450 : vector<1x1x32xf32> to vector<1x32xf32>
    %cst_351 = arith.constant dense<0.000000e+00> : vector<16xf32>
    %452 = vector.multi_reduction <add>, %447, %cst_351 [1] : vector<16x32xf32> to vector<16xf32>
    %453 = vector.shape_cast %452 : vector<16xf32> to vector<16x1xf32>
    %cst_352 = arith.constant 3.200000e+01 : f32
    %454 = vector.broadcast %cst_352 : f32 to vector<16x1xf32>
    %455 = arith.divf %453, %454 : vector<16x1xf32>
    %456 = vector.broadcast %455 : vector<16x1xf32> to vector<16x32xf32>
    %457 = arith.subf %447, %456 : vector<16x32xf32>
    %458 = arith.mulf %457, %457 : vector<16x32xf32>
    %cst_353 = arith.constant dense<0.000000e+00> : vector<16xf32>
    %459 = vector.multi_reduction <add>, %458, %cst_353 [1] : vector<16x32xf32> to vector<16xf32>
    %460 = vector.shape_cast %459 : vector<16xf32> to vector<16x1xf32>
    %cst_354 = arith.constant 3.200000e+01 : f32
    %461 = vector.broadcast %cst_354 : f32 to vector<16x1xf32>
    %462 = arith.divf %460, %461 : vector<16x1xf32>
    %cst_355 = arith.constant 9.99999974E-6 : f32
    %463 = vector.broadcast %cst_355 : f32 to vector<16x1xf32>
    %464 = arith.addf %462, %463 : vector<16x1xf32>
    %465 = math.rsqrt %464 : vector<16x1xf32>
    %466 = vector.broadcast %465 : vector<16x1xf32> to vector<16x32xf32>
    %467 = arith.mulf %457, %466 : vector<16x32xf32>
    %468 = vector.broadcast %449 : vector<1x32xf32> to vector<16x32xf32>
    %469 = arith.mulf %467, %468 : vector<16x32xf32>
    %470 = vector.broadcast %451 : vector<1x32xf32> to vector<16x32xf32>
    %471 = arith.addf %469, %470 : vector<16x32xf32>
    %c0_356 = arith.constant 0 : index
    %c0_357 = arith.constant 0 : index
    %472 = vector.load %arg27[%c0_356, %c0_357] : memref<16x32xf32, #tpu.memory_space<vmem>>, vector<16x32xf32>
    tpu.vector_store %arg27[%c0_356, %c0_357], %471 {strides = array<i32>} : memref<16x32xf32, #tpu.memory_space<vmem>>, vector<16x32xf32>,
    %c5_i32 = arith.constant 5 : i32
    %473 = arith.cmpi eq, %arg0, %c5_i32 : i32
    %474 = arith.extui %473 : i1 to i32
    %c0_i32_358 = arith.constant 0 : i32
    %475 = arith.cmpi ne, %474, %c0_i32_358 : i32
    scf.if %475 {
      %476 = arith.truncf %471 : vector<16x32xf32> to vector<16x32xbf16>
      %c0_359 = arith.constant 0 : index
      %c0_360 = arith.constant 0 : index
      %477 = vector.load %arg26[%c0_359, %c0_360] : memref<16x32xbf16, #tpu.memory_space<vmem>>, vector<16x32xbf16>
      tpu.vector_store %arg26[%c0_359, %c0_360], %476 {strides = array<i32>} : memref<16x32xbf16, #tpu.memory_space<vmem>>, vector<16x32xbf16>,
    } else {
    }
    return
  }
  func.func @transform_0(%arg0: i32) -> (i32, i32) {
    %c0_i32 = arith.constant 0 : i32
    %c0_i32_0 = arith.constant 0 : i32
    %c0_i32_1 = arith.constant 0 : i32
    return %c0_i32, %c0_i32_0 : i32, i32
  }
  func.func @transform_1(%arg0: i32) -> (i32, i32) {
    %c0_i32 = arith.constant 0 : i32
    %c0_i32_0 = arith.constant 0 : i32
    %c0_i32_1 = arith.constant 0 : i32
    return %c0_i32, %c0_i32_0 : i32, i32
  }
  func.func @transform_2(%arg0: i32) -> (i32, i32) {
    %c0_i32 = arith.constant 0 : i32
    %c0_i32_0 = arith.constant 0 : i32
    %c0_i32_1 = arith.constant 0 : i32
    return %c0_i32, %c0_i32_0 : i32, i32
  }
  func.func @transform_3(%arg0: i32) -> (i32, i32) {
    %c0_i32 = arith.constant 0 : i32
    %c0_i32_0 = arith.constant 0 : i32
    %c0_i32_1 = arith.constant 0 : i32
    return %c0_i32, %c0_i32_0 : i32, i32
  }
  func.func @transform_4(%arg0: i32) -> (i32, i32) {
    %c0_i32 = arith.constant 0 : i32
    %c0_i32_0 = arith.constant 0 : i32
    %c0_i32_1 = arith.constant 0 : i32
    return %c0_i32, %c0_i32_0 : i32, i32
  }
  func.func @transform_5(%arg0: i32) -> (i32, i32, i32, i32) {
    %c0_i32 = arith.constant 0 : i32
    %c0_i32_0 = arith.constant 0 : i32
    %c0_i32_1 = arith.constant 0 : i32
    %c0_i32_2 = arith.constant 0 : i32
    return %arg0, %c0_i32, %c0_i32_0, %c0_i32_1 : i32, i32, i32, i32
  }
  func.func @transform_6(%arg0: i32) -> (i32, i32, i32, i32) {
    %c0_i32 = arith.constant 0 : i32
    %c0_i32_0 = arith.constant 0 : i32
    %c0_i32_1 = arith.constant 0 : i32
    %c0_i32_2 = arith.constant 0 : i32
    return %arg0, %c0_i32, %c0_i32_0, %c0_i32_1 : i32, i32, i32, i32
  }
  func.func @transform_7(%arg0: i32) -> (i32, i32, i32, i32) {
    %c0_i32 = arith.constant 0 : i32
    %c0_i32_0 = arith.constant 0 : i32
    %c0_i32_1 = arith.constant 0 : i32
    %c0_i32_2 = arith.constant 0 : i32
    return %arg0, %c0_i32, %c0_i32_0, %c0_i32_1 : i32, i32, i32, i32
  }
  func.func @transform_8(%arg0: i32) -> (i32, i32, i32) {
    %c0_i32 = arith.constant 0 : i32
    %c0_i32_0 = arith.constant 0 : i32
    %c0_i32_1 = arith.constant 0 : i32
    return %arg0, %c0_i32, %c0_i32_0 : i32, i32, i32
  }
  func.func @transform_9(%arg0: i32) -> (i32, i32, i32) {
    %c0_i32 = arith.constant 0 : i32
    %c0_i32_0 = arith.constant 0 : i32
    %c0_i32_1 = arith.constant 0 : i32
    return %arg0, %c0_i32, %c0_i32_0 : i32, i32, i32
  }
  func.func @transform_10(%arg0: i32) -> (i32, i32, i32) {
    %c0_i32 = arith.constant 0 : i32
    %c0_i32_0 = arith.constant 0 : i32
    %c0_i32_1 = arith.constant 0 : i32
    return %arg0, %c0_i32, %c0_i32_0 : i32, i32, i32
  }
  func.func @transform_11(%arg0: i32) -> (i32, i32, i32, i32) {
    %c0_i32 = arith.constant 0 : i32
    %c0_i32_0 = arith.constant 0 : i32
    %c0_i32_1 = arith.constant 0 : i32
    %c0_i32_2 = arith.constant 0 : i32
    return %arg0, %c0_i32, %c0_i32_0, %c0_i32_1 : i32, i32, i32, i32
  }
  func.func @transform_12(%arg0: i32) -> (i32, i32, i32, i32) {
    %c0_i32 = arith.constant 0 : i32
    %c0_i32_0 = arith.constant 0 : i32
    %c0_i32_1 = arith.constant 0 : i32
    %c0_i32_2 = arith.constant 0 : i32
    return %arg0, %c0_i32, %c0_i32_0, %c0_i32_1 : i32, i32, i32, i32
  }
  func.func @transform_13(%arg0: i32) -> (i32, i32, i32, i32) {
    %c0_i32 = arith.constant 0 : i32
    %c0_i32_0 = arith.constant 0 : i32
    %c0_i32_1 = arith.constant 0 : i32
    %c0_i32_2 = arith.constant 0 : i32
    return %arg0, %c0_i32, %c0_i32_0, %c0_i32_1 : i32, i32, i32, i32
  }
  func.func @transform_14(%arg0: i32) -> (i32, i32, i32, i32) {
    %c0_i32 = arith.constant 0 : i32
    %c0_i32_0 = arith.constant 0 : i32
    %c0_i32_1 = arith.constant 0 : i32
    %c0_i32_2 = arith.constant 0 : i32
    return %arg0, %c0_i32, %c0_i32_0, %c0_i32_1 : i32, i32, i32, i32
  }
  func.func @transform_15(%arg0: i32) -> (i32, i32, i32, i32) {
    %c0_i32 = arith.constant 0 : i32
    %c0_i32_0 = arith.constant 0 : i32
    %c0_i32_1 = arith.constant 0 : i32
    %c0_i32_2 = arith.constant 0 : i32
    return %arg0, %c0_i32, %c0_i32_0, %c0_i32_1 : i32, i32, i32, i32
  }
  func.func @transform_16(%arg0: i32) -> (i32, i32, i32) {
    %c0_i32 = arith.constant 0 : i32
    %c0_i32_0 = arith.constant 0 : i32
    %c0_i32_1 = arith.constant 0 : i32
    return %arg0, %c0_i32, %c0_i32_0 : i32, i32, i32
  }
  func.func @transform_17(%arg0: i32) -> (i32, i32, i32) {
    %c0_i32 = arith.constant 0 : i32
    %c0_i32_0 = arith.constant 0 : i32
    %c0_i32_1 = arith.constant 0 : i32
    return %arg0, %c0_i32, %c0_i32_0 : i32, i32, i32
  }
  func.func @transform_18(%arg0: i32) -> (i32, i32, i32) {
    %c0_i32 = arith.constant 0 : i32
    %c0_i32_0 = arith.constant 0 : i32
    %c0_i32_1 = arith.constant 0 : i32
    return %arg0, %c0_i32, %c0_i32_0 : i32, i32, i32
  }
  func.func @transform_19(%arg0: i32) -> (i32, i32, i32) {
    %c0_i32 = arith.constant 0 : i32
    %c0_i32_0 = arith.constant 0 : i32
    %c0_i32_1 = arith.constant 0 : i32
    return %arg0, %c0_i32, %c0_i32_0 : i32, i32, i32
  }
  func.func @transform_20(%arg0: i32) -> (i32, i32, i32) {
    %c0_i32 = arith.constant 0 : i32
    %c0_i32_0 = arith.constant 0 : i32
    %c0_i32_1 = arith.constant 0 : i32
    return %arg0, %c0_i32, %c0_i32_0 : i32, i32, i32
  }
  func.func @transform_21(%arg0: i32) -> (i32, i32, i32) {
    %c0_i32 = arith.constant 0 : i32
    %c0_i32_0 = arith.constant 0 : i32
    %c0_i32_1 = arith.constant 0 : i32
    return %arg0, %c0_i32, %c0_i32_0 : i32, i32, i32
  }
  func.func @transform_22(%arg0: i32) -> (i32, i32, i32) {
    %c0_i32 = arith.constant 0 : i32
    %c0_i32_0 = arith.constant 0 : i32
    %c0_i32_1 = arith.constant 0 : i32
    return %arg0, %c0_i32, %c0_i32_0 : i32, i32, i32
  }
  func.func @transform_23(%arg0: i32) -> (i32, i32, i32) {
    %c0_i32 = arith.constant 0 : i32
    %c0_i32_0 = arith.constant 0 : i32
    %c0_i32_1 = arith.constant 0 : i32
    return %arg0, %c0_i32, %c0_i32_0 : i32, i32, i32
  }
  func.func @transform_24(%arg0: i32) -> (i32, i32, i32) {
    %c0_i32 = arith.constant 0 : i32
    %c0_i32_0 = arith.constant 0 : i32
    %c0_i32_1 = arith.constant 0 : i32
    return %arg0, %c0_i32, %c0_i32_0 : i32, i32, i32
  }
  func.func @transform_25(%arg0: i32) -> (i32, i32) {
    %c0_i32 = arith.constant 0 : i32
    %c0_i32_0 = arith.constant 0 : i32
    %c0_i32_1 = arith.constant 0 : i32
    return %c0_i32, %c0_i32_0 : i32, i32
  }
}

module attributes {stable_mosaic.version = 11 : i64} {
  func.func @_loss_kernel(%arg0: i32, %arg1: memref<8x32xbf16, #tpu.memory_space<vmem>>, %arg2: memref<32x24xbf16, #tpu.memory_space<vmem>>, %arg3: memref<32x48xbf16, #tpu.memory_space<vmem>>, %arg4: memref<8x1xi32, #tpu.memory_space<vmem>>, %arg5: memref<8x1xi32, #tpu.memory_space<vmem>>, %arg6: memref<8x1xf32, #tpu.memory_space<vmem>>) attributes {dimension_semantics = [#tpu.dimension_semantics<parallel>], iteration_bounds = array<i64: 2>, scalar_prefetch = 0 : i64, scratch_operands = 0 : i64, tpu.core_type = #tpu.core_type<tc>, window_params = [{transform_indices = @transform_0, window_bounds = array<i64: 8, 32>}, {pipeline_mode = #tpu.pipeline_mode<synchronous>, transform_indices = @transform_1, window_bounds = array<i64: 32, 24>}, {pipeline_mode = #tpu.pipeline_mode<synchronous>, transform_indices = @transform_2, window_bounds = array<i64: 32, 48>}, {transform_indices = @transform_3, window_bounds = array<i64: 8, 1>}, {transform_indices = @transform_4, window_bounds = array<i64: 8, 1>}, {transform_indices = @transform_5, window_bounds = array<i64: 8, 1>}]} {
    %c0 = arith.constant 0 : index
    %c0_0 = arith.constant 0 : index
    %0 = vector.load %arg1[%c0, %c0_0] : memref<8x32xbf16, #tpu.memory_space<vmem>>, vector<8x32xbf16>
    %c0_1 = arith.constant 0 : index
    %c0_2 = arith.constant 0 : index
    %1 = vector.load %arg2[%c0_1, %c0_2] : memref<32x24xbf16, #tpu.memory_space<vmem>>, vector<32x24xbf16>
    %c0_3 = arith.constant 0 : index
    %c0_4 = arith.constant 0 : index
    %2 = vector.load %arg4[%c0_3, %c0_4] : memref<8x1xi32, #tpu.memory_space<vmem>>, vector<8x1xi32>
    %cst = arith.constant dense<0.000000e+00> : vector<8x24xf32>
    %3 = tpu.matmul %0, %1, %cst {dimension_numbers = #tpu.dot_dimension_numbers<[1], [0], [0], [1], [0, 0, 1, 1], [], []>} : vector<8x32xbf16>, vector<32x24xbf16>, vector<8x24xf32> -> vector<8x24xf32>
    %cst_5 = arith.constant dense<0xFF800000> : vector<8xf32>
    %4 = vector.multi_reduction <maximumf>, %3, %cst_5 [1] : vector<8x24xf32> to vector<8xf32>
    %5 = vector.shape_cast %4 : vector<8xf32> to vector<8x1xf32>
    %6 = vector.broadcast %5 : vector<8x1xf32> to vector<8x24xf32>
    %7 = arith.subf %3, %6 : vector<8x24xf32>
    %8 = math.exp %7 : vector<8x24xf32>
    %cst_6 = arith.constant dense<0.000000e+00> : vector<8xf32>
    %9 = vector.multi_reduction <add>, %8, %cst_6 [1] : vector<8x24xf32> to vector<8xf32>
    %10 = vector.shape_cast %9 : vector<8xf32> to vector<8x1xf32>
    %11 = math.log %10 : vector<8x1xf32>
    %12 = arith.addf %11, %5 : vector<8x1xf32>
    %13 = tpu.iota {dimensions = array<i32: 1>} : vector<8x24xi32>
    %14 = vector.broadcast %2 : vector<8x1xi32> to vector<8x24xi32>
    %15 = arith.cmpi eq, %13, %14 : vector<8x24xi32>
    %16 = vector.broadcast %12 : vector<8x1xf32> to vector<8x24xf32>
    %17 = arith.subf %3, %16 : vector<8x24xf32>
    %cst_7 = arith.constant 0.000000e+00 : f32
    %18 = vector.broadcast %cst_7 : f32 to vector<8x24xf32>
    %19 = arith.select %15, %17, %18 : vector<8x24xi1>, vector<8x24xf32>
    %cst_8 = arith.constant dense<0.000000e+00> : vector<8xf32>
    %20 = vector.multi_reduction <add>, %19, %cst_8 [1] : vector<8x24xf32> to vector<8xf32>
    %21 = vector.shape_cast %20 : vector<8xf32> to vector<8x1xf32>
    %c0_i32 = arith.constant 0 : i32
    %22 = vector.broadcast %c0_i32 : i32 to vector<8x1xi32>
    %23 = arith.cmpi ne, %2, %22 : vector<8x1xi32>
    %24 = arith.extui %23 : vector<8x1xi1> to vector<8x1xi32>
    %25 = arith.sitofp %24 : vector<8x1xi32> to vector<8x1xf32>
    %26 = arith.mulf %21, %25 : vector<8x1xf32>
    %c0_9 = arith.constant 0 : index
    %c0_10 = arith.constant 0 : index
    %27 = vector.load %arg3[%c0_9, %c0_10] : memref<32x48xbf16, #tpu.memory_space<vmem>>, vector<32x48xbf16>
    %c0_11 = arith.constant 0 : index
    %c0_12 = arith.constant 0 : index
    %28 = vector.load %arg5[%c0_11, %c0_12] : memref<8x1xi32, #tpu.memory_space<vmem>>, vector<8x1xi32>
    %cst_13 = arith.constant dense<0.000000e+00> : vector<8x48xf32>
    %29 = tpu.matmul %0, %27, %cst_13 {dimension_numbers = #tpu.dot_dimension_numbers<[1], [0], [0], [1], [0, 0, 1, 1], [], []>} : vector<8x32xbf16>, vector<32x48xbf16>, vector<8x48xf32> -> vector<8x48xf32>
    %cst_14 = arith.constant dense<0xFF800000> : vector<8xf32>
    %30 = vector.multi_reduction <maximumf>, %29, %cst_14 [1] : vector<8x48xf32> to vector<8xf32>
    %31 = vector.shape_cast %30 : vector<8xf32> to vector<8x1xf32>
    %32 = vector.broadcast %31 : vector<8x1xf32> to vector<8x48xf32>
    %33 = arith.subf %29, %32 : vector<8x48xf32>
    %34 = math.exp %33 : vector<8x48xf32>
    %cst_15 = arith.constant dense<0.000000e+00> : vector<8xf32>
    %35 = vector.multi_reduction <add>, %34, %cst_15 [1] : vector<8x48xf32> to vector<8xf32>
    %36 = vector.shape_cast %35 : vector<8xf32> to vector<8x1xf32>
    %37 = math.log %36 : vector<8x1xf32>
    %38 = arith.addf %37, %31 : vector<8x1xf32>
    %39 = tpu.iota {dimensions = array<i32: 1>} : vector<8x48xi32>
    %40 = vector.broadcast %28 : vector<8x1xi32> to vector<8x48xi32>
    %41 = arith.cmpi eq, %39, %40 : vector<8x48xi32>
    %42 = vector.broadcast %38 : vector<8x1xf32> to vector<8x48xf32>
    %43 = arith.subf %29, %42 : vector<8x48xf32>
    %cst_16 = arith.constant 0.000000e+00 : f32
    %44 = vector.broadcast %cst_16 : f32 to vector<8x48xf32>
    %45 = arith.select %41, %43, %44 : vector<8x48xi1>, vector<8x48xf32>
    %cst_17 = arith.constant dense<0.000000e+00> : vector<8xf32>
    %46 = vector.multi_reduction <add>, %45, %cst_17 [1] : vector<8x48xf32> to vector<8xf32>
    %47 = vector.shape_cast %46 : vector<8xf32> to vector<8x1xf32>
    %c0_i32_18 = arith.constant 0 : i32
    %48 = vector.broadcast %c0_i32_18 : i32 to vector<8x1xi32>
    %49 = arith.cmpi ne, %28, %48 : vector<8x1xi32>
    %50 = arith.extui %49 : vector<8x1xi1> to vector<8x1xi32>
    %51 = arith.sitofp %50 : vector<8x1xi32> to vector<8x1xf32>
    %52 = arith.mulf %47, %51 : vector<8x1xf32>
    %53 = arith.addf %26, %52 : vector<8x1xf32>
    %c0_19 = arith.constant 0 : index
    %c0_20 = arith.constant 0 : index
    %54 = vector.load %arg6[%c0_19, %c0_20] : memref<8x1xf32, #tpu.memory_space<vmem>>, vector<8x1xf32>
    tpu.vector_store %arg6[%c0_19, %c0_20], %53 {strides = array<i32>} : memref<8x1xf32, #tpu.memory_space<vmem>>, vector<8x1xf32>,
    return
  }
  func.func @transform_0(%arg0: i32) -> (i32, i32) {
    %c0_i32 = arith.constant 0 : i32
    %c0_i32_0 = arith.constant 0 : i32
    return %arg0, %c0_i32 : i32, i32
  }
  func.func @transform_1(%arg0: i32) -> (i32, i32) {
    %c0_i32 = arith.constant 0 : i32
    %c0_i32_0 = arith.constant 0 : i32
    %c0_i32_1 = arith.constant 0 : i32
    return %c0_i32, %c0_i32_0 : i32, i32
  }
  func.func @transform_2(%arg0: i32) -> (i32, i32) {
    %c0_i32 = arith.constant 0 : i32
    %c0_i32_0 = arith.constant 0 : i32
    %c0_i32_1 = arith.constant 0 : i32
    return %c0_i32, %c0_i32_0 : i32, i32
  }
  func.func @transform_3(%arg0: i32) -> (i32, i32) {
    %c0_i32 = arith.constant 0 : i32
    %c0_i32_0 = arith.constant 0 : i32
    return %arg0, %c0_i32 : i32, i32
  }
  func.func @transform_4(%arg0: i32) -> (i32, i32) {
    %c0_i32 = arith.constant 0 : i32
    %c0_i32_0 = arith.constant 0 : i32
    return %arg0, %c0_i32 : i32, i32
  }
  func.func @transform_5(%arg0: i32) -> (i32, i32) {
    %c0_i32 = arith.constant 0 : i32
    %c0_i32_0 = arith.constant 0 : i32
    return %arg0, %c0_i32 : i32, i32
  }
}

</mosaic_0001>

<bundles_post_ra>
// kernel: trans_vanilla_forward.5
= control target key start
LH: loop header
LB: loop body
LE: loop exit
PB: predicated region body
PF: predicated region fallthrough
CT: control target
= control target key end

     0   :  { %s615_s18 = smov 0   ;;  %s669_s0 = inlined_call_operand.vmem [shape: bf16[16,32], index: 0, kind: input, shape index: {}]   ;;  %s670_s1 = inlined_call_operand.vmem [shape: bf16[32,24], index: 1, kind: input, shape index: {}]   ;;  %s671_s2 = inlined_call_operand.vmem [shape: bf16[32,48], index: 2, kind: input, shape index: {}]   ;;  %s672_s3 = inlined_call_operand.vmem [shape: s32[16,1], index: 3, kind: input, shape index: {}]   ;;  %s673_s4 = inlined_call_operand.vmem [shape: s32[16,1], index: 4, kind: input, shape index: {}]   ;;  %s674_s5 = inlined_call_operand.vmem [shape: f32[16,1], index: 5, kind: output, shape index: {}]  }
   0x1 LB: > { %s508_s19 = sadd.s32 4294967295, %s580_s18   ;;  %p512_p0 = scmp.ge.s32.totalorder %s580_s18, 1  ;;  %s580_s18 = sphi %s615_s18, %s15_s18  }
   0x2   : > { %p204_p1 = scmp.lt.s32.totalorder %s580_s18, 3 }
   0x4   : > { %p205_p2 = pnand %p512_p0, %p204_p1 }
   0x5   : > { %v562_v0 = vld [vmem:[%s670_s1] sm:$0xff] (!%p205_p2)   ;;  %v582_v1 = vmov (!%p205_p2), 0.0   ;;  %v564_v3 = vld [vmem:[%s670_s1 + $0x8] sm:$0xff] (!%p205_p2)   ;;  %vm583_vm0 = vmmov (!%p205_p2), 0   ;;  %p238_p3 = scmp.lt.s32.totalorder (!%p205_p2), %s508_s19, 1  ;;  %vm273_vm1 = vcmask (!%p205_p2), 261120   ;;  %v330_v31 = vlaneseq (!%p205_p2) }
   0x6   : > { %208 = sbr.rel (%p205_p2) target bundleno = 700 (0x2bc), region = 40  ;;  %533 = vmatprep.subr.bf16.mxu0 (!%p205_p2), %v582_v1  ;;  %541 = vmatprep.subr.bf16.mxu1 (!%p205_p2), %v582_v1  ;;  %v563_v2 = vld [vmem:[%s671_s2] sm:$0xff] (!%p205_p2)   ;;  %v565_v4 = vld [vmem:[%s671_s2 + $0x8] sm:$0xff] (!%p205_p2)   ;;  %vm317_vm2 = vcmask (!%p205_p2), 195584   ;;  %vm402_vm3 = vcmask (!%p205_p2), 392192   ;;  %v584_v16 = vmov (!%p205_p2), 0  }
   0x7   : > { %534 = vmatpush3.bf16.msra.mxu0 (!%p205_p2), %v562_v0  ;;  %537 = vmatprep.mubr.msk.bf16.mxu0 (!%p205_p2), %vm583_vm0, %v582_v1  ;;  %v331_v33 = vand.u32 (!%p205_p2), 127, %v330_v31  ;;  %vm429_vm8 = vcmask (!%p205_p2), 7168  }
   0x8   : > { %542 = vmatpush3.bf16.msra.mxu1 (!%p205_p2), %v563_v2  ;;  %535 = vmatprep.subr.bf16.mxu0 (!%p205_p2), %v582_v1 }
   0x9   : > { %543 = vmatprep.subr.bf16.mxu1 (!%p205_p2), %v582_v1  ;;  %545 = vmatprep.mubr.msk.bf16.mxu1 (!%p205_p2), %vm583_vm0, %v582_v1 }
   0xa   : > { %560 = vset.pattern.permute.xlu0 (!%p205_p2), %v584_v16  ;;  %561 = vset.pattern.permute.xlu1 (!%p205_p2), %v584_v16 }
   0xb   : > { %536 = vmatpush3.bf16.msra.mxu0 (!%p205_p2), %v564_v3 }
   0xc   : > { %544 = vmatpush3.bf16.msra.mxu1 (!%p205_p2), %v565_v4 }
   0xd   : > { %s676_s19 = smov (!%p238_p3, %s508_s19), 1 }
   0xe   : > { %s513_s28 = sshll.u32 %s676_s19, 2  ;;  %s646_s7 = sshll.u32 %s676_s19, 3 }
   0xf   : > { %s241_s6 = scalar_lea.vmem %s669_s0, %s513_s28  ;;  %s245_s10 = scalar_lea.vmem %s672_s3, %s646_s7 }
  0x10   : > { %v255_v5 = vld [vmem:[%s241_s6] sm:$0xf]  ;;  %s249_s13 = scalar_lea.vmem %s673_s4, %s646_s7  ;;  %s253_s16 = scalar_lea.vmem %s674_s5, %s646_s7 }
  0x11   : > { %538 = vmatmul.mubr.msk.bf16.vlgmr.msra.gmra.mrb[0].mxu0 %vm273_vm1, %v255_v5  ;;  %546 = vmatmul.mubr.msk.bf16.vlgmr.msra.gmra.mrb[0].mxu1 %vm273_vm1, %v255_v5  ;;  %v260_v17 = vld [vmem:[%s245_s10] sm:$0xff] }
  0x12   : > { %v349_v28 = vld [vmem:[%s249_s13] sm:$0xff]  ;;  %vm341_vm6 = vcmp.ne.s32.totalorder %v260_v17, 0 }
  0x13   : > { %vm424_vm7 = vcmp.ne.s32.totalorder %v349_v28, 0  ;;  %v520_v47 = vsel %vm341_vm6, 1.0, %v582_v1 }
  0x14   : > { %v524_v49 = vsel %vm424_vm7, 1.0, %v582_v1 }
  0xe4   : > { %v311_v6 = vpop.f32.mrb[0].mxu0  ;;  %v396_v8 = vpop.f32.mrb[0].mxu1 }
  0xe5   : > { %v539_v7 = vpop.f32.mrb[1].mxu0  ;;  %v318_v9 = vsel %vm317_vm2, %v311_v6, -inf  ;;  %v547_v10 = vpop.f32.mrb[1].mxu1  ;;  %v403_v14 = vsel %vm402_vm3, %v396_v8, -inf }
  0xe6   : > { %319 = vmax.xlane.f32.xlu0 %v318_v9  ;;  %v314_v11 = vpop.f32.mrb[2].mxu0  ;;  %v399_v13 = vpop.f32.mrb[2].mxu1 }
  0xe7   : > { %v540_v12 = vpop.f32.mrb[3].mxu0  ;;  %v548_v15 = vpop.f32.mrb[3].mxu1 }
  0xea   : > { %404 = vmax.xlane.f32.xlu0 %v403_v14 }
 0x100   : > { %333 = vperm.xlu0 %560, %v260_v17  }
 0x173   : > { %v320_v18 = vpop.xlane.xlu0 %319 }
 0x174   : > { %v321_v19 = vsub.f32 %v311_v6, %v320_v18 }
 0x176   : > { %v322_v20 = vmul.f32 1.442695, %v321_v19 }
 0x177   : > { %v405_v21 = vpop.xlane.xlu0 %404 }
 0x178   : > { %566 = vpow2.f32 %v322_v20  ;;  %v406_v22 = vsub.f32 %v396_v8, %v405_v21 }
 0x17a   : > { %v407_v23 = vmul.f32 1.442695, %v406_v22 }
 0x17c   : > { %568 = vpow2.f32 %v407_v23 }
 0x17f   : > { %v334_v35 = vpop.permute.xlu0 %333 }
 0x180   : > { %vm335_vm4 = vcmp.eq.s32.totalorder %v331_v33, %v334_v35 }
 0x182   : > { %v567_v24 = vpop.eup %566 }
 0x183   : > { %v324_v25 = vsel %vm317_vm2, %v567_v24, 0.0 }
 0x184   : > { %325 = vadd.xlane.f32.xlu1 %v324_v25 }
 0x186   : > { %v569_v26 = vpop.eup %568 }
 0x187   : > { %v409_v27 = vsel %vm402_vm3, %v569_v26, 0.0 }
 0x188   : > { %410 = vadd.xlane.f32.xlu1 %v409_v27 }
 0x199   : > { %416 = vperm.xlu1 %561, %v349_v28  }
 0x211   : > { %v326_v29 = vpop.xlane.xlu1 %325 }
 0x212   : > { %570 = vlog2.f32 %v326_v29 }
 0x215   : > { %v411_v30 = vpop.xlane.xlu1 %410 }
 0x216   : > { %572 = vlog2.f32 %v411_v30 }
 0x219   : > { %v417_v39 = vpop.permute.xlu1 %416 }
 0x21a   : > { %vm418_vm5 = vcmp.eq.s32.totalorder %v331_v33, %v417_v39 }
 0x21c   : > { %v571_v32 = vpop.eup %570 }
 0x21d   : > { %v328_v34 = vmul.f32 0.6931472, %v571_v32 }
 0x21f   : > { %v329_v36 = vadd.f32 %v328_v34, %v320_v18 }
 0x220   : > { %v573_v37 = vpop.eup %572 }
 0x221   : > { %v413_v38 = vmul.f32 0.6931472, %v573_v37  ;;  %v336_v40 = vsub.f32 %v311_v6, %v329_v36 }
 0x223   : > { %v414_v41 = vadd.f32 %v413_v38, %v405_v21  ;;  %v337_v42 = vsel %vm335_vm4, %v336_v40, 0.0 }
 0x224   : > { %v338_v43 = vsel %vm317_vm2, %v337_v42, 0.0 }
 0x225   : > { %339 = vadd.xlane.f32.xlu1 %v338_v43  ;;  %v419_v44 = vsub.f32 %v396_v8, %v414_v41 }
 0x227   : > { %v420_v45 = vsel %vm418_vm5, %v419_v44, 0.0 }
 0x228   : > { %v421_v46 = vsel %vm402_vm3, %v420_v45, 0.0 }
 0x229   : > { %422 = vadd.xlane.f32.xlu0 %v421_v46 }
 0x2b2   : > { %v340_v48 = vpop.xlane.xlu1 %339 }
 0x2b3   : > { %v344_v51 = vmul.f32 %v520_v47, %v340_v48 }
 0x2b6   : > { %v423_v50 = vpop.xlane.xlu0 %422 }
 0x2b7   : > { %v427_v52 = vmul.f32 %v524_v49, %v423_v50 }
 0x2b9   : > { %v428_v53 = vadd.f32 %v427_v52, %v344_v51 }
 0x2bb   : > { %430 = vst.msk [vmem:[%s253_s16] sm:$0xff] %vm429_vm8, %v428_v53 }
 0x2bc PF: > { %s15_s18 = sadd.s32 1, %s580_s18  }
 0x2bd   : > { %p12_p4 = scmp.ge.s32.totalorder %s15_s18, 4  }
 0x2bf   :  { %14 = sbr.rel (!%p12_p4) target bundleno = 1 (0x1), region = 76 }

// kernel: trans_vanilla_forward.3
= control target key start
LH: loop header
LB: loop body
LE: loop exit
PB: predicated region body
PF: predicated region fallthrough
CT: control target
= control target key end

     0   :  { %s3120_s29 = smov 0   ;;  %s3513_s0 = inlined_call_operand.vmem [shape: f32[16,32], index: 0, kind: input, shape index: {}]   ;;  %s3514_s1 = inlined_call_operand.vmem [shape: f32[16,16], index: 1, kind: input, shape index: {}]   ;;  %s3515_s2 = inlined_call_operand.vmem [shape: bf16[6,12,32,8], index: 2, kind: input, shape index: {}]   ;;  %s3516_s3 = inlined_call_operand.vmem [shape: f32[6,12,1,8], index: 3, kind: input, shape index: {}]   ;;  %s3517_s4 = inlined_call_operand.vmem [shape: bf16[6,4,8,32], index: 4, kind: input, shape index: {}]   ;;  %s3518_s5 = inlined_call_operand.vmem [shape: f32[6,1,32], index: 5, kind: input, shape index: {}]   ;;  %s3519_s6 = inlined_call_operand.vmem [shape: f32[6,1,32], index: 6, kind: input, shape index: {}]   ;;  %s3520_s7 = inlined_call_operand.vmem [shape: f32[6,1,32], index: 7, kind: input, shape index: {}]   ;;  %s3521_s8 = inlined_call_operand.vmem [shape: bf16[6,32,64], index: 8, kind: input, shape index: {}]   ;;  %s3522_s9 = inlined_call_operand.vmem [shape: f32[6,1,64], index: 9, kind: input, shape index: {}]   ;;  %s3523_s10 = inlined_call_operand.vmem [shape: bf16[6,64,32], index: 10, kind: input, shape index: {}]   ;;  %s3524_s11 = inlined_call_operand.vmem [shape: f32[6,1,32], index: 11, kind: input, shape index: {}]   ;;  %s3525_s12 = inlined_call_operand.vmem [shape: f32[6,1,32], index: 12, kind: input, shape index: {}]   ;;  %s3526_s13 = inlined_call_operand.vmem [shape: f32[6,1,32], index: 13, kind: input, shape index: {}]   ;;  %s3527_s14 = inlined_call_operand.vmem [shape: bf16[16,32], index: 14, kind: output, shape index: {}]  }
   0x1   :  { %3533 = sst [smem:[#allocation5_spill]] %s3513_s0 }
   0x2   :  { %3534 = sst [smem:[#allocation6_spill]] %s3514_s1 }
   0x3   :  { %3535 = sst [smem:[#allocation7_spill]] %s3515_s2 }
   0x4   :  { %3536 = sst [smem:[#allocation8_spill]] %s3517_s4 }
   0x5   :  { %3537 = sst [smem:[#allocation9_spill]] %s3527_s14 }
   0x6 LB: > { %3538 = sst [smem:[#allocation3_spill]] %s3041_s29  ;;  %s3126_s30 = sadd.s32 4294967295, %s3041_s29   ;;  %s3041_s29 = sphi %s3120_s29, %s24_s29  }
   0x7   : > { %p2545_p0 = scmp.ge.s32.totalorder %s3041_s29, 1  ;;  %p502_p1 = scmp.lt.s32.totalorder %s3041_s29, 7 }
   0x9   : > { %p503_p2 = pnand %p2545_p0, %p502_p1 }
   0xb   : > { %506 = sbr.rel (%p503_p2) target bundleno = 5037 (0x13ad), region = 76 }
  0x12   : > { %p583_p3 = scmp.lt.s32.totalorder %s3126_s30, 5  ;;  %s3539_s4 = sld [smem:[#allocation8_spill]] }
  0x13   : > { %s3541_s2 = sld [smem:[#allocation7_spill]]  ;;  %p2553_p4 = scmp.ne.s32.totalorder %s3126_s30, 0 }
  0x14   : > { %s3132_s15 = scalar_select %p583_p3, %s3126_s30, 5 }
  0x15   : > { %vm635_vm0 = vcmask (!%p2553_p4), 261120  }
  0x16   : > { %s2953_s16 = smul.u32 192, %s3132_s15  ;;  %s2692_s17 = sshll.u32 %s3132_s15, 4 }
  0x17   : > { %s2954_s18 = smul.u32 12, %s3132_s15  ;;  %s3167_s23 = scalar_lea.vmem %s3521_s8, %s2692_s17 }
  0x18   : > { %s3140_s21 = scalar_lea.vmem %s3539_s4, %s2692_s17  ;;  %s613_s27 = scalar_lea.vmem %s3522_s9, %s3132_s15 }
  0x19   : > { %3540 = sst [smem:[#allocation4_spill]] %s3140_s21  ;;  %s3145_s24 = scalar_lea.vmem %s3541_s2, %s2953_s16 }
  0x1a   : > { %s3154_s14 = scalar_lea.vmem %s3516_s3, %s2954_s18  ;;  %s2694_s29 = sshll.u32 %s3132_s15, 5 }
  0x1b   : > { %s3177_s2 = scalar_lea.vmem %s3523_s10, %s2694_s29  ;;  %s621_s4 = scalar_lea.vmem %s3524_s11, %s3132_s15 }
  0x1c   : > { %s624_s22 = scalar_lea.vmem %s3525_s12, %s3132_s15  ;;  %s627_s19 = scalar_lea.vmem %s3526_s13, %s3132_s15 }
  0x1d   : > { %632 = sbr.rel (%p2553_p4) target bundleno = 37 (0x25), region = 80  ;;  %s3542_s18 = sld [smem:[#allocation5_spill]] (!%p2553_p4) }
  0x23   : > { %v633_v0 = vld [vmem:[%s3542_s18] sm:$0xff] (!%p2553_p4)  ;;  %v634_v1 = vld [vmem:[%s3542_s18 + $0x8] sm:$0xff] (!%p2553_p4) }
  0x24   : > { %636 = vst.msk [vmem:[#allocation2] sm:$0xff] %vm635_vm0, %v633_v0  ;;  %637 = vst.msk [vmem:[#allocation2 + $0x8] sm:$0xff] %vm635_vm0, %v634_v1 }
  0x25 PF: > { %v2965_v2 = vld [vmem:[%s3145_s24 + $0x40] sm:$0xff]   ;;  %v3043_v3 = vmov 0.0   ;;  %v2966_v4 = vld [vmem:[%s3145_s24 + $0x48] sm:$0xff]   ;;  %vm3044_vm1 = vmmov 0   ;;  %vm668_vm2 = vcmask 261120   ;;  %vm847_vm3 = vcmask 64512   ;;  %s3545_s25 = scalar_lea.vmem %s3518_s5, %s3132_s15  ;;  %s3546_s29 = scalar_lea.vmem %s3519_s6, %s3132_s15 }
  0x26   : > { %2773 = vmatprep.subr.bf16.mxu1 %v3043_v3  ;;  %2765 = vmatprep.subr.bf16.mxu0 %v3043_v3  ;;  %v2967_v5 = vld [vmem:[%s3145_s24] sm:$0xff]   ;;  %v2968_v8 = vld [vmem:[%s3145_s24 + $0x8] sm:$0xff]   ;;  %s3543_s1 = sld [smem:[#allocation6_spill]]  ;;  %vm899_vm5 = vcmask 130048   ;;  %v2973_v59 = vld [vmem:[%s3145_s24 + $0x10] sm:$0xff]   ;;  %s3544_s16 = sld [smem:[#allocation4_spill]] }
  0x27   : > { %2774 = vmatpush3.bf16.msra.mxu1 %v2965_v2  ;;  %2777 = vmatprep.mubr.msk.bf16.mxu1 %vm3044_vm1, %v3043_v3  ;;  %v2563_v10 = vld [vmem:[%s3154_s14 + $0x4] ss:$0 sm:$0xff]  ;;  %v2554_v12 = vld [vmem:[%s3154_s14] ss:$0 sm:$0xff]  ;;  %v2970_v28 = vld [vmem:[%s3145_s24 + $0x88] sm:$0xff]   ;;  %vm1295_vm7 = vcmask 1043456   ;;  %s3547_s0 = scalar_lea.vmem %s3520_s7, %s3132_s15 }
  0x28   : > { %2775 = vmatprep.subr.bf16.mxu1 %v3043_v3  ;;  %2769 = vmatprep.mubr.msk.bf16.mxu0 %vm3044_vm1, %v3043_v3  ;;  %v2969_v27 = vld [vmem:[%s3145_s24 + $0x80] sm:$0xff]   ;;  %v2572_v54 = vld [vmem:[%s3154_s14 + $0x8] ss:$0 sm:$0xff]  ;;  %v2974_v60 = vld [vmem:[%s3145_s24 + $0x18] sm:$0xff]   ;;  %vm2295_vm8 = vcmask 523264   ;;  %p2687_p5 = scmp.ne.s32.totalorder %s3126_s30, 5 }
  0x29   : > { %2766 = vmatpush3.bf16.msra.mxu0 %v2967_v5  ;;  %vm2400_vm9 = vcmask (!%p2687_p5), 257024  }
  0x2a   : > { %2767 = vmatprep.subr.bf16.mxu0 %v3043_v3 }
  0x2b   : > { %v3206_v6 = vld [vmem:[#allocation2] sm:$0xff]  ;;  %v3208_v7 = vld [vmem:[#allocation2 + $0x8] sm:$0xff]  ;;  %2776 = vmatpush3.bf16.msra.mxu1 %v2966_v4  ;;  %v2971_v4 = vld [vmem:[%s3145_s24 + $0x50] sm:$0xff]  }
  0x2c   : > { %v3215_v9 = vpack.c.bf16 %v3208_v7, %v3206_v6  ;;  %2789 = vmatprep.subr.bf16.mxu1 %v3043_v3  ;;  %v3246_v29 = vld [vmem:[%s3543_s1] sm:$0xff]  ;;  %v3251_v30 = vld [vmem:[%s3543_s1 + $0x8] sm:$0xff] }
  0x2d   : > { %2768 = vmatpush3.bf16.msra.mxu0 %v2968_v8  ;;  %vm643_vm4 = vcmp.gt.f32.partialorder %v3246_v29, 0.0  ;;  %vm644_vm6 = vcmp.gt.f32.partialorder %v3251_v30, 0.0  ;;  %v2972_v8 = vld [vmem:[%s3145_s24 + $0x58] sm:$0xff]  }
  0x2e   : > { %2778 = vmatmul.mubr.msk.bf16.vlgmr.msra.gmra.mrb[0].mxu1 %vm668_vm2, %v3215_v9  ;;  %2781 = vmatprep.subr.bf16.mxu0 %v3043_v3 }
  0x2f   : > { %2791 = vmatprep.mubr.msk.bf16.mxu1 %vm3044_vm1, %v3043_v3 }
  0x30   : > { %2770 = vmatmul.mubr.msk.bf16.vlgmr.msra.gmra.mrb[0].mxu0 %vm668_vm2, %v3215_v9 }
  0x31   : > { %2785 = vmatprep.mubr.msk.bf16.mxu0 %vm3044_vm1, %v3043_v3  ;;  %2782 = vmatpush3.bf16.msra.mxu0 %v2969_v27 }
  0x32   : > { %2783 = vmatprep.subr.bf16.mxu0 %v3043_v3 }
  0x35   : > { %2784 = vmatpush3.bf16.msra.mxu0 %v2970_v28 }
  0x36   : > { %2795 = vmatprep.subr.bf16.mxu0 %v3043_v3 }
  0x38   : > { %2786 = vmatmul.mubr.msk.bf16.vlgmr.msra.gmra.mrb[4].mxu0 %vm668_vm2, %v3215_v9 }
  0x39   : > { %2797 = vmatprep.mubr.msk.bf16.mxu0 %vm3044_vm1, %v3043_v3 }
 0x101   : > { %v772_v11 = vpop.f32.mrb[0].mxu1 }
 0x102   : > { %v2779_v13 = vpop.f32.mrb[1].mxu1  ;;  %v773_v16 = vadd.f32 %v2563_v10, %v772_v11 }
 0x103   : > { %v775_v14 = vpop.f32.mrb[2].mxu1  ;;  %v706_v15 = vpop.f32.mrb[0].mxu0 }
 0x104   : > { %v776_v17 = vadd.f32 %v2563_v10, %v775_v14  ;;  %v2780_v18 = vpop.f32.mrb[3].mxu1  ;;  %v707_v19 = vadd.f32 %v2554_v12, %v706_v15  ;;  %v2771_v20 = vpop.f32.mrb[1].mxu0  ;;  %v2583_v10 = vld [vmem:[%s3154_s14 + $0x1] ss:$0 sm:$0xff] }
 0x105   : > { %v709_v21 = vpop.f32.mrb[2].mxu0 }
 0x106   : > { %v846_v22 = vpack.c.bf16 %v776_v17, %v773_v16  ;;  %v710_v23 = vadd.f32 %v2554_v12, %v709_v21  ;;  %v2772_v24 = vpop.f32.mrb[3].mxu0 }
 0x108   : > { %v845_v25 = vpack.c.bf16 %v710_v23, %v707_v19  ;;  %v852_v26 = vsel %vm847_vm3, %v846_v22, 0  ;;  %v2592_v23 = vld [vmem:[%s3154_s14 + $0x5] ss:$0 sm:$0xff] }
 0x109   : > { %2790 = vmatpush3.bf16.xpose.msra.mxu1 %v852_v26 }
 0x10a   : > { %2801 = vmatprep.subr.bf16.mxu1 %v3043_v3 }
 0x10b   : > { %v838_v51 = vpop.f32.mrb[4].mxu0 }
 0x10c   : > { %v2787_v52 = vpop.f32.mrb[5].mxu0  ;;  %v839_v56 = vadd.f32 %v2572_v54, %v838_v51 }
 0x10d   : > { %v841_v53 = vpop.f32.mrb[6].mxu0 }
 0x10e   : > { %v2788_v55 = vpop.f32.mrb[7].mxu0  ;;  %v842_v57 = vadd.f32 %v2572_v54, %v841_v53 }
 0x110   : > { %2792 = vmatmul.mubr.msk.bf16.vlgmr.msra.gmra.mrb[4].mxu1 %vm847_vm3, %v845_v25  ;;  %v923_v58 = vpack.c.bf16 %v842_v57, %v839_v56 }
 0x111   : > { %2805 = vmatprep.mubr.msk.bf16.mxu1 %vm3044_vm1, %v3043_v3  ;;  %2802 = vmatpush3.bf16.msra.mxu1 %v2973_v59  ;;  %v2601_v59 = vld [vmem:[%s3154_s14 + $0x9] ss:$0 sm:$0xff] }
 0x112   : > { %2796 = vmatpush3.bf16.msra.mxu0 %v923_v58  ;;  %2803 = vmatprep.subr.bf16.mxu1 %v3043_v3 }
 0x113   : > { %2809 = vmatprep.subr.bf16.mxu0 %v3043_v3 }
 0x115   : > { %2804 = vmatpush3.bf16.msra.mxu1 %v2974_v60 }
 0x116   : > { %2817 = vmatprep.subr.bf16.mxu1 %v3043_v3 }
 0x118   : > { %2806 = vmatmul.mubr.msk.bf16.vlgmr.msra.gmra.mrb[8].mxu1 %vm668_vm2, %v3215_v9 }
 0x119   : > { %2821 = vmatprep.mubr.msk.bf16.mxu1 %vm3044_vm1, %v3043_v3 }
 0x1e3   : > { %v888_v31 = vpop.f32.mrb[4].mxu1 }
 0x1e4   : > { %v895_v32 = vmul.f32 0.35355338, %v888_v31  ;;  %v2793_v33 = vpop.f32.mrb[5].mxu1 }
 0x1e5   : > { %v891_v34 = vpop.f32.mrb[6].mxu1 }
 0x1e6   : > { %v896_v35 = vmul.f32 0.35355338, %v891_v34  ;;  %v2794_v36 = vpop.f32.mrb[7].mxu1  ;;  %v897_v37 = vsel %vm643_vm4, %v895_v32, -1e+09  ;;  %v2975_v34 = vld [vmem:[%s3145_s24 + $0x90] sm:$0xff]  }
 0x1e7   : > { %v900_v38 = vsel %vm899_vm5, %v897_v37, -inf  ;;  %2818 = vmatpush3.bf16.msra.mxu1 %v2975_v34 }
 0x1e8   : > { %901 = vmax.xlane.f32.xlu0 %v900_v38  ;;  %v898_v39 = vsel %vm644_vm6, %v896_v35, -1e+09  ;;  %v2976_v35 = vld [vmem:[%s3145_s24 + $0x98] sm:$0xff]   ;;  %2819 = vmatprep.subr.bf16.mxu1 %v3043_v3 }
 0x1e9   : > { %v903_v40 = vsel %vm899_vm5, %v898_v39, -inf }
 0x1eb   : > { %v1029_v11 = vpop.f32.mrb[8].mxu1  ;;  %2820 = vmatpush3.bf16.msra.mxu1 %v2976_v35 }
 0x1ec   : > { %904 = vmax.xlane.f32.xlu0 %v903_v40  ;;  %v1030_v12 = vadd.f32 %v2583_v10, %v1029_v11  ;;  %v2807_v13 = vpop.f32.mrb[9].mxu1  ;;  %2831 = vmatprep.subr.bf16.mxu1 %v3043_v3 }
 0x1ed   : > { %v1032_v14 = vpop.f32.mrb[10].mxu1 }
 0x1ee   : > { %v1033_v15 = vadd.f32 %v2583_v10, %v1032_v14  ;;  %v2808_v16 = vpop.f32.mrb[11].mxu1  ;;  %2822 = vmatmul.mubr.msk.bf16.vlgmr.msra.gmra.mrb[12].mxu1 %vm668_vm2, %v3215_v9  ;;  %v969_v10 = vld [vmem:[%s3544_s16] sm:$0xf] }
 0x1ef   : > { %2833 = vmatprep.mubr.msk.bf16.mxu1 %vm3044_vm1, %v3043_v3  ;;  %v1344_v14 = vsel %vm1295_vm7, %v969_v10, 0  ;;  %v2978_v16 = vld [vmem:[%s3145_s24 + $0x68] sm:$0xff]  }
 0x1f0   : > { %v1168_v17 = vpack.c.bf16 %v1033_v15, %v1030_v12  ;;  %v2977_v15 = vld [vmem:[%s3145_s24 + $0x60] sm:$0xff]  }
 0x275   : > { %v902_v41 = vpop.xlane.xlu0 %901 }
 0x276   : > { %v906_v42 = vsub.f32 %v897_v37, %v902_v41 }
 0x278   : > { %v908_v43 = vmul.f32 1.442695, %v906_v42 }
 0x279   : > { %v905_v44 = vpop.xlane.xlu0 %904 }
 0x27a   : > { %2995 = vpow2.f32 %v908_v43  ;;  %v907_v45 = vsub.f32 %v898_v39, %v905_v44 }
 0x27c   : > { %v910_v46 = vmul.f32 1.442695, %v907_v45 }
 0x27e   : > { %2997 = vpow2.f32 %v910_v46 }
 0x284   : > { %v2996_v47 = vpop.eup %2995 }
 0x285   : > { %v912_v48 = vsel %vm899_vm5, %v2996_v47, 0.0 }
 0x286   : > { %913 = vadd.xlane.f32.xlu1 %v912_v48 }
 0x288   : > { %v2998_v49 = vpop.eup %2997 }
 0x289   : > { %v915_v50 = vsel %vm899_vm5, %v2998_v49, 0.0 }
 0x28a   : > { %916 = vadd.xlane.f32.xlu1 %v915_v50 }
 0x2c1   : > { %v1161_v56 = vpop.f32.mrb[12].mxu1 }
 0x2c2   : > { %v2823_v57 = vpop.f32.mrb[13].mxu1 }
 0x2c3   : > { %v1164_v58 = vpop.f32.mrb[14].mxu1 }
 0x2c4   : > { %v2824_v60 = vpop.f32.mrb[15].mxu1 }
 0x313   : > { %v914_v61 = vpop.xlane.xlu1 %913 }
 0x314   : > { %2999 = vrcp.f32 %v914_v61  ;;  %v1162_v61 = vadd.f32 %v2601_v59, %v1161_v56 }
 0x317   : > { %v917_v62 = vpop.xlane.xlu1 %916 }
 0x318   : > { %3001 = vrcp.f32 %v917_v62  ;;  %v1165_v62 = vadd.f32 %v2601_v59, %v1164_v58 }
 0x31e   : > { %v3000_v63 = vpop.eup %2999 }
 0x31f   : > { %v919_v1 = vmul.f32 %v3000_v63, %v2996_v47  ;;  %v1244_v63 = vpack.c.bf16 %v1165_v62, %v1162_v61 }
 0x321   : > { %2832 = vmatpush3.bf16.msra.mxu1 %v1244_v63 }
 0x322   : > { %v3002_v0 = vpop.eup %3001  ;;  %2843 = vmatprep.subr.bf16.mxu1 %v3043_v3 }
 0x323   : > { %v921_v2 = vmul.f32 %v3002_v0, %v2998_v49  ;;  %v2607_v0 = vld [vmem:[%s3544_s16 + $0x4] sm:$0xf] }
 0x325   : > { %v922_v5 = vpack.c.bf16 %v921_v2, %v919_v1  ;;  %v1297_v1 = vsel %vm1295_vm7, %v2607_v0, 0 }
 0x327   : > { %2798 = vmatmul.mubr.msk.bf16.vlgmr.msra.gmra.mrb[8].mxu0 %vm899_vm5, %v922_v5 }
 0x328   : > { %2810 = vmatpush3.bf16.msra.mxu0 %v2971_v4  ;;  %2813 = vmatprep.mubr.msk.bf16.mxu0 %vm3044_vm1, %v3043_v3 }
 0x329   : > { %2811 = vmatprep.subr.bf16.mxu0 %v3043_v3 }
 0x32c   : > { %2812 = vmatpush3.bf16.msra.mxu0 %v2972_v8 }
 0x32d   : > { %2825 = vmatprep.subr.bf16.mxu0 %v3043_v3 }
 0x32f   : > { %2814 = vmatmul.mubr.msk.bf16.vlgmr.msra.gmra.mrb[12].mxu0 %vm668_vm2, %v3215_v9 }
 0x330   : > { %2827 = vmatprep.mubr.msk.bf16.mxu0 %vm3044_vm1, %v3043_v3 }
 0x3fa   : > { %v3285_v18 = vpop.f32.mrb[8].mxu0 }
 0x3fb   : > { %v2799_v19 = vpop.f32.mrb[9].mxu0 }
 0x3fc   : > { %v3287_v20 = vpop.f32.mrb[10].mxu0 }
 0x3fd   : > { %v968_v21 = vpack.c.bf16 %v3287_v20, %v3285_v18  ;;  %v2800_v22 = vpop.f32.mrb[11].mxu0  ;;  %v2979_v20 = vld [vmem:[%s3145_s24 + $0x20] sm:$0xff]  }
 0x402   : > { %v1095_v24 = vpop.f32.mrb[12].mxu0 }
 0x403   : > { %v2815_v25 = vpop.f32.mrb[13].mxu0  ;;  %v1096_v27 = vadd.f32 %v2592_v23, %v1095_v24 }
 0x404   : > { %v1098_v26 = vpop.f32.mrb[14].mxu0 }
 0x405   : > { %v1099_v28 = vadd.f32 %v2592_v23, %v1098_v26  ;;  %v2816_v31 = vpop.f32.mrb[15].mxu0  ;;  %v2980_v23 = vld [vmem:[%s3145_s24 + $0x28] sm:$0xff]  }
 0x407   : > { %v1169_v32 = vpack.c.bf16 %v1099_v28, %v1096_v27  ;;  %v2624_v28 = vld [vmem:[%s3154_s14 + $0x6] ss:$0 sm:$0xff] }
 0x409   : > { %v1174_v33 = vsel %vm847_vm3, %v1169_v32, 0 }
 0x40a   : > { %2826 = vmatpush3.bf16.xpose.msra.mxu0 %v1174_v33 }
 0x40b   : > { %2837 = vmatprep.subr.bf16.mxu0 %v3043_v3 }
 0x411   : > { %2828 = vmatmul.mubr.msk.bf16.vlgmr.msra.gmra.mrb[16].mxu0 %vm847_vm3, %v1168_v17 }
 0x412   : > { %2839 = vmatprep.mubr.msk.bf16.mxu0 %vm3044_vm1, %v3043_v3  ;;  %2838 = vmatpush3.bf16.msra.mxu0 %v1297_v1 }
 0x413   : > { %2849 = vmatprep.subr.bf16.mxu0 %v3043_v3 }
 0x4e4   : > { %v1210_v36 = vpop.f32.mrb[16].mxu0 }
 0x4e5   : > { %v1217_v37 = vmul.f32 0.35355338, %v1210_v36  ;;  %v2829_v38 = vpop.f32.mrb[17].mxu0 }
 0x4e6   : > { %v1213_v39 = vpop.f32.mrb[18].mxu0 }
 0x4e7   : > { %v1218_v40 = vmul.f32 0.35355338, %v1213_v39  ;;  %v2830_v41 = vpop.f32.mrb[19].mxu0  ;;  %v1219_v42 = vsel %vm643_vm4, %v1217_v37, -1e+09 }
 0x4e8   : > { %v1221_v43 = vsel %vm899_vm5, %v1219_v42, -inf }
 0x4e9   : > { %1222 = vmax.xlane.f32.xlu0 %v1221_v43  ;;  %v1220_v44 = vsel %vm644_vm6, %v1218_v40, -1e+09 }
 0x4ea   : > { %v1224_v45 = vsel %vm899_vm5, %v1220_v44, -inf }
 0x4eb   : > { %1225 = vmax.xlane.f32.xlu1 %v1224_v45  ;;  %v2615_v45 = vld [vmem:[%s3154_s14 + $0x2] ss:$0 sm:$0xff] }
 0x576   : > { %v1223_v46 = vpop.xlane.xlu0 %1222 }
 0x577   : > { %v1227_v47 = vsub.f32 %v1219_v42, %v1223_v46 }
 0x578   : > { %v1226_v48 = vpop.xlane.xlu1 %1225 }
 0x579   : > { %v1229_v49 = vmul.f32 1.442695, %v1227_v47  ;;  %v1228_v50 = vsub.f32 %v1220_v44, %v1226_v48 }
 0x57b   : > { %3003 = vpow2.f32 %v1229_v49  ;;  %v1231_v51 = vmul.f32 1.442695, %v1228_v50 }
 0x57d   : > { %3005 = vpow2.f32 %v1231_v51 }
 0x585   : > { %v3004_v52 = vpop.eup %3003 }
 0x586   : > { %v1233_v53 = vsel %vm899_vm5, %v3004_v52, 0.0 }
 0x587   : > { %v3006_v54 = vpop.eup %3005  ;;  %1234 = vadd.xlane.f32.xlu0 %v1233_v53  ;;  %v2981_v53 = vld [vmem:[%s3145_s24 + $0xa0] sm:$0xff]  }
 0x588   : > { %v1236_v55 = vsel %vm899_vm5, %v3006_v54, 0.0 }
 0x589   : > { %1237 = vadd.xlane.f32.xlu1 %v1236_v55 }
 0x614   : > { %v1235_v2 = vpop.xlane.xlu0 %1234 }
 0x615   : > { %3007 = vrcp.f32 %v1235_v2 }
 0x616   : > { %v1238_v4 = vpop.xlane.xlu1 %1237 }
 0x617   : > { %3009 = vrcp.f32 %v1238_v4 }
 0x61f   : > { %v3008_v5 = vpop.eup %3007 }
 0x620   : > { %v1240_v11 = vmul.f32 %v3008_v5, %v3004_v52 }
 0x621   : > { %v3010_v8 = vpop.eup %3009 }
 0x622   : > { %v1242_v12 = vmul.f32 %v3010_v8, %v3006_v54  ;;  %v2982_v54 = vld [vmem:[%s3145_s24 + $0xa8] sm:$0xff]  }
 0x624   : > { %v1243_v13 = vpack.c.bf16 %v1242_v12, %v1240_v11 }
 0x626   : > { %2834 = vmatmul.mubr.msk.bf16.vlgmr.msra.gmra.mrb[16].mxu1 %vm899_vm5, %v1243_v13 }
 0x627   : > { %2844 = vmatpush3.bf16.msra.mxu1 %v1344_v14  ;;  %2845 = vmatprep.mubr.msk.bf16.mxu1 %vm3044_vm1, %v3043_v3 }
 0x628   : > { %2857 = vmatprep.subr.bf16.mxu1 %v3043_v3 }
 0x62e   : > { %2846 = vmatmul.mubr.msk.bf16.vlgmr.msra.gmra.mrb[20].mxu1 %vm847_vm3, %v968_v21 }
 0x62f   : > { %2858 = vmatpush3.bf16.msra.mxu1 %v2977_v15  ;;  %2861 = vmatprep.mubr.msk.bf16.mxu1 %vm3044_vm1, %v3043_v3 }
 0x630   : > { %2859 = vmatprep.subr.bf16.mxu1 %v3043_v3 }
 0x633   : > { %2860 = vmatpush3.bf16.msra.mxu1 %v2978_v16 }
 0x634   : > { %2873 = vmatprep.subr.bf16.mxu1 %v3043_v3 }
 0x636   : > { %2862 = vmatmul.mubr.msk.bf16.vlgmr.msra.gmra.mrb[24].mxu1 %vm668_vm2, %v3215_v9 }
 0x637   : > { %2875 = vmatprep.mubr.msk.bf16.mxu1 %vm3044_vm1, %v3043_v3 }
 0x6f9   : > { %v1282_v17 = vpop.f32.mrb[16].mxu1 }
 0x6fa   : > { %v2835_v18 = vpop.f32.mrb[17].mxu1 }
 0x6fb   : > { %v1285_v19 = vpop.f32.mrb[18].mxu1  ;;  %v2633_v18 = vld [vmem:[%s3154_s14 + $0xa] ss:$0 sm:$0xff] }
 0x6fc   : > { %v1289_v21 = vpack.c.bf16 %v1285_v19, %v1282_v17  ;;  %v2836_v22 = vpop.f32.mrb[19].mxu1 }
 0x6fe   : > { %2840 = vmatmul.mubr.msk.bf16.vlgmr.msra.gmra.mrb[20].mxu0 %vm847_vm3, %v1289_v21 }
 0x6ff   : > { %2850 = vmatpush3.bf16.msra.mxu0 %v2979_v20  ;;  %2853 = vmatprep.mubr.msk.bf16.mxu0 %vm3044_vm1, %v3043_v3 }
 0x700   : > { %2851 = vmatprep.subr.bf16.mxu0 %v3043_v3 }
 0x701   : > { %v1380_v24 = vpop.f32.mrb[20].mxu1 }
 0x702   : > { %v2847_v25 = vpop.f32.mrb[21].mxu1 }
 0x703   : > { %v1383_v26 = vpop.f32.mrb[22].mxu1  ;;  %2852 = vmatpush3.bf16.msra.mxu0 %v2980_v23  ;;  %v2639_v23 = vld [vmem:[%s3544_s16 + $0x8] sm:$0xf] }
 0x704   : > { %v2848_v27 = vpop.f32.mrb[23].mxu1  ;;  %2865 = vmatprep.subr.bf16.mxu0 %v3043_v3 }
 0x706   : > { %2854 = vmatmul.mubr.msk.bf16.vlgmr.msra.gmra.mrb[24].mxu0 %vm668_vm2, %v3215_v9 }
 0x707   : > { %2869 = vmatprep.mubr.msk.bf16.mxu0 %vm3044_vm1, %v3043_v3  ;;  %2866 = vmatpush3.bf16.msra.mxu0 %v2981_v53 }
 0x708   : > { %2867 = vmatprep.subr.bf16.mxu0 %v3043_v3 }
 0x709   : > { %v1512_v31 = vpop.f32.mrb[24].mxu1 }
 0x70a   : > { %v1513_v32 = vadd.f32 %v2624_v28, %v1512_v31  ;;  %v2863_v33 = vpop.f32.mrb[25].mxu1 }
 0x70b   : > { %v1515_v34 = vpop.f32.mrb[26].mxu1  ;;  %2868 = vmatpush3.bf16.msra.mxu0 %v2982_v54 }
 0x70c   : > { %v1516_v35 = vadd.f32 %v2624_v28, %v1515_v34  ;;  %v2864_v36 = vpop.f32.mrb[27].mxu1  ;;  %2879 = vmatprep.subr.bf16.mxu0 %v3043_v3  ;;  %v2985_v34 = vld [vmem:[%s3145_s24 + $0x30] sm:$0xff]  }
 0x70e   : > { %v1586_v37 = vpack.c.bf16 %v1516_v35, %v1513_v32  ;;  %2870 = vmatmul.mubr.msk.bf16.vlgmr.msra.gmra.mrb[28].mxu0 %vm668_vm2, %v3215_v9  ;;  %v2986_v35 = vld [vmem:[%s3145_s24 + $0x38] sm:$0xff]  }
 0x70f   : > { %2881 = vmatprep.mubr.msk.bf16.mxu0 %vm3044_vm1, %v3043_v3 }
 0x710   : > { %v1591_v38 = vsel %vm847_vm3, %v1586_v37, 0 }
 0x711   : > { %2874 = vmatpush3.bf16.xpose.msra.mxu1 %v1591_v38 }
 0x712   : > { %2885 = vmatprep.subr.bf16.mxu1 %v3043_v3 }
 0x7d1   : > { %v1333_v39 = vpop.f32.mrb[20].mxu0 }
 0x7d2   : > { %v3352_v40 = vadd.f32 %v1380_v24, %v1333_v39  ;;  %v2841_v41 = vpop.f32.mrb[21].mxu0  ;;  %v1713_v24 = vsel %vm1295_vm7, %v2639_v23, 0  ;;  %v2983_v39 = vld [vmem:[%s3145_s24 + $0x70] sm:$0xff]  }
 0x7d3   : > { %v1336_v42 = vpop.f32.mrb[22].mxu0 }
 0x7d4   : > { %v3354_v43 = vadd.f32 %v1383_v26, %v1336_v42  ;;  %v2842_v44 = vpop.f32.mrb[23].mxu0 }
 0x7d5   : > { %v2984_v44 = vld [vmem:[%s3145_s24 + $0x78] sm:$0xff]  }
 0x7d9   : > { %v1446_v46 = vpop.f32.mrb[24].mxu0 }
 0x7da   : > { %v2855_v47 = vpop.f32.mrb[25].mxu0  ;;  %v1447_v49 = vadd.f32 %v2615_v45, %v1446_v46 }
 0x7db   : > { %v1449_v48 = vpop.f32.mrb[26].mxu0 }
 0x7dc   : > { %v1450_v50 = vadd.f32 %v2615_v45, %v1449_v48  ;;  %v2856_v51 = vpop.f32.mrb[27].mxu0  ;;  %v2646_v45 = vld [vmem:[%s3154_s14 + $0x3] ss:$0 sm:$0xff] }
 0x7de   : > { %v1585_v52 = vpack.c.bf16 %v1450_v50, %v1447_v49 }
 0x7e0   : > { %2876 = vmatmul.mubr.msk.bf16.vlgmr.msra.gmra.mrb[28].mxu1 %vm847_vm3, %v1585_v52 }
 0x7e1   : > { %2887 = vmatprep.mubr.msk.bf16.mxu1 %vm3044_vm1, %v3043_v3  ;;  %v1578_v15 = vpop.f32.mrb[28].mxu0  ;;  %2886 = vmatpush3.bf16.msra.mxu1 %v1713_v24 }
 0x7e2   : > { %v2871_v16 = vpop.f32.mrb[29].mxu0  ;;  %v1579_v20 = vadd.f32 %v2633_v18, %v1578_v15  ;;  %2899 = vmatprep.subr.bf16.mxu1 %v3043_v3 }
 0x7e3   : > { %v1581_v17 = vpop.f32.mrb[30].mxu0 }
 0x7e4   : > { %v2872_v19 = vpop.f32.mrb[31].mxu0  ;;  %v1582_v21 = vadd.f32 %v2633_v18, %v1581_v17 }
 0x7e6   : > { %v1661_v22 = vpack.c.bf16 %v1582_v21, %v1579_v20 }
 0x7e8   : > { %2880 = vmatpush3.bf16.msra.mxu0 %v1661_v22 }
 0x7e9   : > { %2891 = vmatprep.subr.bf16.mxu0 %v3043_v3 }
 0x8b3   : > { %v1627_v55 = vpop.f32.mrb[28].mxu1 }
 0x8b4   : > { %v1634_v56 = vmul.f32 0.35355338, %v1627_v55  ;;  %v2877_v57 = vpop.f32.mrb[29].mxu1 }
 0x8b5   : > { %v1630_v58 = vpop.f32.mrb[30].mxu1 }
 0x8b6   : > { %v1635_v59 = vmul.f32 0.35355338, %v1630_v58  ;;  %v2878_v60 = vpop.f32.mrb[31].mxu1  ;;  %v1636_v61 = vsel %vm643_vm4, %v1634_v56, -1e+09 }
 0x8b7   : > { %v1638_v62 = vsel %vm899_vm5, %v1636_v61, -inf }
 0x8b8   : > { %1639 = vmax.xlane.f32.xlu0 %v1638_v62  ;;  %v1637_v63 = vsel %vm644_vm6, %v1635_v59, -1e+09  ;;  %v2655_v59 = vld [vmem:[%s3154_s14 + $0x7] ss:$0 sm:$0xff] }
 0x8b9   : > { %v1641_v0 = vsel %vm899_vm5, %v1637_v63, -inf }
 0x8ba   : > { %1642 = vmax.xlane.f32.xlu1 %v1641_v0 }
 0x945   : > { %v1640_v1 = vpop.xlane.xlu0 %1639 }
 0x946   : > { %v1644_v2 = vsub.f32 %v1636_v61, %v1640_v1 }
 0x947   : > { %v1643_v4 = vpop.xlane.xlu1 %1642 }
 0x948   : > { %v1646_v5 = vmul.f32 1.442695, %v1644_v2  ;;  %v1645_v8 = vsub.f32 %v1637_v63, %v1643_v4 }
 0x94a   : > { %3011 = vpow2.f32 %v1646_v5  ;;  %v1648_v10 = vmul.f32 1.442695, %v1645_v8 }
 0x94c   : > { %3013 = vpow2.f32 %v1648_v10 }
 0x954   : > { %v3012_v11 = vpop.eup %3011 }
 0x955   : > { %v1650_v12 = vsel %vm899_vm5, %v3012_v11, 0.0 }
 0x956   : > { %v3014_v13 = vpop.eup %3013  ;;  %1651 = vadd.xlane.f32.xlu0 %v1650_v12 }
 0x957   : > { %v1653_v14 = vsel %vm899_vm5, %v3014_v13, 0.0 }
 0x958   : > { %1654 = vadd.xlane.f32.xlu1 %v1653_v14 }
 0x9e3   : > { %v1652_v25 = vpop.xlane.xlu0 %1651 }
 0x9e4   : > { %3015 = vrcp.f32 %v1652_v25 }
 0x9e5   : > { %v1655_v26 = vpop.xlane.xlu1 %1654 }
 0x9e6   : > { %3017 = vrcp.f32 %v1655_v26 }
 0x9ee   : > { %v3016_v27 = vpop.eup %3015 }
 0x9ef   : > { %v1657_v31 = vmul.f32 %v3016_v27, %v3012_v11 }
 0x9f0   : > { %v3018_v28 = vpop.eup %3017 }
 0x9f1   : > { %v1659_v32 = vmul.f32 %v3018_v28, %v3014_v13  ;;  %v2664_v28 = vld [vmem:[%s3154_s14 + $0xb] ss:$0 sm:$0xff] }
 0x9f3   : > { %v1660_v33 = vpack.c.bf16 %v1659_v32, %v1657_v31 }
 0x9f5   : > { %2882 = vmatmul.mubr.msk.bf16.vlgmr.msra.gmra.mrb[32].mxu0 %vm899_vm5, %v1660_v33 }
 0x9f6   : > { %2895 = vmatprep.mubr.msk.bf16.mxu0 %vm3044_vm1, %v3043_v3  ;;  %2892 = vmatpush3.bf16.msra.mxu0 %v2985_v34 }
 0x9f7   : > { %2893 = vmatprep.subr.bf16.mxu0 %v3043_v3 }
 0x9fa   : > { %2894 = vmatpush3.bf16.msra.mxu0 %v2986_v35  ;;  %v2670_v35 = vld [vmem:[%s3544_s16 + $0xc] sm:$0xf] }
 0x9fb   : > { %2907 = vmatprep.subr.bf16.mxu0 %v3043_v3 }
 0x9fd   : > { %2896 = vmatmul.mubr.msk.bf16.vlgmr.msra.gmra.mrb[36].mxu0 %vm668_vm2, %v3215_v9 }
 0x9fe   : > { %2911 = vmatprep.mubr.msk.bf16.mxu0 %vm3044_vm1, %v3043_v3 }
 0xac8   : > { %v1699_v36 = vpop.f32.mrb[32].mxu0 }
 0xac9   : > { %v2883_v37 = vpop.f32.mrb[33].mxu0 }
 0xaca   : > { %v1702_v38 = vpop.f32.mrb[34].mxu0 }
 0xacb   : > { %v1706_v41 = vpack.c.bf16 %v1702_v38, %v1699_v36  ;;  %v2884_v42 = vpop.f32.mrb[35].mxu0  ;;  %v2084_v36 = vsel %vm1295_vm7, %v2670_v35, 0 }
 0xacd   : > { %2888 = vmatmul.mubr.msk.bf16.vlgmr.msra.gmra.mrb[32].mxu1 %vm847_vm3, %v1706_v41 }
 0xace   : > { %2900 = vmatpush3.bf16.msra.mxu1 %v2983_v39  ;;  %2903 = vmatprep.mubr.msk.bf16.mxu1 %vm3044_vm1, %v3043_v3 }
 0xacf   : > { %2901 = vmatprep.subr.bf16.mxu1 %v3043_v3 }
 0xad0   : > { %v1817_v46 = vpop.f32.mrb[36].mxu0 }
 0xad1   : > { %v1818_v47 = vadd.f32 %v2646_v45, %v1817_v46  ;;  %v2897_v48 = vpop.f32.mrb[37].mxu0 }
 0xad2   : > { %2902 = vmatpush3.bf16.msra.mxu1 %v2984_v44  ;;  %v1820_v49 = vpop.f32.mrb[38].mxu0 }
 0xad3   : > { %2915 = vmatprep.subr.bf16.mxu1 %v3043_v3  ;;  %v1821_v50 = vadd.f32 %v2646_v45, %v1820_v49  ;;  %v2898_v51 = vpop.f32.mrb[39].mxu0 }
 0xad5   : > { %2904 = vmatmul.mubr.msk.bf16.vlgmr.msra.gmra.mrb[36].mxu1 %vm668_vm2, %v3215_v9  ;;  %v1956_v52 = vpack.c.bf16 %v1821_v50, %v1818_v47 }
 0xad6   : > { %2917 = vmatprep.mubr.msk.bf16.mxu1 %vm3044_vm1, %v3043_v3 }
 0xba0   : > { %v1749_v53 = vpop.f32.mrb[32].mxu1 }
 0xba1   : > { %v3405_v54 = vadd.f32 %v1749_v53, %v3352_v40  ;;  %v2889_v55 = vpop.f32.mrb[33].mxu1  ;;  %v2987_v40 = vld [vmem:[%s3145_s24 + $0xb0] sm:$0xff]  }
 0xba2   : > { %v1752_v56 = vpop.f32.mrb[34].mxu1  ;;  %2908 = vmatpush3.bf16.msra.mxu0 %v2987_v40 }
 0xba3   : > { %v3408_v57 = vadd.f32 %v1752_v56, %v3354_v43  ;;  %v2890_v58 = vpop.f32.mrb[35].mxu1  ;;  %v2988_v43 = vld [vmem:[%s3145_s24 + $0xb8] sm:$0xff]   ;;  %2909 = vmatprep.subr.bf16.mxu0 %v3043_v3 }
 0xba6   : > { %2910 = vmatpush3.bf16.msra.mxu0 %v2988_v43 }
 0xba7   : > { %2921 = vmatprep.subr.bf16.mxu0 %v3043_v3 }
 0xba8   : > { %v1883_v60 = vpop.f32.mrb[36].mxu1 }
 0xba9   : > { %v2905_v61 = vpop.f32.mrb[37].mxu1  ;;  %v1884_v63 = vadd.f32 %v2655_v59, %v1883_v60  ;;  %2912 = vmatmul.mubr.msk.bf16.vlgmr.msra.gmra.mrb[40].mxu0 %vm668_vm2, %v3215_v9 }
 0xbaa   : > { %v1886_v62 = vpop.f32.mrb[38].mxu1  ;;  %2923 = vmatprep.mubr.msk.bf16.mxu0 %vm3044_vm1, %v3043_v3 }
 0xbab   : > { %v1887_v0 = vadd.f32 %v2655_v59, %v1886_v62  ;;  %v2906_v1 = vpop.f32.mrb[39].mxu1 }
 0xbad   : > { %v1957_v2 = vpack.c.bf16 %v1887_v0, %v1884_v63 }
 0xbaf   : > { %v1962_v4 = vsel %vm847_vm3, %v1957_v2, 0 }
 0xbb0   : > { %2916 = vmatpush3.bf16.xpose.msra.mxu1 %v1962_v4 }
 0xbb1   : > { %2927 = vmatprep.subr.bf16.mxu1 %v3043_v3 }
 0xbb7   : > { %2918 = vmatmul.mubr.msk.bf16.vlgmr.msra.gmra.mrb[40].mxu1 %vm847_vm3, %v1956_v52  ;;  %v2672_v52 = vld [vmem:[%s3545_s25] ss:$0 sm:$0xff] }
 0xbb8   : > { %2929 = vmatprep.mubr.msk.bf16.mxu1 %vm3044_vm1, %v3043_v3  ;;  %2928 = vmatpush3.bf16.msra.mxu1 %v2084_v36 }
 0xbb9   : > { %2941 = vmatprep.subr.bf16.mxu1 %v3043_v3 }
 0xc7c   : > { %v1949_v25 = vpop.f32.mrb[40].mxu0 }
 0xc7d   : > { %v2913_v26 = vpop.f32.mrb[41].mxu0  ;;  %v1950_v32 = vadd.f32 %v2664_v28, %v1949_v25 }
 0xc7e   : > { %v1952_v27 = vpop.f32.mrb[42].mxu0 }
 0xc7f   : > { %v2914_v31 = vpop.f32.mrb[43].mxu0  ;;  %v1953_v33 = vadd.f32 %v2664_v28, %v1952_v27  ;;  %v2993_v28 = vld [vmem:[%s3177_s2 + $0x10] sm:$0xff]  }
 0xc80   : > { %v2994_v31 = vld [vmem:[%s3177_s2 + $0x18] sm:$0xff]  }
 0xc81   : > { %v2032_v34 = vpack.c.bf16 %v1953_v33, %v1950_v32  ;;  %v2675_v32 = vld [vmem:[%s613_s27] ss:$0 sm:$0xff] }
 0xc83   : > { %2922 = vmatpush3.bf16.msra.mxu0 %v2032_v34 }
 0xc84   : > { %2933 = vmatprep.subr.bf16.mxu0 %v3043_v3 }
 0xc8a   : > { %v1998_v5 = vpop.f32.mrb[40].mxu1 }
 0xc8b   : > { %v2005_v8 = vmul.f32 0.35355338, %v1998_v5  ;;  %v2919_v10 = vpop.f32.mrb[41].mxu1 }
 0xc8c   : > { %v2001_v11 = vpop.f32.mrb[42].mxu1  ;;  %v2989_v10 = vld [vmem:[%s3167_s23] sm:$0xff]  }
 0xc8d   : > { %v2006_v12 = vmul.f32 0.35355338, %v2001_v11  ;;  %v2920_v13 = vpop.f32.mrb[43].mxu1  ;;  %v2007_v14 = vsel %vm643_vm4, %v2005_v8, -1e+09  ;;  %v2990_v11 = vld [vmem:[%s3167_s23 + $0x8] sm:$0xff]  }
 0xc8e   : > { %v2009_v15 = vsel %vm899_vm5, %v2007_v14, -inf  ;;  %v2992_v13 = vld [vmem:[%s3177_s2 + $0x8] sm:$0xff]   ;;  %s3548_s23 = sld [smem:[#allocation9_spill]] (!%p2687_p5) }
 0xc8f   : > { %2010 = vmax.xlane.f32.xlu0 %v2009_v15  ;;  %v2008_v16 = vsel %vm644_vm6, %v2006_v12, -1e+09  ;;  %v2991_v12 = vld [vmem:[%s3177_s2] sm:$0xff]  }
 0xc90   : > { %v2012_v9 = vsel %vm899_vm5, %v2008_v16, -inf }
 0xc91   : > { %2013 = vmax.xlane.f32.xlu1 %v2012_v9 }
 0xd1c   : > { %v2011_v17 = vpop.xlane.xlu0 %2010 }
 0xd1d   : > { %v2015_v18 = vsub.f32 %v2007_v14, %v2011_v17 }
 0xd1e   : > { %v2014_v19 = vpop.xlane.xlu1 %2013 }
 0xd1f   : > { %v2017_v20 = vmul.f32 1.442695, %v2015_v18  ;;  %v2016_v21 = vsub.f32 %v2008_v16, %v2014_v19 }
 0xd21   : > { %3019 = vpow2.f32 %v2017_v20  ;;  %v2019_v22 = vmul.f32 1.442695, %v2016_v21  ;;  %v2673_v20 = vld [vmem:[%s3546_s29] ss:$0 sm:$0xff] }
 0xd23   : > { %3021 = vpow2.f32 %v2019_v22 }
 0xd2b   : > { %v3020_v29 = vpop.eup %3019 }
 0xd2c   : > { %v2021_v23 = vsel %vm899_vm5, %v3020_v29, 0.0 }
 0xd2d   : > { %v3022_v24 = vpop.eup %3021  ;;  %2022 = vadd.xlane.f32.xlu0 %v2021_v23 }
 0xd2e   : > { %v2024_v30 = vsel %vm899_vm5, %v3022_v24, 0.0 }
 0xd2f   : > { %2025 = vadd.xlane.f32.xlu1 %v2024_v30 }
 0xdba   : > { %v2023_v37 = vpop.xlane.xlu0 %2022 }
 0xdbb   : > { %3023 = vrcp.f32 %v2023_v37 }
 0xdbc   : > { %v2026_v38 = vpop.xlane.xlu1 %2025 }
 0xdbd   : > { %3025 = vrcp.f32 %v2026_v38 }
 0xdc5   : > { %v3024_v39 = vpop.eup %3023 }
 0xdc6   : > { %v2028_v42 = vmul.f32 %v3024_v39, %v3020_v29 }
 0xdc7   : > { %v3026_v41 = vpop.eup %3025 }
 0xdc8   : > { %v2030_v44 = vmul.f32 %v3026_v41, %v3022_v24  ;;  %v2674_v24 = vld [vmem:[%s3547_s0] ss:$0 sm:$0xff] }
 0xdca   : > { %v2031_v45 = vpack.c.bf16 %v2030_v44, %v2028_v42 }
 0xdcc   : > { %2924 = vmatmul.mubr.msk.bf16.vlgmr.msra.gmra.mrb[44].mxu0 %vm899_vm5, %v2031_v45 }
 0xdcd   : > { %2937 = vmatprep.mubr.msk.bf16.mxu0 %vm3044_vm1, %v3043_v3  ;;  %2934 = vmatpush3.bf16.msra.mxu0 %v2989_v10  ;;  %v2686_v10 = vld [vmem:[%s627_s19] ss:$0 sm:$0xff] }
 0xdce   : > { %2935 = vmatprep.subr.bf16.mxu0 %v3043_v3 }
 0xdd1   : > { %2936 = vmatpush3.bf16.msra.mxu0 %v2990_v11 }
 0xe9f   : > { %v2070_v46 = vpop.f32.mrb[44].mxu0 }
 0xea0   : > { %v2925_v47 = vpop.f32.mrb[45].mxu0 }
 0xea1   : > { %v2073_v48 = vpop.f32.mrb[46].mxu0 }
 0xea2   : > { %v2077_v49 = vpack.c.bf16 %v2073_v48, %v2070_v46  ;;  %v2926_v50 = vpop.f32.mrb[47].mxu0 }
 0xea4   : > { %2930 = vmatmul.mubr.msk.bf16.vlgmr.msra.gmra.mrb[44].mxu1 %vm847_vm3, %v2077_v49 }
 0xea5   : > { %2949 = vmatprep.mubr.msk.bf16.mxu1 %vm3044_vm1, %v3043_v3  ;;  %2942 = vmatpush3.bf16.msra.mxu1 %v2991_v12 }
 0xea6   : > { %2943 = vmatprep.subr.bf16.mxu1 %v3043_v3 }
 0xea9   : > { %2944 = vmatpush3.bf16.msra.mxu1 %v2992_v13 }
 0xeaa   : > { %2945 = vmatprep.subr.bf16.mxu1 %v3043_v3 }
 0xead   : > { %2946 = vmatpush3.bf16.msra.mxu1 %v2993_v28 }
 0xeae   : > { %2947 = vmatprep.subr.bf16.mxu1 %v3043_v3  ;;  %v2679_v3 = vld [vmem:[%s621_s4] ss:$0 sm:$0xff] }
 0xeb1   : > { %2948 = vmatpush3.bf16.msra.mxu1 %v2994_v31 }
 0xf77   : > { %v2120_v51 = vpop.f32.mrb[44].mxu1 }
 0xf78   : > { %v2127_v53 = vadd.f32 %v2120_v51, %v3405_v54  ;;  %v2931_v55 = vpop.f32.mrb[45].mxu1 }
 0xf79   : > { %v2123_v56 = vpop.f32.mrb[46].mxu1 }
 0xf7a   : > { %v2136_v58 = vadd.f32 %v2672_v52, %v2127_v53  ;;  %v2128_v59 = vadd.f32 %v2123_v56, %v3408_v57  ;;  %v2932_v60 = vpop.f32.mrb[47].mxu1 }
 0xf7c   : > { %v2137_v61 = vadd.f32 %v2672_v52, %v2128_v59  ;;  %v2138_v62 = vadd.f32 %v2136_v58, %v3206_v6 }
 0xf7e   : > { %v2142_v63 = vsel %vm668_vm2, %v2138_v62, 0.0  ;;  %v2139_v0 = vadd.f32 %v2137_v61, %v3208_v7 }
 0xf7f   : > { %2143 = vadd.xlane.f32.xlu0 %v2142_v63 }
 0xf80   : > { %v2145_v1 = vsel %vm668_vm2, %v2139_v0, 0.0 }
 0xf81   : > { %2146 = vadd.xlane.f32.xlu1 %v2145_v1 }
0x100c   : > { %v2144_v54 = vpop.xlane.xlu0 %2143 }
0x100d   : > { %v2149_v2 = vmul.f32 0.03125, %v2144_v54 }
0x100e   : > { %v2147_v4 = vpop.xlane.xlu1 %2146 }
0x100f   : > { %v2151_v40 = vsub.f32 %v2138_v62, %v2149_v2  ;;  %v2150_v57 = vmul.f32 0.03125, %v2147_v4 }
0x1011   : > { %v2152_v43 = vsub.f32 %v2139_v0, %v2150_v57  ;;  %v2153_v5 = vmul.f32 %v2151_v40, %v2151_v40 }
0x1013   : > { %v2155_v6 = vsel %vm668_vm2, %v2153_v5, 0.0  ;;  %v2154_v8 = vmul.f32 %v2152_v43, %v2152_v43 }
0x1014   : > { %2156 = vadd.xlane.f32.xlu0 %v2155_v6  ;;  %v2685_v6 = vld [vmem:[%s624_s22] ss:$0 sm:$0xff] }
0x1015   : > { %v2158_v7 = vsel %vm668_vm2, %v2154_v8, 0.0 }
0x1016   : > { %2159 = vadd.xlane.f32.xlu1 %v2158_v7 }
0x10a1   : > { %v2157_v14 = vpop.xlane.xlu0 %2156 }
0x10a2   : > { %v2161_v15 = vmul.f32 0.03125, %v2157_v14 }
0x10a3   : > { %v2160_v16 = vpop.xlane.xlu1 %2159 }
0x10a4   : > { %v2163_v9 = vadd.f32 1e-05, %v2161_v15  ;;  %v2162_v17 = vmul.f32 0.03125, %v2160_v16 }
0x10a6   : > { %3027 = vrsqrt.f32 %v2163_v9  ;;  %v2164_v18 = vadd.f32 1e-05, %v2162_v17 }
0x10a8   : > { %3029 = vrsqrt.f32 %v2164_v18 }
0x10b0   : > { %v3028_v19 = vpop.eup %3027 }
0x10b1   : > { %v2167_v21 = vmul.f32 %v3028_v19, %v2151_v40 }
0x10b2   : > { %v3030_v22 = vpop.eup %3029 }
0x10b3   : > { %v2175_v29 = vmul.f32 %v2673_v20, %v2167_v21  ;;  %v2168_v23 = vmul.f32 %v3030_v22, %v2152_v43 }
0x10b5   : > { %v2176_v30 = vmul.f32 %v2673_v20, %v2168_v23  ;;  %v2183_v25 = vadd.f32 %v2674_v24, %v2175_v29 }
0x10b7   : > { %v2184_v26 = vadd.f32 %v2674_v24, %v2176_v30 }
0x10b9   : > { %v2185_v27 = vpack.c.bf16 %v2184_v26, %v2183_v25 }
0x10bb   : > { %2938 = vmatmul.mubr.msk.bf16.vlgmr.msra.gmra.mrb[48].mxu0 %vm668_vm2, %v2185_v27 }
0x118e   : > { %v2246_v33 = vpop.f32.mrb[48].mxu0 }
0x118f   : > { %v2247_v34 = vadd.f32 %v2675_v32, %v2246_v33  ;;  %v2939_v35 = vpop.f32.mrb[49].mxu0 }
0x1190   : > { %v2249_v36 = vpop.f32.mrb[50].mxu0 }
0x1191   : > { %v2250_v37 = vadd.f32 %v2675_v32, %v2249_v36  ;;  %v2940_v38 = vpop.f32.mrb[51].mxu0  ;;  %v2253_v39 = vmax.f32 %v2247_v34, 0.0 }
0x1193   : > { %v2254_v41 = vmax.f32 %v2250_v37, 0.0 }
0x1195   : > { %v2255_v42 = vpack.c.bf16 %v2254_v41, %v2253_v39 }
0x1197   : > { %2950 = vmatmul.mubr.msk.bf16.vlgmr.msra.gmra.mrb[48].mxu1 %vm2295_vm8, %v2255_v42 }
0x126a   : > { %v2333_v44 = vpop.f32.mrb[48].mxu1 }
0x126b   : > { %v2334_v45 = vadd.f32 %v2679_v3, %v2333_v44  ;;  %v2951_v46 = vpop.f32.mrb[49].mxu1 }
0x126c   : > { %v2336_v47 = vpop.f32.mrb[50].mxu1 }
0x126d   : > { %v2337_v48 = vadd.f32 %v2679_v3, %v2336_v47  ;;  %v2952_v49 = vpop.f32.mrb[51].mxu1  ;;  %v2340_v50 = vadd.f32 %v2334_v45, %v2183_v25 }
0x126f   : > { %v2344_v51 = vsel %vm668_vm2, %v2340_v50, 0.0  ;;  %v2341_v52 = vadd.f32 %v2337_v48, %v2184_v26 }
0x1270   : > { %2345 = vadd.xlane.f32.xlu0 %v2344_v51 }
0x1271   : > { %v2347_v53 = vsel %vm668_vm2, %v2341_v52, 0.0 }
0x1272   : > { %2348 = vadd.xlane.f32.xlu1 %v2347_v53 }
0x12fd   : > { %v2346_v55 = vpop.xlane.xlu0 %2345 }
0x12fe   : > { %v2350_v56 = vmul.f32 0.03125, %v2346_v55 }
0x12ff   : > { %v2349_v58 = vpop.xlane.xlu1 %2348 }
0x1300   : > { %v2352_v59 = vsub.f32 %v2340_v50, %v2350_v56  ;;  %v2351_v60 = vmul.f32 0.03125, %v2349_v58 }
0x1302   : > { %v2353_v61 = vsub.f32 %v2341_v52, %v2351_v60  ;;  %v2354_v62 = vmul.f32 %v2352_v59, %v2352_v59 }
0x1304   : > { %v2356_v63 = vsel %vm668_vm2, %v2354_v62, 0.0  ;;  %v2355_v0 = vmul.f32 %v2353_v61, %v2353_v61 }
0x1305   : > { %2357 = vadd.xlane.f32.xlu0 %v2356_v63 }
0x1306   : > { %v2359_v1 = vsel %vm668_vm2, %v2355_v0, 0.0 }
0x1307   : > { %2360 = vadd.xlane.f32.xlu1 %v2359_v1 }
0x1392   : > { %v2358_v54 = vpop.xlane.xlu0 %2357 }
0x1393   : > { %v2362_v2 = vmul.f32 0.03125, %v2358_v54 }
0x1394   : > { %v2361_v4 = vpop.xlane.xlu1 %2360 }
0x1395   : > { %v2364_v40 = vadd.f32 1e-05, %v2362_v2  ;;  %v2363_v57 = vmul.f32 0.03125, %v2361_v4 }
0x1397   : > { %3031 = vrsqrt.f32 %v2364_v40  ;;  %v2365_v43 = vadd.f32 1e-05, %v2363_v57 }
0x1399   : > { %3033 = vrsqrt.f32 %v2365_v43 }
0x13a1   : > { %v3032_v5 = vpop.eup %3031 }
0x13a2   : > { %v2368_v8 = vmul.f32 %v3032_v5, %v2352_v59 }
0x13a3   : > { %v3034_v7 = vpop.eup %3033 }
0x13a4   : > { %v2376_v11 = vmul.f32 %v2685_v6, %v2368_v8  ;;  %v2369_v12 = vmul.f32 %v3034_v7, %v2353_v61  ;;  %2391 = sbr.rel (%p2687_p5) target bundleno = 5037 (0x13ad), region = 84 }
0x13a6   : > { %v2384_v13 = vadd.f32 %v2686_v10, %v2376_v11  ;;  %v2377_v14 = vmul.f32 %v2685_v6, %v2369_v12 }
0x13a8   : > { %2386 = vst.msk [vmem:[#allocation2] sm:$0xff] %vm668_vm2, %v2384_v13  ;;  %v2385_v15 = vadd.f32 %v2686_v10, %v2377_v14  ;;  %v2695_v16 = vpack.c.bf16 (!%p2687_p5), %v2384_v13, %v2384_v13 }
0x13aa   : > { %2387 = vst.msk [vmem:[#allocation2 + $0x8] sm:$0xff] %vm668_vm2, %v2385_v15  ;;  %v2696_v9 = vpack.c.bf16 (!%p2687_p5), %v2385_v15, %v2385_v15 }
0x13ab   : > { %2401 = vst.msk [vmem:[%s3548_s23] sm:$0xf] %vm2400_vm9, %v2695_v16 }
0x13ac   : > { %2402 = vst.msk [vmem:[%s3548_s23 + $0x4] sm:$0xf] %vm2400_vm9, %v2696_v9 }
0x13ad PF: > { %s3549_s26 = sld [smem:[#allocation3_spill]] }
0x13b3   : > { %s24_s29 = sadd.s32 1, %s3549_s26  }
0x13b4   : > { %p21_p6 = scmp.ge.s32.totalorder %s24_s29, 8  }
0x13b6   :  { %23 = sbr.rel (!%p21_p6) target bundleno = 6 (0x6), region = 168 }

// kernel: trans_vanilla_forward.4
= control target key start
LH: loop header
LB: loop body
LE: loop exit
PB: predicated region body
PF: predicated region fallthrough
CT: control target
= control target key end

     0   :  { %s5776_s29 = smov 0   ;;  %s6484_s0 = inlined_call_operand.vmem [shape: bf16[16,64], index: 0, kind: input, shape index: {}]   ;;  %s6485_s1 = inlined_call_operand.vmem [shape: bf16[16,32], index: 1, kind: input, shape index: {}]   ;;  %s6486_s2 = inlined_call_operand.vmem [shape: f32[16,16], index: 2, kind: input, shape index: {}]   ;;  %s6487_s3 = inlined_call_operand.vmem [shape: f32[16,16], index: 3, kind: input, shape index: {}]   ;;  %s6488_s4 = inlined_call_operand.vmem [shape: bf16[64,32], index: 4, kind: input, shape index: {}]   ;;  %s6489_s5 = inlined_call_operand.vmem [shape: bf16[6,12,32,8], index: 5, kind: input, shape index: {}]   ;;  %s6490_s6 = inlined_call_operand.vmem [shape: f32[6,12,1,8], index: 6, kind: input, shape index: {}]   ;;  %s6491_s7 = inlined_call_operand.vmem [shape: bf16[6,4,8,32], index: 7, kind: input, shape index: {}]   ;;  %s6492_s8 = inlined_call_operand.vmem [shape: f32[6,1,32], index: 8, kind: input, shape index: {}]   ;;  %s6493_s9 = inlined_call_operand.vmem [shape: f32[6,1,32], index: 9, kind: input, shape index: {}]   ;;  %s6494_s10 = inlined_call_operand.vmem [shape: f32[6,1,32], index: 10, kind: input, shape index: {}]   ;;  %s6495_s11 = inlined_call_operand.vmem [shape: bf16[6,4,32,8], index: 11, kind: input, shape index: {}]   ;;  %s6496_s12 = inlined_call_operand.vmem [shape: f32[6,4,1,8], index: 12, kind: input, shape index: {}]   ;;  %s6497_s13 = inlined_call_operand.vmem [shape: bf16[6,8,32,8], index: 13, kind: input, shape index: {}]   ;;  %s6498_s14 = inlined_call_operand.vmem [shape: f32[6,8,1,8], index: 14, kind: input, shape index: {}]   ;;  %s6499_s15 = inlined_call_operand.vmem [shape: bf16[6,4,8,32], index: 15, kind: input, shape index: {}]   ;;  %s6500_s16 = inlined_call_operand.vmem [shape: f32[6,1,32], index: 16, kind: input, shape index: {}]   ;;  %s6501_s17 = inlined_call_operand.vmem [shape: f32[6,1,32], index: 17, kind: input, shape index: {}]   ;;  %s6502_s18 = inlined_call_operand.vmem [shape: f32[6,1,32], index: 18, kind: input, shape index: {}]   ;;  %s6503_s19 = inlined_call_operand.vmem [shape: bf16[6,32,64], index: 19, kind: input, shape index: {}]   ;;  %s6504_s20 = inlined_call_operand.vmem [shape: f32[6,1,64], index: 20, kind: input, shape index: {}]   ;;  %s6505_s21 = inlined_call_operand.vmem [shape: bf16[6,64,32], index: 21, kind: input, shape index: {}]   ;;  %s6506_s22 = inlined_call_operand.vmem [shape: f32[6,1,32], index: 22, kind: input, shape index: {}]   ;;  %s6507_s23 = inlined_call_operand.vmem [shape: f32[6,1,32], index: 23, kind: input, shape index: {}]   ;;  %s6508_s24 = inlined_call_operand.vmem [shape: f32[6,1,32], index: 24, kind: input, shape index: {}]   ;;  %s6509_s25 = inlined_call_operand.vmem [shape: bf16[16,32], index: 25, kind: output, shape index: {}]  }
   0x1   :  { %6517 = sst [smem:[#allocation6_spill]] %s6484_s0 }
   0x2   :  { %6518 = sst [smem:[#allocation7_spill]] %s6485_s1 }
   0x3   :  { %6519 = sst [smem:[#allocation8_spill]] %s6486_s2 }
   0x4   :  { %6520 = sst [smem:[#allocation9_spill]] %s6487_s3 }
   0x5   :  { %6521 = sst [smem:[#allocation10_spill]] %s6488_s4 }
   0x6   :  { %6522 = sst [smem:[#allocation11_spill]] %s6489_s5 }
   0x7   :  { %6523 = sst [smem:[#allocation12_spill]] %s6490_s6 }
   0x8   :  { %6524 = sst [smem:[#allocation13_spill]] %s6491_s7 }
   0x9   :  { %6525 = sst [smem:[#allocation14_spill]] %s6492_s8 }
   0xa   :  { %6526 = sst [smem:[#allocation15_spill]] %s6493_s9 }
   0xb   :  { %6527 = sst [smem:[#allocation16_spill]] %s6495_s11 }
   0xc   :  { %6528 = sst [smem:[#allocation17_spill]] %s6496_s12 }
   0xd   :  { %6529 = sst [smem:[#allocation18_spill]] %s6497_s13 }
   0xe   :  { %6530 = sst [smem:[#allocation19_spill]] %s6498_s14 }
   0xf   :  { %6531 = sst [smem:[#allocation20_spill]] %s6499_s15 }
  0x10   :  { %6532 = sst [smem:[#allocation21_spill]] %s6500_s16 }
  0x11   :  { %6533 = sst [smem:[#allocation22_spill]] %s6501_s17 }
  0x12   :  { %6534 = sst [smem:[#allocation23_spill]] %s6502_s18 }
  0x13   :  { %6535 = sst [smem:[#allocation24_spill]] %s6503_s19 }
  0x14   :  { %6536 = sst [smem:[#allocation25_spill]] %s6504_s20 }
  0x15   :  { %6537 = sst [smem:[#allocation26_spill]] %s6505_s21 }
  0x16   :  { %6538 = sst [smem:[#allocation27_spill]] %s6506_s22 }
  0x17   :  { %6539 = sst [smem:[#allocation28_spill]] %s6507_s23 }
  0x18   :  { %6540 = sst [smem:[#allocation29_spill]] %s6508_s24 }
  0x19   :  { %6541 = sst [smem:[#allocation30_spill]] %s6509_s25 }
  0x1a LB: > { %6542 = sst [smem:[#allocation3_spill]] %s5640_s29  ;;  %s5782_s2 = sadd.s32 4294967295, %s5640_s29   ;;  %s5640_s29 = sphi %s5776_s29, %s35_s29  }
  0x1b   : > { %6543 = sst [smem:[#allocation4_spill]] %s5782_s2  ;;  %p4695_p0 = scmp.ge.s32.totalorder %s5640_s29, 1 }
  0x1c   : > { %p849_p1 = scmp.lt.s32.totalorder %s5640_s29, 7 }
  0x1e   : > { %p850_p2 = pnand %p4695_p0, %p849_p1 }
  0x20   : > { %853 = sbr.rel (%p850_p2) target bundleno = 9525 (0x2535), region = 120 }
  0x27   : > { %p984_p3 = scmp.lt.s32.totalorder %s5782_s2, 5  ;;  %s6544_s8 = sld [smem:[#allocation13_spill]] }
  0x28   : > { %s6546_s9 = sld [smem:[#allocation11_spill]]  ;;  %s6548_s22 = sld [smem:[#allocation12_spill]] }
  0x29   : > { %s5788_s6 = scalar_select %p984_p3, %s5782_s2, 5 }
  0x2a   : > { %s6550_s11 = sld [smem:[#allocation16_spill]]  ;;  %s6551_s12 = sld [smem:[#allocation17_spill]] }
  0x2b   : > { %s5482_s30 = smul.u32 192, %s5788_s6  ;;  %s4973_s7 = sshll.u32 %s5788_s6, 4 }
  0x2c   : > { %s5483_s3 = smul.u32 12, %s5788_s6  ;;  %s4974_s28 = sshll.u32 %s5788_s6, 6 }
  0x2d   : > { %s5796_s27 = scalar_lea.vmem %s6544_s8, %s4973_s7  ;;  %s4975_s0 = sshll.u32 %s5788_s6, 7 }
  0x2e   : > { %6545 = sst [smem:[#allocation5_spill]] %s5796_s27  ;;  %s5801_s5 = scalar_lea.vmem %s6546_s9, %s5482_s30 }
  0x2f   : > { %s5810_s21 = scalar_lea.vmem %s6548_s22, %s5483_s3  ;;  %s4701_s22 = sshll.u32 %s5788_s6, 2 }
  0x30   : > { %s5824_s25 = scalar_lea.vmem %s6550_s11, %s4974_s28  ;;  %s5830_s3 = scalar_lea.vmem %s6551_s12, %s4701_s22 }
  0x31   : > { %s6552_s13 = sld [smem:[#allocation18_spill]]  ;;  %s4704_s8 = sshll.u32 %s5788_s6, 3 }
  0x32   : > { %s6553_s14 = sld [smem:[#allocation19_spill]]  ;;  %s6554_s15 = sld [smem:[#allocation20_spill]] }
  0x33   : > { %s6558_s19 = sld [smem:[#allocation24_spill]]  ;;  %s6560_s24 = sld [smem:[#allocation26_spill]] }
  0x34   : > { %s6562_s18 = sld [smem:[#allocation28_spill]]  ;;  %s6564_s30 = sld [smem:[#allocation4_spill]] }
  0x37   : > { %s5836_s1 = scalar_lea.vmem %s6552_s13, %s4975_s0  ;;  %s6559_s13 = sld [smem:[#allocation25_spill]] }
  0x38   : > { %s5842_s28 = scalar_lea.vmem %s6553_s14, %s4704_s8  ;;  %s5847_s27 = scalar_lea.vmem %s6554_s15, %s4973_s7 }
  0x39   : > { %s5864_s9 = scalar_lea.vmem %s6558_s19, %s4973_s7  ;;  %s4978_s15 = sshll.u32 %s5788_s6, 5 }
  0x3a   : > { %s5874_s16 = scalar_lea.vmem %s6560_s24, %s4978_s15  ;;  %s6561_s0 = sld [smem:[#allocation27_spill]] }
  0x3b   : > { %s1057_s4 = scalar_lea.vmem %s6562_s18, %s5788_s6  ;;  %s6563_s19 = sld [smem:[#allocation29_spill]] }
  0x3c   : > { %p4711_p4 = scmp.ne.s32.totalorder %s6564_s30, 0 }
  0x3d   : > { %s1046_s14 = scalar_lea.vmem %s6559_s13, %s5788_s6  ;;  %s6565_s23 = sld [smem:[#allocation10_spill]] (!%p4711_p4)  ;;  %v5642_v1 = vmov (!%p4711_p4), 0.0   ;;  %vm5643_vm0 = vmmov (!%p4711_p4), 0   ;;  %vm1105_vm1 = vcmask (!%p4711_p4), 523264   ;;  %vm1150_vm2 = vcmask (!%p4711_p4), 261120  }
  0x3e   : > { %1065 = sbr.rel (%p4711_p4) target bundleno = 298 (0x12a), region = 124  ;;  %5114 = vmatprep.subr.bf16.mxu0 (!%p4711_p4), %v5642_v1  ;;  %5122 = vmatprep.mubr.msk.bf16.mxu0 (!%p4711_p4), %vm5643_vm0, %v5642_v1  ;;  %s6566_s2 = sld [smem:[#allocation6_spill]] (!%p4711_p4) }
  0x40   : > { %s1054_s26 = scalar_lea.vmem %s6561_s0, %s5788_s6 }
  0x41   : > { %s1060_s17 = scalar_lea.vmem %s6563_s19, %s5788_s6 }
  0x43   : > { %v5496_v0 = vld [vmem:[%s6565_s23] sm:$0xff] (!%p4711_p4)   ;;  %v5497_v2 = vld [vmem:[%s6565_s23 + $0x8] sm:$0xff] (!%p4711_p4)   ;;  %v5498_v3 = vld [vmem:[%s6565_s23 + $0x10] sm:$0xff] (!%p4711_p4)  }
  0x44   : > { %5115 = vmatpush3.bf16.msra.mxu0 (!%p4711_p4), %v5496_v0  ;;  %v5499_v4 = vld [vmem:[%s6565_s23 + $0x18] sm:$0xff] (!%p4711_p4)   ;;  %v5500_v5 = vld [vmem:[%s6566_s2] sm:$0xff] (!%p4711_p4)  }
  0x45   : > { %5116 = vmatprep.subr.bf16.mxu0 %v5642_v1 }
  0x48   : > { %5117 = vmatpush3.bf16.msra.mxu0 %v5497_v2 }
  0x49   : > { %5118 = vmatprep.subr.bf16.mxu0 %v5642_v1 }
  0x4c   : > { %5119 = vmatpush3.bf16.msra.mxu0 %v5498_v3 }
  0x4d   : > { %5120 = vmatprep.subr.bf16.mxu0 %v5642_v1 }
  0x50   : > { %5121 = vmatpush3.bf16.msra.mxu0 %v5499_v4 }
  0x53   : > { %5123 = vmatmul.mubr.msk.bf16.vlgmr.msra.gmra.mrb[0].mxu0 %vm1105_vm1, %v5500_v5 }
 0x126   : > { %v1143_v6 = vpop.f32.mrb[0].mxu0 }
 0x127   : > { %1151 = vst.msk [vmem:[#allocation2] sm:$0xff] %vm1150_vm2, %v1143_v6  ;;  %v5124_v7 = vpop.f32.mrb[1].mxu0 }
 0x128   : > { %v1146_v8 = vpop.f32.mrb[2].mxu0 }
 0x129   : > { %1152 = vst.msk [vmem:[#allocation2 + $0x8] sm:$0xff] %vm1150_vm2, %v1146_v8  ;;  %v5125_v9 = vpop.f32.mrb[3].mxu0 }
 0x12a PF: > { %v5501_v10 = vld [vmem:[%s5801_s5 + $0x40] sm:$0xff]   ;;  %v5644_v11 = vmov 0.0   ;;  %v5502_v12 = vld [vmem:[%s5801_s5 + $0x48] sm:$0xff]   ;;  %vm5645_vm3 = vmmov 0   ;;  %vm1189_vm4 = vcmask 261120   ;;  %vm1368_vm5 = vcmask 64512   ;;  %s6574_s30 = scalar_lea.vmem %s6494_s10, %s5788_s6 }
 0x12b   : > { %5134 = vmatprep.subr.bf16.mxu1 %v5644_v11  ;;  %5126 = vmatprep.subr.bf16.mxu0 %v5644_v11  ;;  %v5503_v13 = vld [vmem:[%s5801_s5] sm:$0xff]   ;;  %v5504_v16 = vld [vmem:[%s5801_s5 + $0x8] sm:$0xff]   ;;  %s6567_s8 = sld [smem:[#allocation8_spill]]  ;;  %vm1420_vm7 = vcmask 130048   ;;  %v5509_v3 = vld [vmem:[%s5801_s5 + $0x10] sm:$0xff]   ;;  %vm1816_vm9 = vcmask 1043456  }
 0x12c   : > { %5135 = vmatpush3.bf16.msra.mxu1 %v5501_v10  ;;  %5138 = vmatprep.mubr.msk.bf16.mxu1 %vm5645_vm3, %v5644_v11  ;;  %v4727_v18 = vld [vmem:[%s5810_s21 + $0x4] ss:$0 sm:$0xff]  ;;  %v4718_v20 = vld [vmem:[%s5810_s21] ss:$0 sm:$0xff]  ;;  %v5506_v36 = vld [vmem:[%s5801_s5 + $0x88] sm:$0xff]   ;;  %s6568_s29 = sld [smem:[#allocation5_spill]] }
 0x12d   : > { %5136 = vmatprep.subr.bf16.mxu1 %v5644_v11  ;;  %5130 = vmatprep.mubr.msk.bf16.mxu0 %vm5645_vm3, %v5644_v11  ;;  %v5505_v35 = vld [vmem:[%s5801_s5 + $0x80] sm:$0xff]   ;;  %v4736_v62 = vld [vmem:[%s5810_s21 + $0x8] ss:$0 sm:$0xff]  ;;  %v5510_v4 = vld [vmem:[%s5801_s5 + $0x18] sm:$0xff]   ;;  %s6569_s15 = sld [smem:[#allocation14_spill]]  ;;  %s6571_s19 = sld [smem:[#allocation7_spill]] }
 0x12e   : > { %v1153_v14 = vld [vmem:[#allocation2] sm:$0xff]  ;;  %5127 = vmatpush3.bf16.msra.mxu0 %v5503_v13  ;;  %s6572_s11 = sld [smem:[#allocation15_spill]]  ;;  %vm4358_vm12 = vcmask 523264  }
 0x12f   : > { %5128 = vmatprep.subr.bf16.mxu0 %v5644_v11  ;;  %s6580_s0 = sld [smem:[#allocation23_spill]] }
 0x130   : > { %v1154_v15 = vld [vmem:[#allocation2 + $0x8] sm:$0xff]  ;;  %5137 = vmatpush3.bf16.msra.mxu1 %v5502_v12  ;;  %v5507_v12 = vld [vmem:[%s5801_s5 + $0x50] sm:$0xff]  }
 0x131   : > { %v5915_v17 = vpack.c.bf16 %v1154_v15, %v1153_v14  ;;  %5150 = vmatprep.subr.bf16.mxu1 %v5644_v11  ;;  %v5946_v37 = vld [vmem:[%s6567_s8] sm:$0xff]  ;;  %v5951_v38 = vld [vmem:[%s6567_s8 + $0x8] sm:$0xff]  ;;  %v5508_v14 = vld [vmem:[%s5801_s5 + $0x58] sm:$0xff]  }
 0x132   : > { %5129 = vmatpush3.bf16.msra.mxu0 %v5504_v16  ;;  %vm1159_vm6 = vcmp.gt.f32.partialorder %v5946_v37, 0.0  ;;  %vm1160_vm8 = vcmp.gt.f32.partialorder %v5951_v38, 0.0  ;;  %v4747_v15 = vld [vmem:[%s5810_s21 + $0x1] ss:$0 sm:$0xff] }
 0x133   : > { %5139 = vmatmul.mubr.msk.bf16.vlgmr.msra.gmra.mrb[0].mxu1 %vm1189_vm4, %v5915_v17  ;;  %5142 = vmatprep.subr.bf16.mxu0 %v5644_v11  ;;  %s6570_s24 = scalar_lea.vmem %s6569_s15, %s5788_s6 }
 0x134   : > { %5152 = vmatprep.mubr.msk.bf16.mxu1 %vm5645_vm3, %v5644_v11  ;;  %s6573_s2 = scalar_lea.vmem %s6572_s11, %s5788_s6 }
 0x135   : > { %5131 = vmatmul.mubr.msk.bf16.vlgmr.msra.gmra.mrb[0].mxu0 %vm1189_vm4, %v5915_v17  ;;  %s6581_s22 = scalar_lea.vmem %s6580_s0, %s5788_s6 }
 0x136   : > { %5146 = vmatprep.mubr.msk.bf16.mxu0 %vm5645_vm3, %v5644_v11  ;;  %5143 = vmatpush3.bf16.msra.mxu0 %v5505_v35 }
 0x137   : > { %5144 = vmatprep.subr.bf16.mxu0 %v5644_v11 }
 0x13a   : > { %5145 = vmatpush3.bf16.msra.mxu0 %v5506_v36 }
 0x13b   : > { %5156 = vmatprep.subr.bf16.mxu0 %v5644_v11 }
 0x13d   : > { %5147 = vmatmul.mubr.msk.bf16.vlgmr.msra.gmra.mrb[4].mxu0 %vm1189_vm4, %v5915_v17 }
 0x13e   : > { %5158 = vmatprep.mubr.msk.bf16.mxu0 %vm5645_vm3, %v5644_v11 }
 0x206   : > { %v1293_v19 = vpop.f32.mrb[0].mxu1 }
 0x207   : > { %v5140_v21 = vpop.f32.mrb[1].mxu1  ;;  %v1294_v24 = vadd.f32 %v4727_v18, %v1293_v19 }
 0x208   : > { %v1296_v22 = vpop.f32.mrb[2].mxu1  ;;  %v1227_v23 = vpop.f32.mrb[0].mxu0 }
 0x209   : > { %v1297_v25 = vadd.f32 %v4727_v18, %v1296_v22  ;;  %v5141_v26 = vpop.f32.mrb[3].mxu1  ;;  %v1228_v27 = vadd.f32 %v4718_v20, %v1227_v23  ;;  %v5132_v28 = vpop.f32.mrb[1].mxu0 }
 0x20a   : > { %v1230_v29 = vpop.f32.mrb[2].mxu0 }
 0x20b   : > { %v1367_v30 = vpack.c.bf16 %v1297_v25, %v1294_v24  ;;  %v1231_v31 = vadd.f32 %v4718_v20, %v1230_v29  ;;  %v5133_v32 = vpop.f32.mrb[3].mxu0  ;;  %v4756_v29 = vld [vmem:[%s5810_s21 + $0x5] ss:$0 sm:$0xff] }
 0x20d   : > { %v1366_v33 = vpack.c.bf16 %v1231_v31, %v1228_v27  ;;  %v1373_v34 = vsel %vm1368_vm5, %v1367_v30, 0 }
 0x20e   : > { %5151 = vmatpush3.bf16.xpose.msra.mxu1 %v1373_v34 }
 0x20f   : > { %5162 = vmatprep.subr.bf16.mxu1 %v5644_v11 }
 0x210   : > { %v1359_v59 = vpop.f32.mrb[4].mxu0 }
 0x211   : > { %v5148_v60 = vpop.f32.mrb[5].mxu0  ;;  %v1360_v0 = vadd.f32 %v4736_v62, %v1359_v59 }
 0x212   : > { %v1362_v61 = vpop.f32.mrb[6].mxu0 }
 0x213   : > { %v5149_v63 = vpop.f32.mrb[7].mxu0  ;;  %v1363_v1 = vadd.f32 %v4736_v62, %v1362_v61 }
 0x215   : > { %5153 = vmatmul.mubr.msk.bf16.vlgmr.msra.gmra.mrb[4].mxu1 %vm1368_vm5, %v1366_v33  ;;  %v1444_v2 = vpack.c.bf16 %v1363_v1, %v1360_v0  ;;  %v4765_v1 = vld [vmem:[%s5810_s21 + $0x9] ss:$0 sm:$0xff] }
 0x216   : > { %5166 = vmatprep.mubr.msk.bf16.mxu1 %vm5645_vm3, %v5644_v11  ;;  %5163 = vmatpush3.bf16.msra.mxu1 %v5509_v3 }
 0x217   : > { %5157 = vmatpush3.bf16.msra.mxu0 %v1444_v2  ;;  %5164 = vmatprep.subr.bf16.mxu1 %v5644_v11 }
 0x218   : > { %5170 = vmatprep.subr.bf16.mxu0 %v5644_v11 }
 0x21a   : > { %5165 = vmatpush3.bf16.msra.mxu1 %v5510_v4 }
 0x21b   : > { %5178 = vmatprep.subr.bf16.mxu1 %v5644_v11 }
 0x21d   : > { %5167 = vmatmul.mubr.msk.bf16.vlgmr.msra.gmra.mrb[8].mxu1 %vm1189_vm4, %v5915_v17 }
 0x21e   : > { %5182 = vmatprep.mubr.msk.bf16.mxu1 %vm5645_vm3, %v5644_v11 }
 0x2e8   : > { %v1409_v39 = vpop.f32.mrb[4].mxu1 }
 0x2e9   : > { %v1416_v40 = vmul.f32 0.35355338, %v1409_v39  ;;  %v5154_v41 = vpop.f32.mrb[5].mxu1 }
 0x2ea   : > { %v1412_v42 = vpop.f32.mrb[6].mxu1  ;;  %v5512_v41 = vld [vmem:[%s5801_s5 + $0x98] sm:$0xff]  }
 0x2eb   : > { %v1417_v43 = vmul.f32 0.35355338, %v1412_v42  ;;  %v5155_v44 = vpop.f32.mrb[7].mxu1  ;;  %v1418_v45 = vsel %vm1159_vm6, %v1416_v40, -1e+09  ;;  %v5511_v40 = vld [vmem:[%s5801_s5 + $0x90] sm:$0xff]  }
 0x2ec   : > { %v1421_v46 = vsel %vm1420_vm7, %v1418_v45, -inf  ;;  %5179 = vmatpush3.bf16.msra.mxu1 %v5511_v40 }
 0x2ed   : > { %1422 = vmax.xlane.f32.xlu0 %v1421_v46  ;;  %v1419_v47 = vsel %vm1160_vm8, %v1417_v43, -1e+09  ;;  %5180 = vmatprep.subr.bf16.mxu1 %v5644_v11 }
 0x2ee   : > { %v1424_v48 = vsel %vm1420_vm7, %v1419_v47, -inf }
 0x2f0   : > { %v1550_v16 = vpop.f32.mrb[8].mxu1  ;;  %5181 = vmatpush3.bf16.msra.mxu1 %v5512_v41 }
 0x2f1   : > { %1425 = vmax.xlane.f32.xlu0 %v1424_v48  ;;  %v1551_v18 = vadd.f32 %v4747_v15, %v1550_v16  ;;  %v5168_v19 = vpop.f32.mrb[9].mxu1  ;;  %5192 = vmatprep.subr.bf16.mxu1 %v5644_v11 }
 0x2f2   : > { %v1553_v20 = vpop.f32.mrb[10].mxu1  ;;  %v5513_v19 = vld [vmem:[%s5801_s5 + $0x60] sm:$0xff]  }
 0x2f3   : > { %v1554_v21 = vadd.f32 %v4747_v15, %v1553_v20  ;;  %v5169_v22 = vpop.f32.mrb[11].mxu1  ;;  %5183 = vmatmul.mubr.msk.bf16.vlgmr.msra.gmra.mrb[12].mxu1 %vm1189_vm4, %v5915_v17  ;;  %v5514_v20 = vld [vmem:[%s5801_s5 + $0x68] sm:$0xff]  }
 0x2f4   : > { %5194 = vmatprep.mubr.msk.bf16.mxu1 %vm5645_vm3, %v5644_v11 }
 0x2f5   : > { %v1689_v23 = vpack.c.bf16 %v1554_v21, %v1551_v18 }
 0x37a   : > { %v1423_v49 = vpop.xlane.xlu0 %1422 }
 0x37b   : > { %v1427_v50 = vsub.f32 %v1418_v45, %v1423_v49 }
 0x37d   : > { %v1429_v51 = vmul.f32 1.442695, %v1427_v50 }
 0x37e   : > { %v1426_v52 = vpop.xlane.xlu0 %1425 }
 0x37f   : > { %5556 = vpow2.f32 %v1429_v51  ;;  %v1428_v53 = vsub.f32 %v1419_v47, %v1426_v52 }
 0x381   : > { %v1431_v54 = vmul.f32 1.442695, %v1428_v53 }
 0x383   : > { %5558 = vpow2.f32 %v1431_v54 }
 0x389   : > { %v5557_v55 = vpop.eup %5556 }
 0x38a   : > { %v1433_v56 = vsel %vm1420_vm7, %v5557_v55, 0.0 }
 0x38b   : > { %1434 = vadd.xlane.f32.xlu1 %v1433_v56 }
 0x38d   : > { %v5559_v57 = vpop.eup %5558 }
 0x38e   : > { %v1436_v58 = vsel %vm1420_vm7, %v5559_v57, 0.0 }
 0x38f   : > { %1437 = vadd.xlane.f32.xlu1 %v1436_v58 }
 0x3c6   : > { %v1682_v62 = vpop.f32.mrb[12].mxu1 }
 0x3c7   : > { %v5184_v63 = vpop.f32.mrb[13].mxu1  ;;  %v1683_v3 = vadd.f32 %v4765_v1, %v1682_v62 }
 0x3c8   : > { %v1685_v0 = vpop.f32.mrb[14].mxu1 }
 0x3c9   : > { %v5185_v2 = vpop.f32.mrb[15].mxu1  ;;  %v1686_v4 = vadd.f32 %v4765_v1, %v1685_v0 }
 0x418   : > { %v1435_v5 = vpop.xlane.xlu1 %1434 }
 0x419   : > { %5560 = vrcp.f32 %v1435_v5  ;;  %v1765_v5 = vpack.c.bf16 %v1686_v4, %v1683_v3 }
 0x41b   : > { %5193 = vmatpush3.bf16.msra.mxu1 %v1765_v5 }
 0x41c   : > { %v1438_v6 = vpop.xlane.xlu1 %1437  ;;  %5204 = vmatprep.subr.bf16.mxu1 %v5644_v11 }
 0x41d   : > { %5562 = vrcp.f32 %v1438_v6  ;;  %v4771_v6 = vld [vmem:[%s6568_s29 + $0x4] sm:$0xf] }
 0x423   : > { %v5561_v7 = vpop.eup %5560 }
 0x424   : > { %v1440_v9 = vmul.f32 %v5561_v7, %v5557_v55  ;;  %v1818_v7 = vsel %vm1816_vm9, %v4771_v6, 0 }
 0x427   : > { %v5563_v8 = vpop.eup %5562 }
 0x428   : > { %v1442_v10 = vmul.f32 %v5563_v8, %v5559_v57 }
 0x42a   : > { %v1443_v13 = vpack.c.bf16 %v1442_v10, %v1440_v9 }
 0x42c   : > { %5159 = vmatmul.mubr.msk.bf16.vlgmr.msra.gmra.mrb[8].mxu0 %vm1420_vm7, %v1443_v13  ;;  %v1490_v13 = vld [vmem:[%s6568_s29] sm:$0xf] }
 0x42d   : > { %5171 = vmatpush3.bf16.msra.mxu0 %v5507_v12  ;;  %5174 = vmatprep.mubr.msk.bf16.mxu0 %vm5645_vm3, %v5644_v11  ;;  %v1865_v18 = vsel %vm1816_vm9, %v1490_v13, 0 }
 0x42e   : > { %5172 = vmatprep.subr.bf16.mxu0 %v5644_v11 }
 0x431   : > { %5173 = vmatpush3.bf16.msra.mxu0 %v5508_v14 }
 0x432   : > { %5186 = vmatprep.subr.bf16.mxu0 %v5644_v11 }
 0x434   : > { %5175 = vmatmul.mubr.msk.bf16.vlgmr.msra.gmra.mrb[12].mxu0 %vm1189_vm4, %v5915_v17 }
 0x435   : > { %5188 = vmatprep.mubr.msk.bf16.mxu0 %vm5645_vm3, %v5644_v11 }
 0x4ff   : > { %v5985_v24 = vpop.f32.mrb[8].mxu0 }
 0x500   : > { %v5160_v25 = vpop.f32.mrb[9].mxu0 }
 0x501   : > { %v5987_v26 = vpop.f32.mrb[10].mxu0 }
 0x502   : > { %v1489_v27 = vpack.c.bf16 %v5987_v26, %v5985_v24  ;;  %v5161_v28 = vpop.f32.mrb[11].mxu0  ;;  %v5515_v24 = vld [vmem:[%s5801_s5 + $0x20] sm:$0xff]  }
 0x507   : > { %v1616_v30 = vpop.f32.mrb[12].mxu0 }
 0x508   : > { %v5176_v31 = vpop.f32.mrb[13].mxu0  ;;  %v1617_v33 = vadd.f32 %v4756_v29, %v1616_v30 }
 0x509   : > { %v1619_v32 = vpop.f32.mrb[14].mxu0 }
 0x50a   : > { %v1620_v34 = vadd.f32 %v4756_v29, %v1619_v32  ;;  %v5177_v35 = vpop.f32.mrb[15].mxu0  ;;  %v4788_v32 = vld [vmem:[%s5810_s21 + $0x6] ss:$0 sm:$0xff] }
 0x50c   : > { %v1690_v36 = vpack.c.bf16 %v1620_v34, %v1617_v33 }
 0x50e   : > { %v1695_v39 = vsel %vm1368_vm5, %v1690_v36, 0 }
 0x50f   : > { %5187 = vmatpush3.bf16.xpose.msra.mxu0 %v1695_v39 }
 0x510   : > { %5198 = vmatprep.subr.bf16.mxu0 %v5644_v11 }
 0x516   : > { %5189 = vmatmul.mubr.msk.bf16.vlgmr.msra.gmra.mrb[16].mxu0 %vm1368_vm5, %v1689_v23 }
 0x517   : > { %5200 = vmatprep.mubr.msk.bf16.mxu0 %vm5645_vm3, %v5644_v11  ;;  %5199 = vmatpush3.bf16.msra.mxu0 %v1818_v7 }
 0x518   : > { %5210 = vmatprep.subr.bf16.mxu0 %v5644_v11 }
 0x5e9   : > { %v1731_v42 = vpop.f32.mrb[16].mxu0 }
 0x5ea   : > { %v1738_v43 = vmul.f32 0.35355338, %v1731_v42  ;;  %v5190_v44 = vpop.f32.mrb[17].mxu0 }
 0x5eb   : > { %v1734_v45 = vpop.f32.mrb[18].mxu0 }
 0x5ec   : > { %v1739_v46 = vmul.f32 0.35355338, %v1734_v45  ;;  %v5191_v47 = vpop.f32.mrb[19].mxu0  ;;  %v1740_v48 = vsel %vm1159_vm6, %v1738_v43, -1e+09 }
 0x5ed   : > { %v1742_v49 = vsel %vm1420_vm7, %v1740_v48, -inf }
 0x5ee   : > { %1743 = vmax.xlane.f32.xlu0 %v1742_v49  ;;  %v1741_v50 = vsel %vm1160_vm8, %v1739_v46, -1e+09  ;;  %v4779_v49 = vld [vmem:[%s5810_s21 + $0x2] ss:$0 sm:$0xff] }
 0x5ef   : > { %v1745_v51 = vsel %vm1420_vm7, %v1741_v50, -inf }
 0x5f0   : > { %1746 = vmax.xlane.f32.xlu1 %v1745_v51 }
 0x67b   : > { %v1744_v52 = vpop.xlane.xlu0 %1743 }
 0x67c   : > { %v1748_v53 = vsub.f32 %v1740_v48, %v1744_v52 }
 0x67d   : > { %v1747_v54 = vpop.xlane.xlu1 %1746 }
 0x67e   : > { %v1750_v55 = vmul.f32 1.442695, %v1748_v53  ;;  %v1749_v56 = vsub.f32 %v1741_v50, %v1747_v54 }
 0x680   : > { %5564 = vpow2.f32 %v1750_v55  ;;  %v1752_v57 = vmul.f32 1.442695, %v1749_v56 }
 0x682   : > { %5566 = vpow2.f32 %v1752_v57  ;;  %v5517_v57 = vld [vmem:[%s5801_s5 + $0xa0] sm:$0xff]  }
 0x68a   : > { %v5565_v58 = vpop.eup %5564 }
 0x68b   : > { %v1754_v59 = vsel %vm1420_vm7, %v5565_v58, 0.0 }
 0x68c   : > { %v5567_v60 = vpop.eup %5566  ;;  %1755 = vadd.xlane.f32.xlu0 %v1754_v59 }
 0x68d   : > { %v1757_v61 = vsel %vm1420_vm7, %v5567_v60, 0.0 }
 0x68e   : > { %1758 = vadd.xlane.f32.xlu1 %v1757_v61 }
 0x719   : > { %v1756_v8 = vpop.xlane.xlu0 %1755 }
 0x71a   : > { %5568 = vrcp.f32 %v1756_v8 }
 0x71b   : > { %v1759_v9 = vpop.xlane.xlu1 %1758 }
 0x71c   : > { %5570 = vrcp.f32 %v1759_v9 }
 0x724   : > { %v5569_v10 = vpop.eup %5568 }
 0x725   : > { %v1761_v14 = vmul.f32 %v5569_v10, %v5565_v58  ;;  %v5518_v58 = vld [vmem:[%s5801_s5 + $0xa8] sm:$0xff]  }
 0x726   : > { %v5571_v12 = vpop.eup %5570 }
 0x727   : > { %v1763_v15 = vmul.f32 %v5571_v12, %v5567_v60 }
 0x729   : > { %v1764_v16 = vpack.c.bf16 %v1763_v15, %v1761_v14 }
 0x72b   : > { %5195 = vmatmul.mubr.msk.bf16.vlgmr.msra.gmra.mrb[16].mxu1 %vm1420_vm7, %v1764_v16 }
 0x72c   : > { %5205 = vmatpush3.bf16.msra.mxu1 %v1865_v18  ;;  %5206 = vmatprep.mubr.msk.bf16.mxu1 %vm5645_vm3, %v5644_v11 }
 0x72d   : > { %5218 = vmatprep.subr.bf16.mxu1 %v5644_v11 }
 0x733   : > { %5207 = vmatmul.mubr.msk.bf16.vlgmr.msra.gmra.mrb[20].mxu1 %vm1368_vm5, %v1489_v27  ;;  %v5516_v27 = vld [vmem:[%s5801_s5 + $0x28] sm:$0xff]  }
 0x734   : > { %5219 = vmatpush3.bf16.msra.mxu1 %v5513_v19  ;;  %5222 = vmatprep.mubr.msk.bf16.mxu1 %vm5645_vm3, %v5644_v11 }
 0x735   : > { %5220 = vmatprep.subr.bf16.mxu1 %v5644_v11 }
 0x738   : > { %5221 = vmatpush3.bf16.msra.mxu1 %v5514_v20  ;;  %v4797_v20 = vld [vmem:[%s5810_s21 + $0xa] ss:$0 sm:$0xff] }
 0x739   : > { %5234 = vmatprep.subr.bf16.mxu1 %v5644_v11 }
 0x73b   : > { %5223 = vmatmul.mubr.msk.bf16.vlgmr.msra.gmra.mrb[24].mxu1 %vm1189_vm4, %v5915_v17 }
 0x73c   : > { %5236 = vmatprep.mubr.msk.bf16.mxu1 %vm5645_vm3, %v5644_v11 }
 0x7fe   : > { %v1803_v21 = vpop.f32.mrb[16].mxu1 }
 0x7ff   : > { %v5196_v22 = vpop.f32.mrb[17].mxu1 }
 0x800   : > { %v1806_v23 = vpop.f32.mrb[18].mxu1 }
 0x801   : > { %v1810_v25 = vpack.c.bf16 %v1806_v23, %v1803_v21  ;;  %v5197_v26 = vpop.f32.mrb[19].mxu1 }
 0x803   : > { %5201 = vmatmul.mubr.msk.bf16.vlgmr.msra.gmra.mrb[20].mxu0 %vm1368_vm5, %v1810_v25  ;;  %v4803_v25 = vld [vmem:[%s6568_s29 + $0x8] sm:$0xf] }
 0x804   : > { %5211 = vmatpush3.bf16.msra.mxu0 %v5515_v24  ;;  %5214 = vmatprep.mubr.msk.bf16.mxu0 %vm5645_vm3, %v5644_v11  ;;  %v2234_v26 = vsel %vm1816_vm9, %v4803_v25, 0 }
 0x805   : > { %5212 = vmatprep.subr.bf16.mxu0 %v5644_v11 }
 0x806   : > { %v1901_v28 = vpop.f32.mrb[20].mxu1 }
 0x807   : > { %v5208_v29 = vpop.f32.mrb[21].mxu1 }
 0x808   : > { %v1904_v30 = vpop.f32.mrb[22].mxu1  ;;  %5213 = vmatpush3.bf16.msra.mxu0 %v5516_v27 }
 0x809   : > { %v5209_v31 = vpop.f32.mrb[23].mxu1  ;;  %5226 = vmatprep.subr.bf16.mxu0 %v5644_v11 }
 0x80b   : > { %5215 = vmatmul.mubr.msk.bf16.vlgmr.msra.gmra.mrb[24].mxu0 %vm1189_vm4, %v5915_v17 }
 0x80c   : > { %5230 = vmatprep.mubr.msk.bf16.mxu0 %vm5645_vm3, %v5644_v11  ;;  %5227 = vmatpush3.bf16.msra.mxu0 %v5517_v57 }
 0x80d   : > { %5228 = vmatprep.subr.bf16.mxu0 %v5644_v11 }
 0x80e   : > { %v2033_v33 = vpop.f32.mrb[24].mxu1 }
 0x80f   : > { %v2034_v34 = vadd.f32 %v4788_v32, %v2033_v33  ;;  %v5224_v35 = vpop.f32.mrb[25].mxu1 }
 0x810   : > { %v2036_v36 = vpop.f32.mrb[26].mxu1  ;;  %5229 = vmatpush3.bf16.msra.mxu0 %v5518_v58  ;;  %v5522_v35 = vld [vmem:[%s5801_s5 + $0x38] sm:$0xff]  }
 0x811   : > { %v2037_v39 = vadd.f32 %v4788_v32, %v2036_v36  ;;  %v5225_v40 = vpop.f32.mrb[27].mxu1  ;;  %5240 = vmatprep.subr.bf16.mxu0 %v5644_v11 }
 0x813   : > { %v2107_v41 = vpack.c.bf16 %v2037_v39, %v2034_v34  ;;  %5231 = vmatmul.mubr.msk.bf16.vlgmr.msra.gmra.mrb[28].mxu0 %vm1189_vm4, %v5915_v17  ;;  %v5521_v34 = vld [vmem:[%s5801_s5 + $0x30] sm:$0xff]  }
 0x814   : > { %5242 = vmatprep.mubr.msk.bf16.mxu0 %vm5645_vm3, %v5644_v11 }
 0x815   : > { %v2112_v42 = vsel %vm1368_vm5, %v2107_v41, 0  ;;  %v5519_v41 = vld [vmem:[%s5801_s5 + $0x70] sm:$0xff]  }
 0x816   : > { %5235 = vmatpush3.bf16.xpose.msra.mxu1 %v2112_v42 }
 0x817   : > { %5246 = vmatprep.subr.bf16.mxu1 %v5644_v11 }
 0x8d6   : > { %v1854_v43 = vpop.f32.mrb[20].mxu0 }
 0x8d7   : > { %v6052_v44 = vadd.f32 %v1901_v28, %v1854_v43  ;;  %v5202_v45 = vpop.f32.mrb[21].mxu0 }
 0x8d8   : > { %v1857_v46 = vpop.f32.mrb[22].mxu0  ;;  %v5520_v45 = vld [vmem:[%s5801_s5 + $0x78] sm:$0xff]  }
 0x8d9   : > { %v6054_v47 = vadd.f32 %v1904_v30, %v1857_v46  ;;  %v5203_v48 = vpop.f32.mrb[23].mxu0  ;;  %v4810_v46 = vld [vmem:[%s5810_s21 + $0x3] ss:$0 sm:$0xff] }
 0x8de   : > { %v1967_v50 = vpop.f32.mrb[24].mxu0 }
 0x8df   : > { %v5216_v51 = vpop.f32.mrb[25].mxu0  ;;  %v1968_v53 = vadd.f32 %v4779_v49, %v1967_v50 }
 0x8e0   : > { %v1970_v52 = vpop.f32.mrb[26].mxu0 }
 0x8e1   : > { %v1971_v54 = vadd.f32 %v4779_v49, %v1970_v52  ;;  %v5217_v55 = vpop.f32.mrb[27].mxu0 }
 0x8e3   : > { %v2106_v56 = vpack.c.bf16 %v1971_v54, %v1968_v53 }
 0x8e5   : > { %5237 = vmatmul.mubr.msk.bf16.vlgmr.msra.gmra.mrb[28].mxu1 %vm1368_vm5, %v2106_v56 }
 0x8e6   : > { %5248 = vmatprep.mubr.msk.bf16.mxu1 %vm5645_vm3, %v5644_v11  ;;  %v2099_v16 = vpop.f32.mrb[28].mxu0  ;;  %5247 = vmatpush3.bf16.msra.mxu1 %v2234_v26 }
 0x8e7   : > { %v5232_v18 = vpop.f32.mrb[29].mxu0  ;;  %v2100_v22 = vadd.f32 %v4797_v20, %v2099_v16  ;;  %5260 = vmatprep.subr.bf16.mxu1 %v5644_v11 }
 0x8e8   : > { %v2102_v19 = vpop.f32.mrb[30].mxu0 }
 0x8e9   : > { %v5233_v21 = vpop.f32.mrb[31].mxu0  ;;  %v2103_v23 = vadd.f32 %v4797_v20, %v2102_v19 }
 0x8eb   : > { %v2182_v24 = vpack.c.bf16 %v2103_v23, %v2100_v22 }
 0x8ed   : > { %5241 = vmatpush3.bf16.msra.mxu0 %v2182_v24 }
 0x8ee   : > { %5252 = vmatprep.subr.bf16.mxu0 %v5644_v11 }
 0x9b8   : > { %v2148_v59 = vpop.f32.mrb[28].mxu1 }
 0x9b9   : > { %v2155_v60 = vmul.f32 0.35355338, %v2148_v59  ;;  %v5238_v61 = vpop.f32.mrb[29].mxu1 }
 0x9ba   : > { %v2151_v62 = vpop.f32.mrb[30].mxu1  ;;  %v4819_v61 = vld [vmem:[%s5810_s21 + $0x7] ss:$0 sm:$0xff] }
 0x9bb   : > { %v2156_v63 = vmul.f32 0.35355338, %v2151_v62  ;;  %v5239_v0 = vpop.f32.mrb[31].mxu1  ;;  %v2157_v1 = vsel %vm1159_vm6, %v2155_v60, -1e+09 }
 0x9bc   : > { %v2159_v2 = vsel %vm1420_vm7, %v2157_v1, -inf }
 0x9bd   : > { %2160 = vmax.xlane.f32.xlu0 %v2159_v2  ;;  %v2158_v3 = vsel %vm1160_vm8, %v2156_v63, -1e+09 }
 0x9be   : > { %v2162_v4 = vsel %vm1420_vm7, %v2158_v3, -inf }
 0x9bf   : > { %2163 = vmax.xlane.f32.xlu1 %v2162_v4 }
 0xa4a   : > { %v2161_v5 = vpop.xlane.xlu0 %2160 }
 0xa4b   : > { %v2165_v6 = vsub.f32 %v2157_v1, %v2161_v5 }
 0xa4c   : > { %v2164_v7 = vpop.xlane.xlu1 %2163 }
 0xa4d   : > { %v2167_v8 = vmul.f32 1.442695, %v2165_v6  ;;  %v2166_v9 = vsub.f32 %v2158_v3, %v2164_v7 }
 0xa4f   : > { %5572 = vpow2.f32 %v2167_v8  ;;  %v2169_v10 = vmul.f32 1.442695, %v2166_v9 }
 0xa51   : > { %5574 = vpow2.f32 %v2169_v10 }
 0xa59   : > { %v5573_v12 = vpop.eup %5572 }
 0xa5a   : > { %v2171_v13 = vsel %vm1420_vm7, %v5573_v12, 0.0 }
 0xa5b   : > { %v5575_v14 = vpop.eup %5574  ;;  %2172 = vadd.xlane.f32.xlu0 %v2171_v13 }
 0xa5c   : > { %v2174_v15 = vsel %vm1420_vm7, %v5575_v14, 0.0 }
 0xa5d   : > { %2175 = vadd.xlane.f32.xlu1 %v2174_v15 }
 0xae8   : > { %v2173_v27 = vpop.xlane.xlu0 %2172 }
 0xae9   : > { %5576 = vrcp.f32 %v2173_v27 }
 0xaea   : > { %v2176_v28 = vpop.xlane.xlu1 %2175 }
 0xaeb   : > { %5578 = vrcp.f32 %v2176_v28  ;;  %v4828_v28 = vld [vmem:[%s5810_s21 + $0xb] ss:$0 sm:$0xff]  ;;  %s6575_s21 = sld [smem:[#allocation9_spill]] }
 0xaf3   : > { %v5577_v29 = vpop.eup %5576 }
 0xaf4   : > { %v2178_v31 = vmul.f32 %v5577_v29, %v5573_v12 }
 0xaf5   : > { %v5579_v30 = vpop.eup %5578 }
 0xaf6   : > { %v2180_v32 = vmul.f32 %v5579_v30, %v5575_v14 }
 0xaf8   : > { %v2181_v33 = vpack.c.bf16 %v2180_v32, %v2178_v31 }
 0xafa   : > { %5243 = vmatmul.mubr.msk.bf16.vlgmr.msra.gmra.mrb[32].mxu0 %vm1420_vm7, %v2181_v33  ;;  %v4834_v33 = vld [vmem:[%s6568_s29 + $0xc] sm:$0xf] }
 0xafb   : > { %5256 = vmatprep.mubr.msk.bf16.mxu0 %vm5645_vm3, %v5644_v11  ;;  %5253 = vmatpush3.bf16.msra.mxu0 %v5521_v34  ;;  %v2605_v34 = vsel %vm1816_vm9, %v4834_v33, 0 }
 0xafc   : > { %5254 = vmatprep.subr.bf16.mxu0 %v5644_v11 }
 0xaff   : > { %5255 = vmatpush3.bf16.msra.mxu0 %v5522_v35 }
 0xb00   : > { %5268 = vmatprep.subr.bf16.mxu0 %v5644_v11 }
 0xb02   : > { %5257 = vmatmul.mubr.msk.bf16.vlgmr.msra.gmra.mrb[36].mxu0 %vm1189_vm4, %v5915_v17 }
 0xb03   : > { %5272 = vmatprep.mubr.msk.bf16.mxu0 %vm5645_vm3, %v5644_v11 }
 0xbcd   : > { %v2220_v36 = vpop.f32.mrb[32].mxu0 }
 0xbce   : > { %v5244_v39 = vpop.f32.mrb[33].mxu0 }
 0xbcf   : > { %v2223_v40 = vpop.f32.mrb[34].mxu0 }
 0xbd0   : > { %v2227_v42 = vpack.c.bf16 %v2223_v40, %v2220_v36  ;;  %v5245_v43 = vpop.f32.mrb[35].mxu0 }
 0xbd2   : > { %5249 = vmatmul.mubr.msk.bf16.vlgmr.msra.gmra.mrb[32].mxu1 %vm1368_vm5, %v2227_v42 }
 0xbd3   : > { %5261 = vmatpush3.bf16.msra.mxu1 %v5519_v41  ;;  %5264 = vmatprep.mubr.msk.bf16.mxu1 %vm5645_vm3, %v5644_v11 }
 0xbd4   : > { %5262 = vmatprep.subr.bf16.mxu1 %v5644_v11 }
 0xbd5   : > { %v2338_v48 = vpop.f32.mrb[36].mxu0 }
 0xbd6   : > { %v2339_v49 = vadd.f32 %v4810_v46, %v2338_v48  ;;  %v5258_v50 = vpop.f32.mrb[37].mxu0 }
 0xbd7   : > { %5263 = vmatpush3.bf16.msra.mxu1 %v5520_v45  ;;  %v2341_v51 = vpop.f32.mrb[38].mxu0 }
 0xbd8   : > { %5276 = vmatprep.subr.bf16.mxu1 %v5644_v11  ;;  %v2342_v52 = vadd.f32 %v4810_v46, %v2341_v51  ;;  %v5259_v53 = vpop.f32.mrb[39].mxu0 }
 0xbda   : > { %5265 = vmatmul.mubr.msk.bf16.vlgmr.msra.gmra.mrb[36].mxu1 %vm1189_vm4, %v5915_v17  ;;  %v2477_v54 = vpack.c.bf16 %v2342_v52, %v2339_v49  ;;  %v4836_v52 = vld [vmem:[%s6570_s24] ss:$0 sm:$0xff]  ;;  %s6578_s24 = sld [smem:[#allocation22_spill]] }
 0xbdb   : > { %5278 = vmatprep.mubr.msk.bf16.mxu1 %vm5645_vm3, %v5644_v11 }
 0xbe0   : > { %s6579_s12 = scalar_lea.vmem %s6578_s24, %s5788_s6 }
 0xca5   : > { %v2270_v55 = vpop.f32.mrb[32].mxu1 }
 0xca6   : > { %v6105_v56 = vadd.f32 %v2270_v55, %v6052_v44  ;;  %v5250_v57 = vpop.f32.mrb[33].mxu1  ;;  %v5523_v44 = vld [vmem:[%s5801_s5 + $0xb0] sm:$0xff]  }
 0xca7   : > { %v2273_v58 = vpop.f32.mrb[34].mxu1  ;;  %5269 = vmatpush3.bf16.msra.mxu0 %v5523_v44 }
 0xca8   : > { %v6108_v59 = vadd.f32 %v2273_v58, %v6054_v47  ;;  %v5251_v60 = vpop.f32.mrb[35].mxu1  ;;  %v5524_v47 = vld [vmem:[%s5801_s5 + $0xb8] sm:$0xff]   ;;  %5270 = vmatprep.subr.bf16.mxu0 %v5644_v11 }
 0xcab   : > { %5271 = vmatpush3.bf16.msra.mxu0 %v5524_v47 }
 0xcac   : > { %5282 = vmatprep.subr.bf16.mxu0 %v5644_v11 }
 0xcad   : > { %v2404_v62 = vpop.f32.mrb[36].mxu1 }
 0xcae   : > { %v5266_v63 = vpop.f32.mrb[37].mxu1  ;;  %v2405_v1 = vadd.f32 %v4819_v61, %v2404_v62  ;;  %5273 = vmatmul.mubr.msk.bf16.vlgmr.msra.gmra.mrb[40].mxu0 %vm1189_vm4, %v5915_v17  ;;  %v5632_v62 = vld [vmem:[#allocation2] sm:$0xff] }
 0xcaf   : > { %v2407_v0 = vpop.f32.mrb[38].mxu1  ;;  %5284 = vmatprep.mubr.msk.bf16.mxu0 %vm5645_vm3, %v5644_v11 }
 0xcb0   : > { %v2408_v2 = vadd.f32 %v4819_v61, %v2407_v0  ;;  %v5267_v3 = vpop.f32.mrb[39].mxu1 }
 0xcb2   : > { %v2478_v4 = vpack.c.bf16 %v2408_v2, %v2405_v1  ;;  %v5633_v1 = vld [vmem:[#allocation2 + $0x8] sm:$0xff] }
 0xcb4   : > { %v2483_v5 = vsel %vm1368_vm5, %v2478_v4, 0 }
 0xcb5   : > { %5277 = vmatpush3.bf16.xpose.msra.mxu1 %v2483_v5 }
 0xcb6   : > { %5288 = vmatprep.subr.bf16.mxu1 %v5644_v11 }
 0xcbc   : > { %5279 = vmatmul.mubr.msk.bf16.vlgmr.msra.gmra.mrb[40].mxu1 %vm1368_vm5, %v2477_v54 }
 0xcbd   : > { %5290 = vmatprep.mubr.msk.bf16.mxu1 %vm5645_vm3, %v5644_v11  ;;  %5289 = vmatpush3.bf16.msra.mxu1 %v2605_v34 }
 0xcbe   : > { %5302 = vmatprep.subr.bf16.mxu1 %v5644_v11 }
 0xd81   : > { %v2470_v25 = vpop.f32.mrb[40].mxu0 }
 0xd82   : > { %v5274_v26 = vpop.f32.mrb[41].mxu0  ;;  %v2471_v30 = vadd.f32 %v4828_v28, %v2470_v25 }
 0xd83   : > { %v2473_v27 = vpop.f32.mrb[42].mxu0  ;;  %v4838_v26 = vld [vmem:[%s6574_s30] ss:$0 sm:$0xff] }
 0xd84   : > { %v5275_v29 = vpop.f32.mrb[43].mxu0  ;;  %v2474_v31 = vadd.f32 %v4828_v28, %v2473_v27 }
 0xd86   : > { %v2553_v32 = vpack.c.bf16 %v2474_v31, %v2471_v30  ;;  %v4843_v31 = vld [vmem:[%s5842_s28] ss:$0 sm:$0xff] }
 0xd88   : > { %5283 = vmatpush3.bf16.msra.mxu0 %v2553_v32 }
 0xd89   : > { %5294 = vmatprep.subr.bf16.mxu0 %v5644_v11 }
 0xd8f   : > { %v2519_v6 = vpop.f32.mrb[40].mxu1 }
 0xd90   : > { %v2526_v7 = vmul.f32 0.35355338, %v2519_v6  ;;  %v5280_v8 = vpop.f32.mrb[41].mxu1 }
 0xd91   : > { %v2522_v9 = vpop.f32.mrb[42].mxu1 }
 0xd92   : > { %v2527_v10 = vmul.f32 0.35355338, %v2522_v9  ;;  %v5281_v12 = vpop.f32.mrb[43].mxu1  ;;  %v2528_v13 = vsel %vm1159_vm6, %v2526_v7, -1e+09 }
 0xd93   : > { %v2530_v14 = vsel %vm1420_vm7, %v2528_v13, -inf  ;;  %v5526_v12 = vld [vmem:[%s5836_s1 + $0x8] sm:$0xff]  }
 0xd94   : > { %2531 = vmax.xlane.f32.xlu0 %v2530_v14  ;;  %v2529_v15 = vsel %vm1160_vm8, %v2527_v10, -1e+09  ;;  %v5525_v10 = vld [vmem:[%s5836_s1] sm:$0xff]  }
 0xd95   : > { %v2533_v17 = vsel %vm1420_vm7, %v2529_v15, -inf  ;;  %v5528_v14 = vld [vmem:[%s5824_s25] sm:$0xff]  }
 0xd96   : > { %2534 = vmax.xlane.f32.xlu1 %v2533_v17 }
 0xe21   : > { %v2532_v16 = vpop.xlane.xlu0 %2531 }
 0xe22   : > { %v2536_v18 = vsub.f32 %v2528_v13, %v2532_v16  ;;  %v6160_v13 = vld [vmem:[%s6571_s19] sm:$0xff]  }
 0xe23   : > { %v2535_v19 = vpop.xlane.xlu1 %2534 }
 0xe24   : > { %v2538_v20 = vmul.f32 1.442695, %v2536_v18  ;;  %v2537_v21 = vsub.f32 %v2529_v15, %v2535_v19  ;;  %v5529_v15 = vld [vmem:[%s5824_s25 + $0x8] sm:$0xff]  }
 0xe26   : > { %5580 = vpow2.f32 %v2538_v20  ;;  %v2540_v22 = vmul.f32 1.442695, %v2537_v21 }
 0xe28   : > { %5582 = vpow2.f32 %v2540_v22 }
 0xe30   : > { %v5581_v37 = vpop.eup %5580 }
 0xe31   : > { %v2542_v23 = vsel %vm1420_vm7, %v5581_v37, 0.0 }
 0xe32   : > { %v5583_v24 = vpop.eup %5582  ;;  %2543 = vadd.xlane.f32.xlu0 %v2542_v23 }
 0xe33   : > { %v2545_v38 = vsel %vm1420_vm7, %v5583_v24, 0.0 }
 0xe34   : > { %2546 = vadd.xlane.f32.xlu1 %v2545_v38 }
 0xebf   : > { %v2544_v35 = vpop.xlane.xlu0 %2543 }
 0xec0   : > { %5584 = vrcp.f32 %v2544_v35 }
 0xec1   : > { %v2547_v36 = vpop.xlane.xlu1 %2546 }
 0xec2   : > { %5586 = vrcp.f32 %v2547_v36 }
 0xeca   : > { %v5585_v39 = vpop.eup %5584 }
 0xecb   : > { %v2549_v41 = vmul.f32 %v5585_v39, %v5581_v37  ;;  %v4837_v37 = vld [vmem:[%s6573_s2] ss:$0 sm:$0xff] }
 0xecc   : > { %v5587_v40 = vpop.eup %5586 }
 0xecd   : > { %v2551_v42 = vmul.f32 %v5587_v40, %v5583_v24 }
 0xecf   : > { %v2552_v43 = vpack.c.bf16 %v2551_v42, %v2549_v41  ;;  %v4839_v42 = vld [vmem:[%s5830_s3] ss:$0 sm:$0xff] }
 0xed1   : > { %5285 = vmatmul.mubr.msk.bf16.vlgmr.msra.gmra.mrb[44].mxu0 %vm1420_vm7, %v2552_v43 }
 0xed2   : > { %5298 = vmatprep.mubr.msk.bf16.mxu0 %vm5645_vm3, %v5644_v11  ;;  %5295 = vmatpush3.bf16.msra.mxu0 %v5528_v14 }
 0xed3   : > { %5296 = vmatprep.subr.bf16.mxu0 %v5644_v11 }
 0xed6   : > { %5297 = vmatpush3.bf16.msra.mxu0 %v5529_v15 }
 0xed7   : > { %5310 = vmatprep.subr.bf16.mxu0 %v5644_v11 }
 0xfa4   : > { %v2591_v45 = vpop.f32.mrb[44].mxu0 }
 0xfa5   : > { %v5286_v46 = vpop.f32.mrb[45].mxu0 }
 0xfa6   : > { %v2594_v48 = vpop.f32.mrb[46].mxu0 }
 0xfa7   : > { %v2598_v49 = vpack.c.bf16 %v2594_v48, %v2591_v45  ;;  %v5287_v50 = vpop.f32.mrb[47].mxu0 }
 0xfa9   : > { %5291 = vmatmul.mubr.msk.bf16.vlgmr.msra.gmra.mrb[44].mxu1 %vm1368_vm5, %v2598_v49 }
 0xfaa   : > { %5306 = vmatprep.mubr.msk.bf16.mxu1 %vm5645_vm3, %v5644_v11  ;;  %5303 = vmatpush3.bf16.msra.mxu1 %v5525_v10 }
 0xfab   : > { %5304 = vmatprep.subr.bf16.mxu1 %v5644_v11 }
 0xfae   : > { %5305 = vmatpush3.bf16.msra.mxu1 %v5526_v12 }
 0xfaf   : > { %5318 = vmatprep.subr.bf16.mxu1 %v5644_v11 }
 0xfb1   : > { %5307 = vmatmul.mubr.msk.bf16.vlgmr.msra.gmra.mrb[48].mxu1 %vm1189_vm4, %v6160_v13 }
 0xfb2   : > { %5320 = vmatprep.mubr.msk.bf16.mxu1 %vm5645_vm3, %v5644_v11 }
0x107c   : > { %v2641_v51 = vpop.f32.mrb[44].mxu1 }
0x107d   : > { %v2648_v53 = vadd.f32 %v2641_v51, %v6105_v56  ;;  %v5292_v54 = vpop.f32.mrb[45].mxu1  ;;  %v5530_v51 = vld [vmem:[%s5824_s25 + $0x10] sm:$0xff]  }
0x107e   : > { %v2644_v55 = vpop.f32.mrb[46].mxu1  ;;  %v5532_v54 = vld [vmem:[%s5836_s1 + $0x40] sm:$0xff]  }
0x107f   : > { %v2657_v57 = vadd.f32 %v4836_v52, %v2648_v53  ;;  %v2649_v58 = vadd.f32 %v2644_v55, %v6108_v59  ;;  %v5293_v60 = vpop.f32.mrb[47].mxu1  ;;  %v5531_v53 = vld [vmem:[%s5824_s25 + $0x18] sm:$0xff]   ;;  %v5533_v55 = vld [vmem:[%s5836_s1 + $0x48] sm:$0xff]  }
0x1081   : > { %v2658_v61 = vadd.f32 %v4836_v52, %v2649_v58  ;;  %v2659_v63 = vadd.f32 %v5632_v62, %v2657_v57  ;;  %v6219_v57 = vld [vmem:[%s6575_s21] sm:$0xff]  ;;  %v6224_v58 = vld [vmem:[%s6575_s21 + $0x8] sm:$0xff] }
0x1082   : > { %vm1163_vm10 = vcmp.gt.f32.partialorder %v6219_v57, 0.0  ;;  %vm1164_vm11 = vcmp.gt.f32.partialorder %v6224_v58, 0.0 }
0x1083   : > { %v2663_v0 = vsel %vm1189_vm4, %v2659_v63, 0.0  ;;  %v2660_v2 = vadd.f32 %v5633_v1, %v2658_v61 }
0x1084   : > { %2664 = vadd.xlane.f32.xlu0 %v2663_v0  ;;  %v2839_v32 = vpop.f32.mrb[48].mxu1 }
0x1085   : > { %v2666_v3 = vsel %vm1189_vm4, %v2660_v2, 0.0  ;;  %v2840_v33 = vadd.f32 %v4843_v31, %v2839_v32  ;;  %v5308_v34 = vpop.f32.mrb[49].mxu1 }
0x1086   : > { %2667 = vadd.xlane.f32.xlu1 %v2666_v3  ;;  %v2842_v35 = vpop.f32.mrb[50].mxu1 }
0x1087   : > { %v2843_v36 = vadd.f32 %v4843_v31, %v2842_v35  ;;  %v5309_v39 = vpop.f32.mrb[51].mxu1 }
0x1088   : > { %v5534_v39 = vld [vmem:[%s5836_s1 + $0x10] sm:$0xff]  }
0x1089   : > { %v2913_v40 = vpack.c.bf16 %v2843_v36, %v2840_v33 }
0x108b   : > { %v2918_v41 = vsel %vm1368_vm5, %v2913_v40, 0 }
0x108c   : > { %5319 = vmatpush3.bf16.xpose.msra.mxu1 %v2918_v41  ;;  %v5535_v41 = vld [vmem:[%s5836_s1 + $0x18] sm:$0xff]  }
0x108d   : > { %5330 = vmatprep.subr.bf16.mxu1 %v5644_v11 }
0x1111   : > { %v2665_v56 = vpop.xlane.xlu0 %2664 }
0x1112   : > { %v2670_v4 = vmul.f32 0.03125, %v2665_v56 }
0x1113   : > { %v2668_v5 = vpop.xlane.xlu1 %2667 }
0x1114   : > { %v2672_v44 = vsub.f32 %v2659_v63, %v2670_v4  ;;  %v2671_v47 = vmul.f32 0.03125, %v2668_v5  ;;  %v4864_v5 = vld [vmem:[%s5830_s3 + $0x1] ss:$0 sm:$0xff] }
0x1116   : > { %v2673_v59 = vsub.f32 %v2660_v2, %v2671_v47  ;;  %v2674_v6 = vmul.f32 %v2672_v44, %v2672_v44 }
0x1118   : > { %v2676_v7 = vsel %vm1189_vm4, %v2674_v6, 0.0  ;;  %v2675_v8 = vmul.f32 %v2673_v59, %v2673_v59 }
0x1119   : > { %2677 = vadd.xlane.f32.xlu0 %v2676_v7 }
0x111a   : > { %v2679_v9 = vsel %vm1189_vm4, %v2675_v8, 0.0 }
0x111b   : > { %2680 = vadd.xlane.f32.xlu1 %v2679_v9 }
0x11a6   : > { %v2678_v17 = vpop.xlane.xlu0 %2677 }
0x11a7   : > { %v2682_v16 = vmul.f32 0.03125, %v2678_v17 }
0x11a8   : > { %v2681_v18 = vpop.xlane.xlu1 %2680 }
0x11a9   : > { %v2684_v19 = vadd.f32 1e-05, %v2682_v16  ;;  %v2683_v20 = vmul.f32 0.03125, %v2681_v18 }
0x11ab   : > { %5588 = vrsqrt.f32 %v2684_v19  ;;  %v2685_v21 = vadd.f32 1e-05, %v2683_v20 }
0x11ad   : > { %5590 = vrsqrt.f32 %v2685_v21 }
0x11b5   : > { %v5589_v22 = vpop.eup %5588 }
0x11b6   : > { %v2688_v23 = vmul.f32 %v5589_v22, %v2672_v44 }
0x11b7   : > { %v5591_v24 = vpop.eup %5590 }
0x11b8   : > { %v2696_v38 = vmul.f32 %v4837_v37, %v2688_v23  ;;  %v2689_v25 = vmul.f32 %v5591_v24, %v2673_v59  ;;  %v4853_v24 = vld [vmem:[%s5842_s28 + $0x4] ss:$0 sm:$0xff] }
0x11ba   : > { %v2697_v27 = vmul.f32 %v4837_v37, %v2689_v25  ;;  %v6181_v28 = vadd.f32 %v4838_v26, %v2696_v38 }
0x11bc   : > { %v6183_v29 = vadd.f32 %v4838_v26, %v2697_v27 }
0x11be   : > { %v6187_v30 = vpack.c.bf16 %v6183_v29, %v6181_v28 }
0x11c0   : > { %5299 = vmatmul.mubr.msk.bf16.vlgmr.msra.gmra.mrb[48].mxu0 %vm1189_vm4, %v6187_v30 }
0x11c1   : > { %5314 = vmatprep.mubr.msk.bf16.mxu0 %vm5645_vm3, %v5644_v11  ;;  %5311 = vmatpush3.bf16.msra.mxu0 %v5532_v54 }
0x11c2   : > { %5312 = vmatprep.subr.bf16.mxu0 %v5644_v11 }
0x11c5   : > { %5313 = vmatpush3.bf16.msra.mxu0 %v5533_v55 }
0x11c6   : > { %5324 = vmatprep.subr.bf16.mxu0 %v5644_v11 }
0x11c8   : > { %5315 = vmatmul.mubr.msk.bf16.vlgmr.msra.gmra.mrb[52].mxu0 %vm1189_vm4, %v6160_v13 }
0x11c9   : > { %5326 = vmatprep.mubr.msk.bf16.mxu0 %vm5645_vm3, %v5644_v11 }
0x1293   : > { %v2767_v43 = vpop.f32.mrb[48].mxu0 }
0x1294   : > { %v5300_v45 = vpop.f32.mrb[49].mxu0  ;;  %v2768_v48 = vadd.f32 %v4839_v42, %v2767_v43 }
0x1295   : > { %v2770_v46 = vpop.f32.mrb[50].mxu0 }
0x1296   : > { %v2771_v49 = vadd.f32 %v4839_v42, %v2770_v46  ;;  %v5301_v50 = vpop.f32.mrb[51].mxu0 }
0x1298   : > { %v2912_v52 = vpack.c.bf16 %v2771_v49, %v2768_v48  ;;  %v4873_v49 = vld [vmem:[%s5842_s28 + $0x1] ss:$0 sm:$0xff] }
0x129a   : > { %5321 = vmatmul.mubr.msk.bf16.vlgmr.msra.gmra.mrb[52].mxu1 %vm1368_vm5, %v2912_v52 }
0x129b   : > { %5331 = vmatpush3.bf16.msra.mxu1 %v5530_v51  ;;  %5334 = vmatprep.mubr.msk.bf16.mxu1 %vm5645_vm3, %v5644_v11  ;;  %v2905_v22 = vpop.f32.mrb[52].mxu0 }
0x129c   : > { %5332 = vmatprep.subr.bf16.mxu1 %v5644_v11  ;;  %v5316_v37 = vpop.f32.mrb[53].mxu0  ;;  %v2906_v25 = vadd.f32 %v4853_v24, %v2905_v22 }
0x129d   : > { %v2908_v23 = vpop.f32.mrb[54].mxu0 }
0x129e   : > { %v5317_v38 = vpop.f32.mrb[55].mxu0  ;;  %v2909_v26 = vadd.f32 %v4853_v24, %v2908_v23 }
0x129f   : > { %5333 = vmatpush3.bf16.msra.mxu1 %v5531_v53  ;;  %v4888_v38 = vld [vmem:[%s5847_s27 + $0x4] sm:$0xf] }
0x12a0   : > { %5346 = vmatprep.subr.bf16.mxu1 %v5644_v11  ;;  %v2988_v27 = vpack.c.bf16 %v2909_v26, %v2906_v25  ;;  %v3361_v25 = vsel %vm1816_vm9, %v4888_v38, 0 }
0x12a2   : > { %5335 = vmatmul.mubr.msk.bf16.vlgmr.msra.gmra.mrb[56].mxu1 %vm1189_vm4, %v6187_v30  ;;  %5325 = vmatpush3.bf16.msra.mxu0 %v2988_v27 }
0x12a3   : > { %5350 = vmatprep.mubr.msk.bf16.mxu1 %vm5645_vm3, %v5644_v11  ;;  %5338 = vmatprep.subr.bf16.mxu0 %v5644_v11 }
0x136d   : > { %v2954_v60 = vpop.f32.mrb[52].mxu1 }
0x136e   : > { %v2961_v61 = vmul.f32 0.35355338, %v2954_v60  ;;  %v5322_v62 = vpop.f32.mrb[53].mxu1 }
0x136f   : > { %v2957_v63 = vpop.f32.mrb[54].mxu1  ;;  %v5536_v62 = vld [vmem:[%s5836_s1 + $0x50] sm:$0xff]  }
0x1370   : > { %v2962_v0 = vmul.f32 0.35355338, %v2957_v63  ;;  %v5323_v1 = vpop.f32.mrb[55].mxu1  ;;  %v2963_v2 = vsel %vm1163_vm10, %v2961_v61, -1e+09  ;;  %5347 = vmatpush3.bf16.msra.mxu1 %v5536_v62  ;;  %v5537_v63 = vld [vmem:[%s5836_s1 + $0x58] sm:$0xff]  }
0x1371   : > { %v2965_v3 = vsel %vm1420_vm7, %v2963_v2, -inf  ;;  %5348 = vmatprep.subr.bf16.mxu1 %v5644_v11 }
0x1372   : > { %2966 = vmax.xlane.f32.xlu0 %v2965_v3  ;;  %v2964_v56 = vsel %vm1164_vm11, %v2962_v0, -1e+09 }
0x1373   : > { %v2968_v4 = vsel %vm1420_vm7, %v2964_v56, -inf }
0x1374   : > { %2969 = vmax.xlane.f32.xlu1 %v2968_v4  ;;  %5349 = vmatpush3.bf16.msra.mxu1 %v5537_v63 }
0x1375   : > { %v3094_v44 = vpop.f32.mrb[56].mxu1  ;;  %5360 = vmatprep.subr.bf16.mxu1 %v5644_v11 }
0x1376   : > { %v5336_v47 = vpop.f32.mrb[57].mxu1  ;;  %v6235_v6 = vadd.f32 %v4864_v5, %v3094_v44 }
0x1377   : > { %v3097_v59 = vpop.f32.mrb[58].mxu1  ;;  %5351 = vmatmul.mubr.msk.bf16.vlgmr.msra.gmra.mrb[60].mxu1 %vm1189_vm4, %v6160_v13 }
0x1378   : > { %v6237_v7 = vadd.f32 %v4864_v5, %v3097_v59  ;;  %v5337_v8 = vpop.f32.mrb[59].mxu1  ;;  %5362 = vmatprep.mubr.msk.bf16.mxu1 %vm5645_vm3, %v5644_v11 }
0x137a   : > { %v3233_v9 = vpack.c.bf16 %v6237_v7, %v6235_v6 }
0x13ff   : > { %v2967_v10 = vpop.xlane.xlu0 %2966 }
0x1400   : > { %v2971_v12 = vsub.f32 %v2963_v2, %v2967_v10 }
0x1401   : > { %v2970_v14 = vpop.xlane.xlu1 %2969 }
0x1402   : > { %v2973_v15 = vmul.f32 1.442695, %v2971_v12  ;;  %v2972_v17 = vsub.f32 %v2964_v56, %v2970_v14 }
0x1404   : > { %5592 = vpow2.f32 %v2973_v15  ;;  %v2975_v16 = vmul.f32 1.442695, %v2972_v17 }
0x1406   : > { %5594 = vpow2.f32 %v2975_v16 }
0x140e   : > { %v5593_v18 = vpop.eup %5592 }
0x140f   : > { %v2977_v19 = vsel %vm1420_vm7, %v5593_v18, 0.0 }
0x1410   : > { %v5595_v20 = vpop.eup %5594  ;;  %2978 = vadd.xlane.f32.xlu0 %v2977_v19 }
0x1411   : > { %v2980_v21 = vsel %vm1420_vm7, %v5595_v20, 0.0 }
0x1412   : > { %2981 = vadd.xlane.f32.xlu1 %v2980_v21  ;;  %v4882_v21 = vld [vmem:[%s5842_s28 + $0x5] ss:$0 sm:$0xff] }
0x149d   : > { %v2979_v31 = vpop.xlane.xlu0 %2978 }
0x149e   : > { %5596 = vrcp.f32 %v2979_v31 }
0x149f   : > { %v2982_v32 = vpop.xlane.xlu1 %2981 }
0x14a0   : > { %5598 = vrcp.f32 %v2982_v32 }
0x14a8   : > { %v5597_v33 = vpop.eup %5596 }
0x14a9   : > { %v2984_v35 = vmul.f32 %v5597_v33, %v5593_v18  ;;  %v3226_v18 = vpop.f32.mrb[60].mxu1  ;;  %v3034_v33 = vld [vmem:[%s5847_s27] sm:$0xf] }
0x14aa   : > { %v5599_v34 = vpop.eup %5598  ;;  %v5352_v19 = vpop.f32.mrb[61].mxu1  ;;  %v3227_v37 = vadd.f32 %v4882_v21, %v3226_v18 }
0x14ab   : > { %v2986_v36 = vmul.f32 %v5599_v34, %v5595_v20  ;;  %v3229_v20 = vpop.f32.mrb[62].mxu1 }
0x14ac   : > { %v5353_v22 = vpop.f32.mrb[63].mxu1  ;;  %v3230_v23 = vadd.f32 %v4882_v21, %v3229_v20 }
0x14ad   : > { %v2987_v40 = vpack.c.bf16 %v2986_v36, %v2984_v35 }
0x14ae   : > { %v3309_v24 = vpack.c.bf16 %v3230_v23, %v3227_v37 }
0x14af   : > { %5327 = vmatmul.mubr.msk.bf16.vlgmr.msra.gmra.mrb[56].mxu0 %vm1420_vm7, %v2987_v40  ;;  %v5538_v40 = vld [vmem:[%s5836_s1 + $0x20] sm:$0xff]  }
0x14b0   : > { %5339 = vmatpush3.bf16.msra.mxu0 %v5534_v39  ;;  %5342 = vmatprep.mubr.msk.bf16.mxu0 %vm5645_vm3, %v5644_v11  ;;  %v3408_v39 = vsel %vm1816_vm9, %v3034_v33, 0 }
0x14b1   : > { %5340 = vmatprep.subr.bf16.mxu0 %v5644_v11  ;;  %5361 = vmatpush3.bf16.msra.mxu1 %v3309_v24 }
0x14b2   : > { %5372 = vmatprep.subr.bf16.mxu1 %v5644_v11 }
0x14b4   : > { %5341 = vmatpush3.bf16.msra.mxu0 %v5535_v41  ;;  %v5539_v41 = vld [vmem:[%s5836_s1 + $0x28] sm:$0xff]  }
0x14b5   : > { %5354 = vmatprep.subr.bf16.mxu0 %v5644_v11 }
0x14b7   : > { %5343 = vmatmul.mubr.msk.bf16.vlgmr.msra.gmra.mrb[60].mxu0 %vm1189_vm4, %v6160_v13 }
0x14b8   : > { %5356 = vmatprep.mubr.msk.bf16.mxu0 %vm5645_vm3, %v5644_v11 }
0x1582   : > { %v6256_v42 = vpop.f32.mrb[56].mxu0 }
0x1583   : > { %v5328_v43 = vpop.f32.mrb[57].mxu0 }
0x1584   : > { %v6258_v45 = vpop.f32.mrb[58].mxu0 }
0x1585   : > { %v3033_v46 = vpack.c.bf16 %v6258_v45, %v6256_v42  ;;  %v5329_v48 = vpop.f32.mrb[59].mxu0 }
0x158a   : > { %v3160_v50 = vpop.f32.mrb[60].mxu0 }
0x158b   : > { %v5344_v51 = vpop.f32.mrb[61].mxu0  ;;  %v3161_v53 = vadd.f32 %v4873_v49, %v3160_v50  ;;  %v5541_v50 = vld [vmem:[%s5824_s25 + $0x28] sm:$0xff]  }
0x158c   : > { %v3163_v52 = vpop.f32.mrb[62].mxu0 }
0x158d   : > { %v3164_v54 = vadd.f32 %v4873_v49, %v3163_v52  ;;  %v5345_v55 = vpop.f32.mrb[63].mxu0 }
0x158e   : > { %v4905_v55 = vld [vmem:[%s5842_s28 + $0x2] ss:$0 sm:$0xff] }
0x158f   : > { %v3234_v60 = vpack.c.bf16 %v3164_v54, %v3161_v53 }
0x1591   : > { %v3239_v61 = vsel %vm1368_vm5, %v3234_v60, 0 }
0x1592   : > { %5355 = vmatpush3.bf16.xpose.msra.mxu0 %v3239_v61 }
0x1593   : > { %5366 = vmatprep.subr.bf16.mxu0 %v5644_v11 }
0x1599   : > { %5357 = vmatmul.mubr.msk.bf16.vlgmr.msra.gmra.mrb[64].mxu0 %vm1368_vm5, %v3233_v9 }
0x159a   : > { %5368 = vmatprep.mubr.msk.bf16.mxu0 %vm5645_vm3, %v5644_v11  ;;  %5367 = vmatpush3.bf16.msra.mxu0 %v3361_v25 }
0x159b   : > { %5378 = vmatprep.subr.bf16.mxu0 %v5644_v11 }
0x166c   : > { %v3275_v0 = vpop.f32.mrb[64].mxu0 }
0x166d   : > { %v3282_v1 = vmul.f32 0.35355338, %v3275_v0  ;;  %v5358_v2 = vpop.f32.mrb[65].mxu0 }
0x166e   : > { %v3278_v3 = vpop.f32.mrb[66].mxu0 }
0x166f   : > { %v3283_v56 = vmul.f32 0.35355338, %v3278_v3  ;;  %v5359_v4 = vpop.f32.mrb[67].mxu0  ;;  %v3284_v5 = vsel %vm1163_vm10, %v3282_v1, -1e+09 }
0x1670   : > { %v3286_v44 = vsel %vm1420_vm7, %v3284_v5, -inf }
0x1671   : > { %3287 = vmax.xlane.f32.xlu0 %v3286_v44  ;;  %v3285_v47 = vsel %vm1164_vm11, %v3283_v56, -1e+09 }
0x1672   : > { %v3289_v59 = vsel %vm1420_vm7, %v3285_v47, -inf }
0x1673   : > { %3290 = vmax.xlane.f32.xlu1 %v3289_v59 }
0x16fe   : > { %v3288_v6 = vpop.xlane.xlu0 %3287 }
0x16ff   : > { %v3292_v7 = vsub.f32 %v3284_v5, %v3288_v6  ;;  %v4896_v6 = vld [vmem:[%s5830_s3 + $0x2] ss:$0 sm:$0xff] }
0x1700   : > { %v3291_v8 = vpop.xlane.xlu1 %3290 }
0x1701   : > { %v3294_v9 = vmul.f32 1.442695, %v3292_v7  ;;  %v3293_v10 = vsub.f32 %v3285_v47, %v3291_v8 }
0x1703   : > { %5600 = vpow2.f32 %v3294_v9  ;;  %v3296_v12 = vmul.f32 1.442695, %v3293_v10 }
0x1705   : > { %5602 = vpow2.f32 %v3296_v12 }
0x170d   : > { %v5601_v14 = vpop.eup %5600 }
0x170e   : > { %v3298_v15 = vsel %vm1420_vm7, %v5601_v14, 0.0 }
0x170f   : > { %v5603_v17 = vpop.eup %5602  ;;  %3299 = vadd.xlane.f32.xlu0 %v3298_v15 }
0x1710   : > { %v3301_v16 = vsel %vm1420_vm7, %v5603_v17, 0.0 }
0x1711   : > { %3302 = vadd.xlane.f32.xlu1 %v3301_v16  ;;  %v5543_v16 = vld [vmem:[%s5836_s1 + $0x68] sm:$0xff]  }
0x179c   : > { %v3300_v26 = vpop.xlane.xlu0 %3299 }
0x179d   : > { %5604 = vrcp.f32 %v3300_v26 }
0x179e   : > { %v3303_v27 = vpop.xlane.xlu1 %3302 }
0x179f   : > { %5606 = vrcp.f32 %v3303_v27 }
0x17a7   : > { %v5605_v31 = vpop.eup %5604 }
0x17a8   : > { %v3305_v34 = vmul.f32 %v5605_v31, %v5601_v14 }
0x17a9   : > { %v5607_v32 = vpop.eup %5606 }
0x17aa   : > { %v3307_v35 = vmul.f32 %v5607_v32, %v5603_v17  ;;  %v5542_v17 = vld [vmem:[%s5836_s1 + $0x60] sm:$0xff]  }
0x17ac   : > { %v3308_v36 = vpack.c.bf16 %v3307_v35, %v3305_v34 }
0x17ae   : > { %5363 = vmatmul.mubr.msk.bf16.vlgmr.msra.gmra.mrb[64].mxu1 %vm1420_vm7, %v3308_v36 }
0x17af   : > { %5373 = vmatpush3.bf16.msra.mxu1 %v3408_v39  ;;  %5374 = vmatprep.mubr.msk.bf16.mxu1 %vm5645_vm3, %v5644_v11 }
0x17b0   : > { %5386 = vmatprep.subr.bf16.mxu1 %v5644_v11 }
0x17b6   : > { %5375 = vmatmul.mubr.msk.bf16.vlgmr.msra.gmra.mrb[68].mxu1 %vm1368_vm5, %v3033_v46  ;;  %v5540_v46 = vld [vmem:[%s5824_s25 + $0x20] sm:$0xff]  }
0x17b7   : > { %5387 = vmatpush3.bf16.msra.mxu1 %v5538_v40  ;;  %5390 = vmatprep.mubr.msk.bf16.mxu1 %vm5645_vm3, %v5644_v11 }
0x17b8   : > { %5388 = vmatprep.subr.bf16.mxu1 %v5644_v11 }
0x17bb   : > { %5389 = vmatpush3.bf16.msra.mxu1 %v5539_v41 }
0x17bc   : > { %5402 = vmatprep.subr.bf16.mxu1 %v5644_v11 }
0x17be   : > { %5391 = vmatmul.mubr.msk.bf16.vlgmr.msra.gmra.mrb[72].mxu1 %vm1189_vm4, %v6160_v13 }
0x17bf   : > { %5404 = vmatprep.mubr.msk.bf16.mxu1 %vm5645_vm3, %v5644_v11 }
0x1881   : > { %v3347_v42 = vpop.f32.mrb[64].mxu1 }
0x1882   : > { %v5364_v43 = vpop.f32.mrb[65].mxu1 }
0x1883   : > { %v3350_v45 = vpop.f32.mrb[66].mxu1 }
0x1884   : > { %v3354_v48 = vpack.c.bf16 %v3350_v45, %v3347_v42  ;;  %v5365_v49 = vpop.f32.mrb[67].mxu1  ;;  %v4914_v45 = vld [vmem:[%s5842_s28 + $0x6] ss:$0 sm:$0xff] }
0x1886   : > { %5369 = vmatmul.mubr.msk.bf16.vlgmr.msra.gmra.mrb[68].mxu0 %vm1368_vm5, %v3354_v48 }
0x1887   : > { %5379 = vmatpush3.bf16.msra.mxu0 %v5540_v46  ;;  %5382 = vmatprep.mubr.msk.bf16.mxu0 %vm5645_vm3, %v5644_v11 }
0x1888   : > { %5380 = vmatprep.subr.bf16.mxu0 %v5644_v11 }
0x1889   : > { %v3444_v51 = vpop.f32.mrb[68].mxu1 }
0x188a   : > { %v5376_v52 = vpop.f32.mrb[69].mxu1 }
0x188b   : > { %v3447_v53 = vpop.f32.mrb[70].mxu1  ;;  %5381 = vmatpush3.bf16.msra.mxu0 %v5541_v50 }
0x188c   : > { %v5377_v54 = vpop.f32.mrb[71].mxu1  ;;  %5394 = vmatprep.subr.bf16.mxu0 %v5644_v11 }
0x188e   : > { %5383 = vmatmul.mubr.msk.bf16.vlgmr.msra.gmra.mrb[72].mxu0 %vm1189_vm4, %v6187_v30 }
0x188f   : > { %5398 = vmatprep.mubr.msk.bf16.mxu0 %vm5645_vm3, %v5644_v11  ;;  %5395 = vmatpush3.bf16.msra.mxu0 %v5542_v17 }
0x1890   : > { %5396 = vmatprep.subr.bf16.mxu0 %v5644_v11 }
0x1891   : > { %v3576_v60 = vpop.f32.mrb[72].mxu1 }
0x1892   : > { %v3577_v61 = vadd.f32 %v4905_v55, %v3576_v60  ;;  %v5392_v62 = vpop.f32.mrb[73].mxu1 }
0x1893   : > { %v3579_v63 = vpop.f32.mrb[74].mxu1  ;;  %5397 = vmatpush3.bf16.msra.mxu0 %v5543_v16 }
0x1894   : > { %v3580_v0 = vadd.f32 %v4905_v55, %v3579_v63  ;;  %v5393_v1 = vpop.f32.mrb[75].mxu1  ;;  %5408 = vmatprep.subr.bf16.mxu0 %v5644_v11  ;;  %v5544_v63 = vld [vmem:[%s5824_s25 + $0x30] sm:$0xff]  }
0x1895   : > { %v5545_v1 = vld [vmem:[%s5824_s25 + $0x38] sm:$0xff]  }
0x1896   : > { %v3650_v2 = vpack.c.bf16 %v3580_v0, %v3577_v61  ;;  %5399 = vmatmul.mubr.msk.bf16.vlgmr.msra.gmra.mrb[76].mxu0 %vm1189_vm4, %v6160_v13 }
0x1897   : > { %5410 = vmatprep.mubr.msk.bf16.mxu0 %vm5645_vm3, %v5644_v11 }
0x1898   : > { %v3655_v3 = vsel %vm1368_vm5, %v3650_v2, 0 }
0x1899   : > { %5403 = vmatpush3.bf16.xpose.msra.mxu1 %v3655_v3 }
0x189a   : > { %5414 = vmatprep.subr.bf16.mxu1 %v5644_v11 }
0x1959   : > { %v3397_v56 = vpop.f32.mrb[68].mxu0 }
0x195a   : > { %v6323_v4 = vadd.f32 %v3444_v51, %v3397_v56  ;;  %v5370_v5 = vpop.f32.mrb[69].mxu0  ;;  %v4920_v51 = vld [vmem:[%s5847_s27 + $0x8] sm:$0xf] }
0x195b   : > { %v3400_v44 = vpop.f32.mrb[70].mxu0  ;;  %v3777_v52 = vsel %vm1816_vm9, %v4920_v51, 0  ;;  %v5546_v5 = vld [vmem:[%s5836_s1 + $0x30] sm:$0xff]  }
0x195c   : > { %v6325_v47 = vadd.f32 %v3447_v53, %v3400_v44  ;;  %v5371_v59 = vpop.f32.mrb[71].mxu0 }
0x1961   : > { %v3510_v7 = vpop.f32.mrb[72].mxu0 }
0x1962   : > { %v5384_v8 = vpop.f32.mrb[73].mxu0  ;;  %v3511_v10 = vadd.f32 %v4896_v6, %v3510_v7  ;;  %v4927_v7 = vld [vmem:[%s5830_s3 + $0x3] ss:$0 sm:$0xff]  ;;  %s6576_s3 = sld [smem:[#allocation21_spill]] }
0x1963   : > { %v3513_v9 = vpop.f32.mrb[74].mxu0 }
0x1964   : > { %v3514_v12 = vadd.f32 %v4896_v6, %v3513_v9  ;;  %v5385_v14 = vpop.f32.mrb[75].mxu0  ;;  %v5547_v6 = vld [vmem:[%s5836_s1 + $0x38] sm:$0xff]  }
0x1966   : > { %v3649_v15 = vpack.c.bf16 %v3514_v12, %v3511_v10 }
0x1968   : > { %5405 = vmatmul.mubr.msk.bf16.vlgmr.msra.gmra.mrb[76].mxu1 %vm1368_vm5, %v3649_v15 }
0x1969   : > { %5416 = vmatprep.mubr.msk.bf16.mxu1 %vm5645_vm3, %v5644_v11  ;;  %v3642_v41 = vpop.f32.mrb[76].mxu0  ;;  %5415 = vmatpush3.bf16.msra.mxu1 %v3777_v52 }
0x196a   : > { %v5400_v42 = vpop.f32.mrb[77].mxu0  ;;  %v3643_v48 = vadd.f32 %v4914_v45, %v3642_v41  ;;  %5428 = vmatprep.subr.bf16.mxu1 %v5644_v11 }
0x196b   : > { %v3645_v43 = vpop.f32.mrb[78].mxu0 }
0x196c   : > { %v5401_v46 = vpop.f32.mrb[79].mxu0  ;;  %v3646_v49 = vadd.f32 %v4914_v45, %v3645_v43 }
0x196e   : > { %v3725_v50 = vpack.c.bf16 %v3646_v49, %v3643_v48 }
0x1970   : > { %5409 = vmatpush3.bf16.msra.mxu0 %v3725_v50 }
0x1971   : > { %5420 = vmatprep.subr.bf16.mxu0 %v5644_v11 }
0x1a3b   : > { %v3691_v18 = vpop.f32.mrb[76].mxu1 }
0x1a3c   : > { %v3698_v19 = vmul.f32 0.35355338, %v3691_v18  ;;  %v5406_v20 = vpop.f32.mrb[77].mxu1 }
0x1a3d   : > { %v3694_v21 = vpop.f32.mrb[78].mxu1 }
0x1a3e   : > { %v3699_v22 = vmul.f32 0.35355338, %v3694_v21  ;;  %v5407_v37 = vpop.f32.mrb[79].mxu1  ;;  %v3700_v23 = vsel %vm1163_vm10, %v3698_v19, -1e+09 }
0x1a3f   : > { %v3702_v24 = vsel %vm1420_vm7, %v3700_v23, -inf }
0x1a40   : > { %3703 = vmax.xlane.f32.xlu0 %v3702_v24  ;;  %v3701_v38 = vsel %vm1164_vm11, %v3699_v22, -1e+09  ;;  %v4936_v22 = vld [vmem:[%s5842_s28 + $0x3] ss:$0 sm:$0xff] }
0x1a41   : > { %v3705_v25 = vsel %vm1420_vm7, %v3701_v38, -inf }
0x1a42   : > { %3706 = vmax.xlane.f32.xlu1 %v3705_v25 }
0x1acd   : > { %v3704_v26 = vpop.xlane.xlu0 %3703 }
0x1ace   : > { %v3708_v27 = vsub.f32 %v3700_v23, %v3704_v26 }
0x1acf   : > { %v3707_v31 = vpop.xlane.xlu1 %3706 }
0x1ad0   : > { %v3710_v32 = vmul.f32 1.442695, %v3708_v27  ;;  %v3709_v33 = vsub.f32 %v3701_v38, %v3707_v31 }
0x1ad2   : > { %5608 = vpow2.f32 %v3710_v32  ;;  %v3712_v34 = vmul.f32 1.442695, %v3709_v33 }
0x1ad4   : > { %5610 = vpow2.f32 %v3712_v34 }
0x1adc   : > { %v5609_v35 = vpop.eup %5608 }
0x1add   : > { %v3714_v36 = vsel %vm1420_vm7, %v5609_v35, 0.0 }
0x1ade   : > { %v5611_v39 = vpop.eup %5610  ;;  %3715 = vadd.xlane.f32.xlu0 %v3714_v36 }
0x1adf   : > { %v3717_v40 = vsel %vm1420_vm7, %v5611_v39, 0.0 }
0x1ae0   : > { %3718 = vadd.xlane.f32.xlu1 %v3717_v40 }
0x1b6b   : > { %v3716_v53 = vpop.xlane.xlu0 %3715 }
0x1b6c   : > { %5612 = vrcp.f32 %v3716_v53 }
0x1b6d   : > { %v3719_v54 = vpop.xlane.xlu1 %3718 }
0x1b6e   : > { %5614 = vrcp.f32 %v3719_v54 }
0x1b76   : > { %v5613_v55 = vpop.eup %5612 }
0x1b77   : > { %v3721_v61 = vmul.f32 %v5613_v55, %v5609_v35 }
0x1b78   : > { %v5615_v60 = vpop.eup %5614 }
0x1b79   : > { %v3723_v62 = vmul.f32 %v5615_v60, %v5611_v39  ;;  %v4945_v60 = vld [vmem:[%s5842_s28 + $0x7] ss:$0 sm:$0xff] }
0x1b7b   : > { %v3724_v0 = vpack.c.bf16 %v3723_v62, %v3721_v61 }
0x1b7d   : > { %5411 = vmatmul.mubr.msk.bf16.vlgmr.msra.gmra.mrb[80].mxu0 %vm1420_vm7, %v3724_v0 }
0x1b7e   : > { %5421 = vmatpush3.bf16.msra.mxu0 %v5544_v63  ;;  %5424 = vmatprep.mubr.msk.bf16.mxu0 %vm5645_vm3, %v5644_v11 }
0x1b7f   : > { %5422 = vmatprep.subr.bf16.mxu0 %v5644_v11 }
0x1b82   : > { %5423 = vmatpush3.bf16.msra.mxu0 %v5545_v1  ;;  %v4951_v1 = vld [vmem:[%s5847_s27 + $0xc] sm:$0xf]  ;;  %s6586_s27 = sld [smem:[#allocation4_spill]] }
0x1b83   : > { %5436 = vmatprep.subr.bf16.mxu0 %v5644_v11 }
0x1b85   : > { %5425 = vmatmul.mubr.msk.bf16.vlgmr.msra.gmra.mrb[84].mxu0 %vm1189_vm4, %v6187_v30 }
0x1b86   : > { %5440 = vmatprep.mubr.msk.bf16.mxu0 %vm5645_vm3, %v5644_v11 }
0x1b88   : > { %p4968_p5 = scmp.ne.s32.totalorder %s6586_s27, 5 }
0x1b89   : > { %vm4463_vm13 = vcmask (!%p4968_p5), 257024  }
0x1c50   : > { %v3763_v2 = vpop.f32.mrb[80].mxu0 }
0x1c51   : > { %v5412_v3 = vpop.f32.mrb[81].mxu0 }
0x1c52   : > { %v3766_v56 = vpop.f32.mrb[82].mxu0 }
0x1c53   : > { %v3770_v44 = vpack.c.bf16 %v3766_v56, %v3763_v2  ;;  %v5413_v59 = vpop.f32.mrb[83].mxu0  ;;  %v4148_v2 = vsel %vm1816_vm9, %v4951_v1, 0 }
0x1c55   : > { %5417 = vmatmul.mubr.msk.bf16.vlgmr.msra.gmra.mrb[80].mxu1 %vm1368_vm5, %v3770_v44 }
0x1c56   : > { %5429 = vmatpush3.bf16.msra.mxu1 %v5546_v5  ;;  %5432 = vmatprep.mubr.msk.bf16.mxu1 %vm5645_vm3, %v5644_v11 }
0x1c57   : > { %5430 = vmatprep.subr.bf16.mxu1 %v5644_v11 }
0x1c58   : > { %v3881_v30 = vpop.f32.mrb[84].mxu0 }
0x1c59   : > { %v5426_v8 = vpop.f32.mrb[85].mxu0  ;;  %v3882_v10 = vadd.f32 %v4927_v7, %v3881_v30 }
0x1c5a   : > { %v3884_v9 = vpop.f32.mrb[86].mxu0  ;;  %5431 = vmatpush3.bf16.msra.mxu1 %v5547_v6 }
0x1c5b   : > { %v3885_v12 = vadd.f32 %v4927_v7, %v3884_v9  ;;  %v5427_v14 = vpop.f32.mrb[87].mxu0  ;;  %5444 = vmatprep.subr.bf16.mxu1 %v5644_v11 }
0x1c5d   : > { %v4020_v15 = vpack.c.bf16 %v3885_v12, %v3882_v10  ;;  %5433 = vmatmul.mubr.msk.bf16.vlgmr.msra.gmra.mrb[84].mxu1 %vm1189_vm4, %v6160_v13 }
0x1c5e   : > { %5446 = vmatprep.mubr.msk.bf16.mxu1 %vm5645_vm3, %v5644_v11 }
0x1d28   : > { %v3813_v17 = vpop.f32.mrb[80].mxu1 }
0x1d29   : > { %v6376_v16 = vadd.f32 %v3813_v17, %v6323_v4  ;;  %v5418_v18 = vpop.f32.mrb[81].mxu1  ;;  %v5548_v4 = vld [vmem:[%s5836_s1 + $0x70] sm:$0xff]  }
0x1d2a   : > { %v3816_v19 = vpop.f32.mrb[82].mxu1  ;;  %5437 = vmatpush3.bf16.msra.mxu0 %v5548_v4 }
0x1d2b   : > { %v6379_v20 = vadd.f32 %v3816_v19, %v6325_v47  ;;  %v5419_v21 = vpop.f32.mrb[83].mxu1  ;;  %v5549_v47 = vld [vmem:[%s5836_s1 + $0x78] sm:$0xff]   ;;  %5438 = vmatprep.subr.bf16.mxu0 %v5644_v11  ;;  %s6577_s1 = scalar_lea.vmem %s6576_s3, %s5788_s6  ;;  %s6587_s3 = sld [smem:[#allocation30_spill]] (!%p4968_p5) }
0x1d2e   : > { %5439 = vmatpush3.bf16.msra.mxu0 %v5549_v47 }
0x1d2f   : > { %5450 = vmatprep.subr.bf16.mxu0 %v5644_v11 }
0x1d30   : > { %v3947_v37 = vpop.f32.mrb[84].mxu1 }
0x1d31   : > { %v5434_v23 = vpop.f32.mrb[85].mxu1  ;;  %v3948_v38 = vadd.f32 %v4936_v22, %v3947_v37  ;;  %5441 = vmatmul.mubr.msk.bf16.vlgmr.msra.gmra.mrb[88].mxu0 %vm1189_vm4, %v6160_v13 }
0x1d32   : > { %v3950_v24 = vpop.f32.mrb[86].mxu1  ;;  %5452 = vmatprep.mubr.msk.bf16.mxu0 %vm5645_vm3, %v5644_v11 }
0x1d33   : > { %v3951_v25 = vadd.f32 %v4936_v22, %v3950_v24  ;;  %v5435_v26 = vpop.f32.mrb[87].mxu1 }
0x1d35   : > { %v4021_v27 = vpack.c.bf16 %v3951_v25, %v3948_v38 }
0x1d37   : > { %v4026_v31 = vsel %vm1368_vm5, %v4021_v27, 0 }
0x1d38   : > { %5445 = vmatpush3.bf16.xpose.msra.mxu1 %v4026_v31 }
0x1d39   : > { %5456 = vmatprep.subr.bf16.mxu1 %v5644_v11 }
0x1d3f   : > { %5447 = vmatmul.mubr.msk.bf16.vlgmr.msra.gmra.mrb[88].mxu1 %vm1368_vm5, %v4020_v15  ;;  %v4953_v15 = vld [vmem:[%s6577_s1] ss:$0 sm:$0xff] }
0x1d40   : > { %5458 = vmatprep.mubr.msk.bf16.mxu1 %vm5645_vm3, %v5644_v11  ;;  %5457 = vmatpush3.bf16.msra.mxu1 %v4148_v2 }
0x1d41   : > { %5470 = vmatprep.subr.bf16.mxu1 %v5644_v11 }
0x1e04   : > { %v4013_v53 = vpop.f32.mrb[88].mxu0 }
0x1e05   : > { %v5442_v54 = vpop.f32.mrb[89].mxu0  ;;  %v4014_v62 = vadd.f32 %v4945_v60, %v4013_v53 }
0x1e06   : > { %v4016_v55 = vpop.f32.mrb[90].mxu0 }
0x1e07   : > { %v5443_v61 = vpop.f32.mrb[91].mxu0  ;;  %v4017_v63 = vadd.f32 %v4945_v60, %v4016_v55  ;;  %v5554_v60 = vld [vmem:[%s5874_s16 + $0x10] sm:$0xff]  }
0x1e08   : > { %v5555_v61 = vld [vmem:[%s5874_s16 + $0x18] sm:$0xff]  }
0x1e09   : > { %v4096_v0 = vpack.c.bf16 %v4017_v63, %v4014_v62  ;;  %v4956_v62 = vld [vmem:[%s1046_s14] ss:$0 sm:$0xff] }
0x1e0b   : > { %5451 = vmatpush3.bf16.msra.mxu0 %v4096_v0 }
0x1e0c   : > { %5462 = vmatprep.subr.bf16.mxu0 %v5644_v11 }
0x1e12   : > { %v4062_v32 = vpop.f32.mrb[88].mxu1 }
0x1e13   : > { %v4069_v33 = vmul.f32 0.35355338, %v4062_v32  ;;  %v5448_v34 = vpop.f32.mrb[89].mxu1 }
0x1e14   : > { %v4065_v35 = vpop.f32.mrb[90].mxu1  ;;  %v5550_v34 = vld [vmem:[%s5864_s9] sm:$0xff]  }
0x1e15   : > { %v4070_v36 = vmul.f32 0.35355338, %v4065_v35  ;;  %v5449_v39 = vpop.f32.mrb[91].mxu1  ;;  %v4071_v40 = vsel %vm1163_vm10, %v4069_v33, -1e+09  ;;  %v5551_v35 = vld [vmem:[%s5864_s9 + $0x8] sm:$0xff]  }
0x1e16   : > { %v4073_v41 = vsel %vm1420_vm7, %v4071_v40, -inf  ;;  %v5553_v39 = vld [vmem:[%s5874_s16 + $0x8] sm:$0xff]  }
0x1e17   : > { %4074 = vmax.xlane.f32.xlu0 %v4073_v41  ;;  %v4072_v42 = vsel %vm1164_vm11, %v4070_v36, -1e+09  ;;  %v5552_v36 = vld [vmem:[%s5874_s16] sm:$0xff]  }
0x1e18   : > { %v4076_v13 = vsel %vm1420_vm7, %v4072_v42, -inf }
0x1e19   : > { %4077 = vmax.xlane.f32.xlu1 %v4076_v13 }
0x1ea4   : > { %v4075_v43 = vpop.xlane.xlu0 %4074 }
0x1ea5   : > { %v4079_v45 = vsub.f32 %v4071_v40, %v4075_v43 }
0x1ea6   : > { %v4078_v46 = vpop.xlane.xlu1 %4077 }
0x1ea7   : > { %v4081_v48 = vmul.f32 1.442695, %v4079_v45  ;;  %v4080_v49 = vsub.f32 %v4072_v42, %v4078_v46 }
0x1ea9   : > { %5616 = vpow2.f32 %v4081_v48  ;;  %v4083_v50 = vmul.f32 1.442695, %v4080_v49  ;;  %v4954_v48 = vld [vmem:[%s6579_s12] ss:$0 sm:$0xff] }
0x1eab   : > { %5618 = vpow2.f32 %v4083_v50 }
0x1eb3   : > { %v5617_v57 = vpop.eup %5616 }
0x1eb4   : > { %v4085_v51 = vsel %vm1420_vm7, %v5617_v57, 0.0 }
0x1eb5   : > { %v5619_v52 = vpop.eup %5618  ;;  %4086 = vadd.xlane.f32.xlu0 %v4085_v51 }
0x1eb6   : > { %v4088_v58 = vsel %vm1420_vm7, %v5619_v52, 0.0 }
0x1eb7   : > { %4089 = vadd.xlane.f32.xlu1 %v4088_v58 }
0x1f42   : > { %v4087_v3 = vpop.xlane.xlu0 %4086 }
0x1f43   : > { %5620 = vrcp.f32 %v4087_v3 }
0x1f44   : > { %v4090_v56 = vpop.xlane.xlu1 %4089 }
0x1f45   : > { %5622 = vrcp.f32 %v4090_v56 }
0x1f4d   : > { %v5621_v5 = vpop.eup %5620 }
0x1f4e   : > { %v4092_v59 = vmul.f32 %v5621_v5, %v5617_v57 }
0x1f4f   : > { %v5623_v44 = vpop.eup %5622 }
0x1f50   : > { %v4094_v6 = vmul.f32 %v5623_v44, %v5619_v52  ;;  %v4955_v52 = vld [vmem:[%s6581_s22] ss:$0 sm:$0xff] }
0x1f52   : > { %v4095_v7 = vpack.c.bf16 %v4094_v6, %v4092_v59 }
0x1f54   : > { %5453 = vmatmul.mubr.msk.bf16.vlgmr.msra.gmra.mrb[92].mxu0 %vm1420_vm7, %v4095_v7 }
0x1f55   : > { %5466 = vmatprep.mubr.msk.bf16.mxu0 %vm5645_vm3, %v5644_v11  ;;  %5463 = vmatpush3.bf16.msra.mxu0 %v5550_v34  ;;  %v4967_v34 = vld [vmem:[%s1060_s17] ss:$0 sm:$0xff] }
0x1f56   : > { %5464 = vmatprep.subr.bf16.mxu0 %v5644_v11 }
0x1f59   : > { %5465 = vmatpush3.bf16.msra.mxu0 %v5551_v35 }
0x2027   : > { %v4134_v30 = vpop.f32.mrb[92].mxu0 }
0x2028   : > { %v5454_v8 = vpop.f32.mrb[93].mxu0 }
0x2029   : > { %v4137_v9 = vpop.f32.mrb[94].mxu0 }
0x202a   : > { %v4141_v10 = vpack.c.bf16 %v4137_v9, %v4134_v30  ;;  %v5455_v12 = vpop.f32.mrb[95].mxu0 }
0x202c   : > { %5459 = vmatmul.mubr.msk.bf16.vlgmr.msra.gmra.mrb[92].mxu1 %vm1368_vm5, %v4141_v10 }
0x202d   : > { %5478 = vmatprep.mubr.msk.bf16.mxu1 %vm5645_vm3, %v5644_v11  ;;  %5471 = vmatpush3.bf16.msra.mxu1 %v5552_v36 }
0x202e   : > { %5472 = vmatprep.subr.bf16.mxu1 %v5644_v11 }
0x2031   : > { %5473 = vmatpush3.bf16.msra.mxu1 %v5553_v39 }
0x2032   : > { %5474 = vmatprep.subr.bf16.mxu1 %v5644_v11 }
0x2035   : > { %5475 = vmatpush3.bf16.msra.mxu1 %v5554_v60 }
0x2036   : > { %5476 = vmatprep.subr.bf16.mxu1 %v5644_v11  ;;  %v4960_v11 = vld [vmem:[%s1054_s26] ss:$0 sm:$0xff] }
0x2039   : > { %5477 = vmatpush3.bf16.msra.mxu1 %v5555_v61 }
0x20ff   : > { %v4184_v14 = vpop.f32.mrb[92].mxu1 }
0x2100   : > { %v4191_v17 = vadd.f32 %v4184_v14, %v6376_v16  ;;  %v5460_v18 = vpop.f32.mrb[93].mxu1 }
0x2101   : > { %v4187_v19 = vpop.f32.mrb[94].mxu1 }
0x2102   : > { %v4200_v21 = vadd.f32 %v4953_v15, %v4191_v17  ;;  %v4192_v22 = vadd.f32 %v4187_v19, %v6379_v20  ;;  %v5461_v37 = vpop.f32.mrb[95].mxu1 }
0x2104   : > { %v4201_v23 = vadd.f32 %v4953_v15, %v4192_v22  ;;  %v4202_v24 = vadd.f32 %v4200_v21, %v6181_v28 }
0x2106   : > { %v4206_v38 = vsel %vm1189_vm4, %v4202_v24, 0.0  ;;  %v4203_v25 = vadd.f32 %v4201_v23, %v6183_v29 }
0x2107   : > { %4207 = vadd.xlane.f32.xlu0 %v4206_v38 }
0x2108   : > { %v4209_v26 = vsel %vm1189_vm4, %v4203_v25, 0.0 }
0x2109   : > { %4210 = vadd.xlane.f32.xlu1 %v4209_v26 }
0x2194   : > { %v4208_v16 = vpop.xlane.xlu0 %4207 }
0x2195   : > { %v4212_v27 = vmul.f32 0.03125, %v4208_v16 }
0x2196   : > { %v4211_v31 = vpop.xlane.xlu1 %4210 }
0x2197   : > { %v4214_v4 = vsub.f32 %v4202_v24, %v4212_v27  ;;  %v4213_v20 = vmul.f32 0.03125, %v4211_v31 }
0x2199   : > { %v4215_v47 = vsub.f32 %v4203_v25, %v4213_v20  ;;  %v4216_v32 = vmul.f32 %v4214_v4, %v4214_v4 }
0x219b   : > { %v4218_v28 = vsel %vm1189_vm4, %v4216_v32, 0.0  ;;  %v4217_v33 = vmul.f32 %v4215_v47, %v4215_v47 }
0x219c   : > { %4219 = vadd.xlane.f32.xlu0 %v4218_v28  ;;  %v4966_v28 = vld [vmem:[%s1057_s4] ss:$0 sm:$0xff] }
0x219d   : > { %v4221_v29 = vsel %vm1189_vm4, %v4217_v33, 0.0 }
0x219e   : > { %4222 = vadd.xlane.f32.xlu1 %v4221_v29 }
0x2229   : > { %v4220_v40 = vpop.xlane.xlu0 %4219 }
0x222a   : > { %v4224_v41 = vmul.f32 0.03125, %v4220_v40 }
0x222b   : > { %v4223_v42 = vpop.xlane.xlu1 %4222 }
0x222c   : > { %v4226_v13 = vadd.f32 1e-05, %v4224_v41  ;;  %v4225_v43 = vmul.f32 0.03125, %v4223_v42 }
0x222e   : > { %5624 = vrsqrt.f32 %v4226_v13  ;;  %v4227_v45 = vadd.f32 1e-05, %v4225_v43 }
0x2230   : > { %5626 = vrsqrt.f32 %v4227_v45 }
0x2238   : > { %v5625_v46 = vpop.eup %5624 }
0x2239   : > { %v4230_v49 = vmul.f32 %v5625_v46, %v4214_v4 }
0x223a   : > { %v5627_v50 = vpop.eup %5626 }
0x223b   : > { %v4238_v57 = vmul.f32 %v4954_v48, %v4230_v49  ;;  %v4231_v51 = vmul.f32 %v5627_v50, %v4215_v47 }
0x223d   : > { %v4239_v58 = vmul.f32 %v4954_v48, %v4231_v51  ;;  %v4246_v53 = vadd.f32 %v4955_v52, %v4238_v57 }
0x223f   : > { %v4247_v54 = vadd.f32 %v4955_v52, %v4239_v58 }
0x2241   : > { %v4248_v55 = vpack.c.bf16 %v4247_v54, %v4246_v53 }
0x2243   : > { %5467 = vmatmul.mubr.msk.bf16.vlgmr.msra.gmra.mrb[96].mxu0 %vm1189_vm4, %v4248_v55 }
0x2316   : > { %v4309_v63 = vpop.f32.mrb[96].mxu0 }
0x2317   : > { %v4310_v0 = vadd.f32 %v4956_v62, %v4309_v63  ;;  %v5468_v1 = vpop.f32.mrb[97].mxu0 }
0x2318   : > { %v4312_v2 = vpop.f32.mrb[98].mxu0 }
0x2319   : > { %v4313_v3 = vadd.f32 %v4956_v62, %v4312_v2  ;;  %v5469_v56 = vpop.f32.mrb[99].mxu0  ;;  %v4316_v5 = vmax.f32 %v4310_v0, 0.0 }
0x231b   : > { %v4317_v44 = vmax.f32 %v4313_v3, 0.0 }
0x231d   : > { %v4318_v59 = vpack.c.bf16 %v4317_v44, %v4316_v5 }
0x231f   : > { %5479 = vmatmul.mubr.msk.bf16.vlgmr.msra.gmra.mrb[96].mxu1 %vm4358_vm12, %v4318_v59 }
0x23f2   : > { %v4396_v6 = vpop.f32.mrb[96].mxu1 }
0x23f3   : > { %v4397_v7 = vadd.f32 %v4960_v11, %v4396_v6  ;;  %v5480_v30 = vpop.f32.mrb[97].mxu1 }
0x23f4   : > { %v4399_v8 = vpop.f32.mrb[98].mxu1 }
0x23f5   : > { %v4400_v9 = vadd.f32 %v4960_v11, %v4399_v8  ;;  %v5481_v10 = vpop.f32.mrb[99].mxu1  ;;  %v4403_v12 = vadd.f32 %v4397_v7, %v4246_v53 }
0x23f7   : > { %v4407_v14 = vsel %vm1189_vm4, %v4403_v12, 0.0  ;;  %v4404_v15 = vadd.f32 %v4400_v9, %v4247_v54 }
0x23f8   : > { %4408 = vadd.xlane.f32.xlu0 %v4407_v14 }
0x23f9   : > { %v4410_v17 = vsel %vm1189_vm4, %v4404_v15, 0.0 }
0x23fa   : > { %4411 = vadd.xlane.f32.xlu1 %v4410_v17 }
0x2485   : > { %v4409_v18 = vpop.xlane.xlu0 %4408 }
0x2486   : > { %v4413_v19 = vmul.f32 0.03125, %v4409_v18 }
0x2487   : > { %v4412_v21 = vpop.xlane.xlu1 %4411 }
0x2488   : > { %v4415_v22 = vsub.f32 %v4403_v12, %v4413_v19  ;;  %v4414_v37 = vmul.f32 0.03125, %v4412_v21 }
0x248a   : > { %v4416_v23 = vsub.f32 %v4404_v15, %v4414_v37  ;;  %v4417_v24 = vmul.f32 %v4415_v22, %v4415_v22 }
0x248c   : > { %v4419_v38 = vsel %vm1189_vm4, %v4417_v24, 0.0  ;;  %v4418_v25 = vmul.f32 %v4416_v23, %v4416_v23 }
0x248d   : > { %4420 = vadd.xlane.f32.xlu0 %v4419_v38 }
0x248e   : > { %v4422_v26 = vsel %vm1189_vm4, %v4418_v25, 0.0 }
0x248f   : > { %4423 = vadd.xlane.f32.xlu1 %v4422_v26 }
0x251a   : > { %v4421_v16 = vpop.xlane.xlu0 %4420 }
0x251b   : > { %v4425_v27 = vmul.f32 0.03125, %v4421_v16 }
0x251c   : > { %v4424_v31 = vpop.xlane.xlu1 %4423 }
0x251d   : > { %v4427_v4 = vadd.f32 1e-05, %v4425_v27  ;;  %v4426_v20 = vmul.f32 0.03125, %v4424_v31 }
0x251f   : > { %5628 = vrsqrt.f32 %v4427_v4  ;;  %v4428_v47 = vadd.f32 1e-05, %v4426_v20 }
0x2521   : > { %5630 = vrsqrt.f32 %v4428_v47 }
0x2529   : > { %v5629_v32 = vpop.eup %5628 }
0x252a   : > { %v4431_v33 = vmul.f32 %v5629_v32, %v4415_v22 }
0x252b   : > { %v5631_v29 = vpop.eup %5630 }
0x252c   : > { %v4439_v35 = vmul.f32 %v4966_v28, %v4431_v33  ;;  %v4432_v36 = vmul.f32 %v5631_v29, %v4416_v23  ;;  %4454 = sbr.rel (%p4968_p5) target bundleno = 9525 (0x2535), region = 128 }
0x252e   : > { %v4447_v39 = vadd.f32 %v4967_v34, %v4439_v35  ;;  %v4440_v40 = vmul.f32 %v4966_v28, %v4432_v36 }
0x2530   : > { %4449 = vst.msk [vmem:[#allocation2] sm:$0xff] %vm1189_vm4, %v4447_v39  ;;  %v4448_v41 = vadd.f32 %v4967_v34, %v4440_v40  ;;  %v4979_v42 = vpack.c.bf16 (!%p4968_p5), %v4447_v39, %v4447_v39 }
0x2532   : > { %4450 = vst.msk [vmem:[#allocation2 + $0x8] sm:$0xff] %vm1189_vm4, %v4448_v41  ;;  %v4980_v13 = vpack.c.bf16 (!%p4968_p5), %v4448_v41, %v4448_v41 }
0x2533   : > { %4464 = vst.msk [vmem:[%s6587_s3] sm:$0xf] %vm4463_vm13, %v4979_v42 }
0x2534   : > { %4465 = vst.msk [vmem:[%s6587_s3 + $0x4] sm:$0xf] %vm4463_vm13, %v4980_v13 }
0x2535 PF: > { %s6588_s1 = sld [smem:[#allocation3_spill]] }
0x253b   : > { %s35_s29 = sadd.s32 1, %s6588_s1  }
0x253c   : > { %p32_p6 = scmp.ge.s32.totalorder %s35_s29, 8  }
0x253e   :  { %34 = sbr.rel (!%p32_p6) target bundleno = 26 (0x1a), region = 259 }

</bundles_post_ra>
